<compile_context>
chip_gen: v7x
topology: tpu7x:2x2x1
jax: 0.10.0
libtpu: 0.0.40
codegen_flags: <defaults>
</compile_context>

<pallas_src>
import functools

import numpy as np
import jax
import jax.numpy as jnp
from jax import lax
from jax.experimental import pallas as pl
from jax.experimental.pallas import tpu as pltpu


# Matmul operand dtype.  Per the review, set to jnp.bfloat16 on v5e/v6e/v7x for
# ~2x MXU rate (accumulation stays f32 via preferred_element_type, VPU/EUP
# epilogues stay f32).  Kept f32 here so the 1e-4 correctness check against the
# pure-JAX f32 reference stays tight; the test tolerance adapts automatically.
_MATMUL_DTYPE = jnp.float32


# ----------------------------------------------------------------------------
# Host-side layout / shift-plan construction (all done once, outside the kernel)
# ----------------------------------------------------------------------------
def _base_layout(nb):
    """Column layout of the 4x4 base grid: m = (i*4 + j)*nb + n -> (y=i, x=j, n)."""
    return [(i, j, n) for i in range(4) for j in range(4) for n in range(nb)]


def _next_layout(lay):
    """Parity-blocked layout of the next (doubled) resolution.  The kernel emits
    the four output parities (P, Q) as lane-concatenated groups in g = P*2+Q
    order, so the new layout is simply 4 shifted copies of the old one."""
    out = []
    for P in (0, 1):
        for Q in (0, 1):
            for (y, x, n) in lay:
                out.append((2 * y + P, 2 * x + Q, n))
    return out


def _build_shift_plan(lay, grid):
    """For each +/-1 spatial shift along y or x of the given column layout,
    decompose the column-index map into (static lane offset, 0/1 mask) pairs.
    Returns the static plan and the packed per-layer mask array (n_rows, M)."""
    M = len(lay)
    inv = {pos: m for m, pos in enumerate(lay)}
    rows = []
    plan = {"y": {}, "x": {}}
    for axis in ("y", "x"):
        for d in (-1, 1):
            groups = {}
            for m, (y, x, n) in enumerate(lay):
                yy, xx = (y + d, x) if axis == "y" else (y, x + d)
                if 0 <= yy < grid and 0 <= xx < grid:
                    off = inv[(yy, xx, n)] - m
                    groups.setdefault(off, []).append(m)
            entries = []
            for off in sorted(groups):
                mask = np.zeros(M, np.float32)
                mask[groups[off]] = 1.0
                entries.append((off, len(rows)))
                rows.append(mask)
            plan[axis][d] = entries
    return plan, np.stack(rows, axis=0)


def _pack_w1(w1):
    """(z, c1, 4, 4) torch layout -> (c1, 16*z): column block khw = i*4+j holds
    w1[:, :, i, j]^T, so layer 1 is one matmul against kron(I_16, x^T)."""
    z, c1 = w1.shape[0], w1.shape[1]
    out = np.zeros((c1, 16 * z), np.float32)
    for i in range(4):
        for j in range(4):
            k = i * 4 + j
            out[:, k * z:(k + 1) * z] = w1[:, :, i, j].T
    return out


def _pack_w_s2(w):
    """(cin, cout, 4, 4) torch layout -> fused sub-pixel weight (4*cout, 9*cin).
    Row group g = P*2+Q (output parity); column block t = (dy+1)*3+(dx+1) (tap);
    unused tap blocks stay zero (free at this MXU occupancy, per review)."""
    cin, cout = w.shape[0], w.shape[1]
    out = np.zeros((4 * cout, 9 * cin), np.float32)
    for P in (0, 1):
        for Q in (0, 1):
            g = P * 2 + Q
            for dy in (P - 1, P):
                for dx in (Q - 1, Q):
                    kh = 1 + P - 2 * dy
                    kw = 1 + Q - 2 * dx
                    t = (dy + 1) * 3 + (dx + 1)
                    out[g * cout:(g + 1) * cout,
                        t * cin:(t + 1) * cin] = w[:, :, kh, kw].T
    return out


def _unpack_index(lay4, c_img, nb):
    """Gather indices mapping the kernel's (4*c_img, M4) parity-blocked output
    slab to NCHW (nb, c_img, 32, 32) (one tiny XLA gather outside the kernel)."""
    rows = np.zeros((nb, c_img, 32, 32), np.int32)
    cols = np.zeros((nb, c_img, 32, 32), np.int32)
    for m, (y, x, n) in enumerate(lay4):
        for P in (0, 1):
            for Q in (0, 1):
                for c in range(c_img):
                    rows[n, c, 2 * y + P, 2 * x + Q] = (P * 2 + Q) * c_img + c
                    cols[n, c, 2 * y + P, 2 * x + Q] = m
    return rows, cols


def prepare_params(p, nb):
    """One-time packing of PyTorch-layout parameters + static layout/shift plans."""
    c_img = int(p["w4"].shape[1])
    lay2 = _base_layout(nb)           # layer-2 input layout (4x4)
    lay3 = _next_layout(lay2)         # layer-3 input layout (8x8, parity-blocked)
    lay4 = _next_layout(lay3)         # layer-4 input layout (16x16, parity-blocked)
    p2, m2 = _build_shift_plan(lay2, 4)
    p3, m3 = _build_shift_plan(lay3, 8)
    p4, m4 = _build_shift_plan(lay4, 16)
    ur, uc = _unpack_index(lay4, c_img, nb)

    def vec3(b, g, be):               # pack bias / gamma / beta into one (C, 3) buf
        return jnp.stack([jnp.asarray(b, jnp.float32),
                          jnp.asarray(g, jnp.float32),
                          jnp.asarray(be, jnp.float32)], axis=1)

    arrays = {
        "w1": jnp.asarray(_pack_w1(np.asarray(p["w1"], np.float32)), _MATMUL_DTYPE),
        "v1": vec3(p["b1"], p["g1"], p["be1"]),
        "w2": jnp.asarray(_pack_w_s2(np.asarray(p["w2"], np.float32)), _MATMUL_DTYPE),
        "v2": vec3(p["b2"], p["g2"], p["be2"]),
        "w3": jnp.asarray(_pack_w_s2(np.asarray(p["w3"], np.float32)), _MATMUL_DTYPE),
        "v3": vec3(p["b3"], p["g3"], p["be3"]),
        "w4": jnp.asarray(_pack_w_s2(np.asarray(p["w4"], np.float32)), _MATMUL_DTYPE),
        "b4": jnp.tile(jnp.asarray(p["b4"], jnp.float32), 4).reshape(-1, 1),
        "m2": jnp.asarray(m2), "m3": jnp.asarray(m3), "m4": jnp.asarray(m4),
        "ur": jnp.asarray(ur), "uc": jnp.asarray(uc),
    }
    cfg = {"p2": p2, "p3": p3, "p4": p4, "eps": 1e-5, "mdt": _MATMUL_DTYPE,
           "c_img": c_img, "M4": len(lay4)}
    return arrays, cfg


# ----------------------------------------------------------------------------
# The fused generator kernel (single invocation, no grid, everything in VMEM)
# ----------------------------------------------------------------------------
def _generator_kernel(xk_ref, w1_ref, v1_ref, w2_ref, v2_ref, w3_ref, v3_ref,
                      w4_ref, b4_ref, m2_ref, m3_ref, m4_ref, out_ref, *, cfg):
    f32 = jnp.float32
    eps = cfg["eps"]
    mdt = cfg["mdt"]

    def mm(a, b):
        # MXU matmul with f32 accumulation (operands optionally bf16).
        return jnp.dot(a.astype(mdt), b.astype(mdt), preferred_element_type=f32)

    def lane_shift(x, off):
        # out[:, m] = x[:, (m + off) % M]; wrapped columns are zeroed by the mask.
        if off == 0:
            return x
        m_len = x.shape[1]
        if m_len % 128 == 0:
            return pltpu.roll(x, shift=(-off) % m_len, axis=1)   # XLU lane rotate
        k = off % m_len                                          # small-width path
        return jnp.concatenate([x[:, k:], x[:, :k]], axis=1)

    def bn_relu(x, v_ref):
        # Training-mode BatchNorm (+ affine) + ReLU: one-pass stats, fused FMA.
        gamma = v_ref[:, 1:2]
        beta = v_ref[:, 2:3]
        mean = jnp.mean(x, axis=1, keepdims=True)
        var = jnp.mean(x * x, axis=1, keepdims=True) - mean * mean
        s = gamma * lax.rsqrt(var + eps)
        return jnp.maximum(x * s + (beta - mean * s), 0.0)

    def conv_s2(x, w_ref, mask_ref, plan):
        """ConvTranspose2d(k=4, s=2, p=1) on the parity-blocked (cin, M) layout.
        Returns (4*cout, M) with rows grouped by output parity g = P*2+Q."""
        masks = mask_ref[...]

        def shift(arr, entries):
            acc = None
            for off, row in entries:
                t = lane_shift(arr, off) * masks[row:row + 1, :]
                acc = t if acc is None else acc + t
            return acc

        r = {0: x, -1: shift(x, plan["y"][-1]), 1: shift(x, plan["y"][1])}
        taps = []
        for dy in (-1, 0, 1):
            for dx in (-1, 0, 1):
                taps.append(r[dy] if dx == 0 else shift(r[dy], plan["x"][dx]))
        rhs = jnp.concatenate(taps, axis=0)            # (9*cin, M)
        return mm(w_ref[...], rhs)                     # ONE fused MXU call

    def deinterleave(y, cout):
        # rows (P, Q, co) -> lane-concat the 4 parity groups.  In the recursive
        # parity-blocked layout this IS the spatial interleave (no perm matmul).
        return jnp.concatenate([y[g * cout:(g + 1) * cout, :] for g in range(4)],
                               axis=1)

    # ---- layer 1: ConvTranspose2d(z, 8f, k=4, s=1, p=0) on the 1x1 latent ------
    x2 = mm(w1_ref[...], xk_ref[...]) + v1_ref[:, 0:1]          # (c1, 16*nb)
    x2 = bn_relu(x2, v1_ref)

    # ---- layer 2: 4x4 -> 8x8 ----------------------------------------------------
    c2 = w2_ref.shape[0] // 4
    x3 = deinterleave(conv_s2(x2, w2_ref, m2_ref, cfg["p2"]), c2) + v2_ref[:, 0:1]
    x3 = bn_relu(x3, v2_ref)

    # ---- layer 3: 8x8 -> 16x16 --------------------------------------------------
    c3 = w3_ref.shape[0] // 4
    x4 = deinterleave(conv_s2(x3, w3_ref, m3_ref, cfg["p3"]), c3) + v3_ref[:, 0:1]
    x4 = bn_relu(x4, v3_ref)

    # ---- layer 4: 16x16 -> 32x32, Tanh, single lane-dense store ------------------
    y4 = conv_s2(x4, w4_ref, m4_ref, cfg["p4"]) + b4_ref[...]
    out_ref[...] = jnp.tanh(y4)                                  # (4*c_img, 256*nb)


# ----------------------------------------------------------------------------
# Forward pass: one pallas_call + tiny input expansion / output gather outside
# ----------------------------------------------------------------------------
def make_generator(params, batch):
    arrays, cfg = prepare_params(params, batch)
    kernel = functools.partial(_generator_kernel, cfg=cfg)
    c_img, m4 = cfg["c_img"], cfg["M4"]

    # TODO(synk): for large batches on v7x add a ("parallel",) grid over batch
    # tiles (BlockSpecs on xk / out) to engage both TensorCores; at nb=2 the
    # kernel is latency-bound and a single invocation is optimal.
    @jax.jit
    def forward(x, a):
        nb, z = x.shape[0], x.shape[1]
        x_t = x.reshape(nb, z).T.astype(jnp.float32)             # (z, nb)
        xk = jnp.kron(jnp.eye(16, dtype=jnp.float32), x_t)       # (16*z, 16*nb)
        out = pl.pallas_call(
            kernel,
            out_shape=jax.ShapeDtypeStruct((4 * c_img, m4), jnp.float32),
        )(xk, a["w1"], a["v1"], a["w2"], a["v2"], a["w3"], a["v3"],
          a["w4"], a["b4"], a["m2"], a["m3"], a["m4"])
        return out[a["ur"], a["uc"]]                             # (nb, c, 32, 32)

    return forward, arrays


# ----------------------------------------------------------------------------
# Pure-JAX reference (for correctness check)
# ----------------------------------------------------------------------------
def _ref_conv_transpose(x_nchw, w, b, stride, pad):
    k = w.shape[2]
    wf = jnp.transpose(jnp.flip(w, axis=(2, 3)), (1, 0, 2, 3))   # (Cout, Cin, k, k)
    out = lax.conv_general_dilated(
        x_nchw, wf, window_strides=(1, 1),
        padding=[(k - 1 - pad, k - 1 - pad)] * 2,
        lhs_dilation=(stride, stride),
        dimension_numbers=("NCHW", "OIHW", "NCHW"))
    return out + b.reshape(1, -1, 1, 1)


def _ref_bn_relu(x, g, be, eps=1e-5):
    mean = x.mean(axis=(0, 2, 3), keepdims=True)
    var = jnp.square(x - mean).mean(axis=(0, 2, 3), keepdims=True)
    y = (x - mean) * lax.rsqrt(var + eps) * g.reshape(1, -1, 1, 1) \
        + be.reshape(1, -1, 1, 1)
    return jnp.maximum(y, 0.0)


def reference_forward(x, p):
    h = _ref_conv_transpose(x, p["w1"], p["b1"], 1, 0)
    h = _ref_bn_relu(h, p["g1"], p["be1"])
    h = _ref_conv_transpose(h, p["w2"], p["b2"], 2, 1)
    h = _ref_bn_relu(h, p["g2"], p["be2"])
    h = _ref_conv_transpose(h, p["w3"], p["b3"], 2, 1)
    h = _ref_bn_relu(h, p["g3"], p["be3"])
    h = _ref_conv_transpose(h, p["w4"], p["b4"], 2, 1)
    return jnp.tanh(h)


# ----------------------------------------------------------------------------
# Deterministic parameter init + driver
# ----------------------------------------------------------------------------
def init_params(key, z_dim, img_channels, f_size):
    c1, c2, c3 = f_size * 8, f_size * 4, f_size * 2
    ks = jax.random.split(key, 16)
    n = lambda k, shape, s=0.05: (s * jax.random.normal(k, shape)).astype(jnp.float32)
    return {
        # ConvTranspose2d weights in PyTorch layout (Cin, Cout, kH, kW)
        "w1": n(ks[0], (z_dim, c1, 4, 4)), "b1": n(ks[1], (c1,), 0.02),
        "w2": n(ks[2], (c1, c2, 4, 4)),    "b2": n(ks[3], (c2,), 0.02),
        "w3": n(ks[4], (c2, c3, 4, 4)),    "b3": n(ks[5], (c3,), 0.02),
        "w4": n(ks[6], (c3, img_channels, 4, 4)), "b4": n(ks[7], (img_channels,), 0.02),
        # BatchNorm affine params
        "g1": 1.0 + n(ks[8], (c1,), 0.1),  "be1": n(ks[9], (c1,), 0.1),
        "g2": 1.0 + n(ks[10], (c2,), 0.1), "be2": n(ks[11], (c2,), 0.1),
        "g3": 1.0 + n(ks[12], (c3,), 0.1), "be3": n(ks[13], (c3,), 0.1),
    }


if __name__ == "__main__":
    z_dim, img_channels, f_size, batch = 32, 3, 8, 2
    key = jax.random.PRNGKey(0)
    kx, kp = jax.random.split(key)
    x = jax.random.normal(kx, (batch, z_dim, 1, 1), dtype=jnp.float32)
    params = init_params(kp, z_dim, img_channels, f_size)

    forward, arrays = make_generator(params, batch)   # one-time packing + jit
    out = jax.block_until_ready(forward(x, arrays))
    assert out.shape == (batch, img_channels, 32, 32), out.shape

    ref = jax.block_until_ready(reference_forward(x, params))
    tol = 1e-4 if _MATMUL_DTYPE == jnp.float32 else 5e-2
    err = float(jnp.max(jnp.abs(out - ref)))
    assert jnp.allclose(out, ref, rtol=tol, atol=tol), err

    print("KERNEL_OK")
</pallas_src>

<mosaic_0001>
module attributes {stable_mosaic.version = 11 : i64} {
  func.func private @main(%arg0: i32) attributes {dimension_semantics = [#tpu.dimension_semantics<core_parallel>], iteration_bounds = array<i64: 2>, tpu.core_type = #tpu.core_type<sc_scalar_subcore>, window_params = []} {
    return
  }
}

module attributes {stable_mosaic.version = 11 : i64} {
  func.func private @main(%arg0: i32) attributes {dimension_semantics = [#tpu.dimension_semantics<core_parallel>], iteration_bounds = array<i64: 2>, tpu.core_type = #tpu.core_type<sc_scalar_subcore>, window_params = []} {
    return
  }
}

module attributes {stable_mosaic.version = 11 : i64} {
  func.func @_generator_kernel(%arg0: memref<512x32xf32, #tpu.memory_space<vmem>>, %arg1: memref<64x512xf32, #tpu.memory_space<vmem>>, %arg2: memref<64x3xf32, #tpu.memory_space<vmem>>, %arg3: memref<128x576xf32, #tpu.memory_space<vmem>>, %arg4: memref<32x3xf32, #tpu.memory_space<vmem>>, %arg5: memref<64x288xf32, #tpu.memory_space<vmem>>, %arg6: memref<16x3xf32, #tpu.memory_space<vmem>>, %arg7: memref<12x144xf32, #tpu.memory_space<vmem>>, %arg8: memref<12x1xf32, #tpu.memory_space<vmem>>, %arg9: memref<4x32xf32, #tpu.memory_space<vmem>>, %arg10: memref<8x128xf32, #tpu.memory_space<vmem>>, %arg11: memref<12x512xf32, #tpu.memory_space<vmem>>, %arg12: memref<12x512xf32, #tpu.memory_space<vmem>>) attributes {dimension_semantics = [], scalar_prefetch = 0 : i64, scratch_operands = 0 : i64, tpu.core_type = #tpu.core_type<tc>} {
    %c0 = arith.constant 0 : index
    %c0_0 = arith.constant 0 : index
    %0 = vector.load %arg1[%c0, %c0_0] : memref<64x512xf32, #tpu.memory_space<vmem>>, vector<64x512xf32>
    %c0_1 = arith.constant 0 : index
    %c0_2 = arith.constant 0 : index
    %1 = vector.load %arg0[%c0_1, %c0_2] : memref<512x32xf32, #tpu.memory_space<vmem>>, vector<512x32xf32>
    %cst = arith.constant dense<0.000000e+00> : vector<64x32xf32>
    %2 = tpu.matmul %0, %1, %cst {dimension_numbers = #tpu.dot_dimension_numbers<[1], [0], [0], [1], [0, 0, 1, 1], [], []>} : vector<64x512xf32>, vector<512x32xf32>, vector<64x32xf32> -> vector<64x32xf32>
    %c0_3 = arith.constant 0 : index
    %c0_4 = arith.constant 0 : index
    %3 = vector.load %arg2[%c0_3, %c0_4] : memref<64x3xf32, #tpu.memory_space<vmem>>, vector<64x1xf32>
    %4 = vector.broadcast %3 : vector<64x1xf32> to vector<64x32xf32>
    %5 = arith.addf %2, %4 : vector<64x32xf32>
    %c0_5 = arith.constant 0 : index
    %c1 = arith.constant 1 : index
    %6 = vector.load %arg2[%c0_5, %c1] : memref<64x3xf32, #tpu.memory_space<vmem>>, vector<64x1xf32>
    %c0_6 = arith.constant 0 : index
    %c2 = arith.constant 2 : index
    %7 = vector.load %arg2[%c0_6, %c2] : memref<64x3xf32, #tpu.memory_space<vmem>>, vector<64x1xf32>
    %cst_7 = arith.constant dense<0.000000e+00> : vector<64xf32>
    %8 = vector.multi_reduction <add>, %5, %cst_7 [1] : vector<64x32xf32> to vector<64xf32>
    %9 = vector.shape_cast %8 : vector<64xf32> to vector<64x1xf32>
    %cst_8 = arith.constant 3.200000e+01 : f32
    %10 = vector.broadcast %cst_8 : f32 to vector<64x1xf32>
    %11 = arith.divf %9, %10 : vector<64x1xf32>
    %12 = arith.mulf %5, %5 : vector<64x32xf32>
    %cst_9 = arith.constant dense<0.000000e+00> : vector<64xf32>
    %13 = vector.multi_reduction <add>, %12, %cst_9 [1] : vector<64x32xf32> to vector<64xf32>
    %14 = vector.shape_cast %13 : vector<64xf32> to vector<64x1xf32>
    %cst_10 = arith.constant 3.200000e+01 : f32
    %15 = vector.broadcast %cst_10 : f32 to vector<64x1xf32>
    %16 = arith.divf %14, %15 : vector<64x1xf32>
    %17 = arith.mulf %11, %11 : vector<64x1xf32>
    %18 = arith.subf %16, %17 : vector<64x1xf32>
    %cst_11 = arith.constant 9.99999974E-6 : f32
    %19 = vector.broadcast %cst_11 : f32 to vector<64x1xf32>
    %20 = arith.addf %18, %19 : vector<64x1xf32>
    %21 = math.rsqrt %20 : vector<64x1xf32>
    %22 = arith.mulf %6, %21 : vector<64x1xf32>
    %23 = vector.broadcast %22 : vector<64x1xf32> to vector<64x32xf32>
    %24 = arith.mulf %5, %23 : vector<64x32xf32>
    %25 = arith.mulf %11, %22 : vector<64x1xf32>
    %26 = arith.subf %7, %25 : vector<64x1xf32>
    %27 = vector.broadcast %26 : vector<64x1xf32> to vector<64x32xf32>
    %28 = arith.addf %24, %27 : vector<64x32xf32>
    %cst_12 = arith.constant 0.000000e+00 : f32
    %29 = vector.broadcast %cst_12 : f32 to vector<64x32xf32>
    %30 = arith.maximumf %28, %29 : vector<64x32xf32>
    %c0_13 = arith.constant 0 : index
    %c0_14 = arith.constant 0 : index
    %31 = vector.load %arg9[%c0_13, %c0_14] : memref<4x32xf32, #tpu.memory_space<vmem>>, vector<4x32xf32>
    %32 = vector.extract_strided_slice %30 {offsets = [0, 24], sizes = [64, 8], strides = [1, 1]} : vector<64x32xf32> to vector<64x8xf32>
    %33 = vector.extract_strided_slice %30 {offsets = [0, 0], sizes = [64, 24], strides = [1, 1]} : vector<64x32xf32> to vector<64x24xf32>
    %34 = tpu.concatenate %32, %33 in 1 : vector<64x8xf32>, vector<64x24xf32> -> vector<64x32xf32>
    %35 = vector.extract_strided_slice %31 {offsets = [0, 0], sizes = [1, 32], strides = [1, 1]} : vector<4x32xf32> to vector<1x32xf32>
    %36 = vector.broadcast %35 : vector<1x32xf32> to vector<64x32xf32>
    %37 = arith.mulf %34, %36 : vector<64x32xf32>
    %38 = vector.extract_strided_slice %30 {offsets = [0, 8], sizes = [64, 24], strides = [1, 1]} : vector<64x32xf32> to vector<64x24xf32>
    %39 = vector.extract_strided_slice %30 {offsets = [0, 0], sizes = [64, 8], strides = [1, 1]} : vector<64x32xf32> to vector<64x8xf32>
    %40 = tpu.concatenate %38, %39 in 1 : vector<64x24xf32>, vector<64x8xf32> -> vector<64x32xf32>
    %41 = vector.extract_strided_slice %31 {offsets = [1, 0], sizes = [1, 32], strides = [1, 1]} : vector<4x32xf32> to vector<1x32xf32>
    %42 = vector.broadcast %41 : vector<1x32xf32> to vector<64x32xf32>
    %43 = arith.mulf %40, %42 : vector<64x32xf32>
    %44 = vector.extract_strided_slice %37 {offsets = [0, 30], sizes = [64, 2], strides = [1, 1]} : vector<64x32xf32> to vector<64x2xf32>
    %45 = vector.extract_strided_slice %37 {offsets = [0, 0], sizes = [64, 30], strides = [1, 1]} : vector<64x32xf32> to vector<64x30xf32>
    %46 = tpu.concatenate %44, %45 in 1 : vector<64x2xf32>, vector<64x30xf32> -> vector<64x32xf32>
    %47 = vector.extract_strided_slice %31 {offsets = [2, 0], sizes = [1, 32], strides = [1, 1]} : vector<4x32xf32> to vector<1x32xf32>
    %48 = vector.broadcast %47 : vector<1x32xf32> to vector<64x32xf32>
    %49 = arith.mulf %46, %48 : vector<64x32xf32>
    %50 = vector.extract_strided_slice %37 {offsets = [0, 2], sizes = [64, 30], strides = [1, 1]} : vector<64x32xf32> to vector<64x30xf32>
    %51 = vector.extract_strided_slice %37 {offsets = [0, 0], sizes = [64, 2], strides = [1, 1]} : vector<64x32xf32> to vector<64x2xf32>
    %52 = tpu.concatenate %50, %51 in 1 : vector<64x30xf32>, vector<64x2xf32> -> vector<64x32xf32>
    %53 = vector.extract_strided_slice %31 {offsets = [3, 0], sizes = [1, 32], strides = [1, 1]} : vector<4x32xf32> to vector<1x32xf32>
    %54 = vector.broadcast %53 : vector<1x32xf32> to vector<64x32xf32>
    %55 = arith.mulf %52, %54 : vector<64x32xf32>
    %56 = vector.extract_strided_slice %30 {offsets = [0, 30], sizes = [64, 2], strides = [1, 1]} : vector<64x32xf32> to vector<64x2xf32>
    %57 = vector.extract_strided_slice %30 {offsets = [0, 0], sizes = [64, 30], strides = [1, 1]} : vector<64x32xf32> to vector<64x30xf32>
    %58 = tpu.concatenate %56, %57 in 1 : vector<64x2xf32>, vector<64x30xf32> -> vector<64x32xf32>
    %59 = vector.extract_strided_slice %31 {offsets = [2, 0], sizes = [1, 32], strides = [1, 1]} : vector<4x32xf32> to vector<1x32xf32>
    %60 = vector.broadcast %59 : vector<1x32xf32> to vector<64x32xf32>
    %61 = arith.mulf %58, %60 : vector<64x32xf32>
    %62 = vector.extract_strided_slice %30 {offsets = [0, 2], sizes = [64, 30], strides = [1, 1]} : vector<64x32xf32> to vector<64x30xf32>
    %63 = vector.extract_strided_slice %30 {offsets = [0, 0], sizes = [64, 2], strides = [1, 1]} : vector<64x32xf32> to vector<64x2xf32>
    %64 = tpu.concatenate %62, %63 in 1 : vector<64x30xf32>, vector<64x2xf32> -> vector<64x32xf32>
    %65 = vector.extract_strided_slice %31 {offsets = [3, 0], sizes = [1, 32], strides = [1, 1]} : vector<4x32xf32> to vector<1x32xf32>
    %66 = vector.broadcast %65 : vector<1x32xf32> to vector<64x32xf32>
    %67 = arith.mulf %64, %66 : vector<64x32xf32>
    %68 = vector.extract_strided_slice %43 {offsets = [0, 30], sizes = [64, 2], strides = [1, 1]} : vector<64x32xf32> to vector<64x2xf32>
    %69 = vector.extract_strided_slice %43 {offsets = [0, 0], sizes = [64, 30], strides = [1, 1]} : vector<64x32xf32> to vector<64x30xf32>
    %70 = tpu.concatenate %68, %69 in 1 : vector<64x2xf32>, vector<64x30xf32> -> vector<64x32xf32>
    %71 = vector.extract_strided_slice %31 {offsets = [2, 0], sizes = [1, 32], strides = [1, 1]} : vector<4x32xf32> to vector<1x32xf32>
    %72 = vector.broadcast %71 : vector<1x32xf32> to vector<64x32xf32>
    %73 = arith.mulf %70, %72 : vector<64x32xf32>
    %74 = vector.extract_strided_slice %43 {offsets = [0, 2], sizes = [64, 30], strides = [1, 1]} : vector<64x32xf32> to vector<64x30xf32>
    %75 = vector.extract_strided_slice %43 {offsets = [0, 0], sizes = [64, 2], strides = [1, 1]} : vector<64x32xf32> to vector<64x2xf32>
    %76 = tpu.concatenate %74, %75 in 1 : vector<64x30xf32>, vector<64x2xf32> -> vector<64x32xf32>
    %77 = vector.extract_strided_slice %31 {offsets = [3, 0], sizes = [1, 32], strides = [1, 1]} : vector<4x32xf32> to vector<1x32xf32>
    %78 = vector.broadcast %77 : vector<1x32xf32> to vector<64x32xf32>
    %79 = arith.mulf %76, %78 : vector<64x32xf32>
    %80 = tpu.concatenate %49, %37, %55, %61, %30, %67, %73, %43, %79 in 0 : vector<64x32xf32>, vector<64x32xf32>, vector<64x32xf32>, vector<64x32xf32>, vector<64x32xf32>, vector<64x32xf32>, vector<64x32xf32>, vector<64x32xf32>, vector<64x32xf32> -> vector<576x32xf32>
    %c0_15 = arith.constant 0 : index
    %c0_16 = arith.constant 0 : index
    %81 = vector.load %arg3[%c0_15, %c0_16] : memref<128x576xf32, #tpu.memory_space<vmem>>, vector<128x576xf32>
    %cst_17 = arith.constant dense<0.000000e+00> : vector<128x32xf32>
    %82 = tpu.matmul %81, %80, %cst_17 {dimension_numbers = #tpu.dot_dimension_numbers<[1], [0], [0], [1], [0, 0, 1, 1], [], []>} : vector<128x576xf32>, vector<576x32xf32>, vector<128x32xf32> -> vector<128x32xf32>
    %83 = vector.extract_strided_slice %82 {offsets = [0, 0], sizes = [32, 32], strides = [1, 1]} : vector<128x32xf32> to vector<32x32xf32>
    %84 = vector.extract_strided_slice %82 {offsets = [32, 0], sizes = [32, 32], strides = [1, 1]} : vector<128x32xf32> to vector<32x32xf32>
    %85 = vector.extract_strided_slice %82 {offsets = [64, 0], sizes = [32, 32], strides = [1, 1]} : vector<128x32xf32> to vector<32x32xf32>
    %86 = vector.extract_strided_slice %82 {offsets = [96, 0], sizes = [32, 32], strides = [1, 1]} : vector<128x32xf32> to vector<32x32xf32>
    %87 = tpu.concatenate %83, %84, %85, %86 in 1 : vector<32x32xf32>, vector<32x32xf32>, vector<32x32xf32>, vector<32x32xf32> -> vector<32x128xf32>
    %c0_18 = arith.constant 0 : index
    %c0_19 = arith.constant 0 : index
    %88 = vector.load %arg4[%c0_18, %c0_19] : memref<32x3xf32, #tpu.memory_space<vmem>>, vector<32x1xf32>
    %89 = vector.broadcast %88 : vector<32x1xf32> to vector<32x128xf32>
    %90 = arith.addf %87, %89 : vector<32x128xf32>
    %c0_20 = arith.constant 0 : index
    %c1_21 = arith.constant 1 : index
    %91 = vector.load %arg4[%c0_20, %c1_21] : memref<32x3xf32, #tpu.memory_space<vmem>>, vector<32x1xf32>
    %c0_22 = arith.constant 0 : index
    %c2_23 = arith.constant 2 : index
    %92 = vector.load %arg4[%c0_22, %c2_23] : memref<32x3xf32, #tpu.memory_space<vmem>>, vector<32x1xf32>
    %cst_24 = arith.constant dense<0.000000e+00> : vector<32xf32>
    %93 = vector.multi_reduction <add>, %90, %cst_24 [1] : vector<32x128xf32> to vector<32xf32>
    %94 = vector.shape_cast %93 : vector<32xf32> to vector<32x1xf32>
    %cst_25 = arith.constant 1.280000e+02 : f32
    %95 = vector.broadcast %cst_25 : f32 to vector<32x1xf32>
    %96 = arith.divf %94, %95 : vector<32x1xf32>
    %97 = arith.mulf %90, %90 : vector<32x128xf32>
    %cst_26 = arith.constant dense<0.000000e+00> : vector<32xf32>
    %98 = vector.multi_reduction <add>, %97, %cst_26 [1] : vector<32x128xf32> to vector<32xf32>
    %99 = vector.shape_cast %98 : vector<32xf32> to vector<32x1xf32>
    %cst_27 = arith.constant 1.280000e+02 : f32
    %100 = vector.broadcast %cst_27 : f32 to vector<32x1xf32>
    %101 = arith.divf %99, %100 : vector<32x1xf32>
    %102 = arith.mulf %96, %96 : vector<32x1xf32>
    %103 = arith.subf %101, %102 : vector<32x1xf32>
    %cst_28 = arith.constant 9.99999974E-6 : f32
    %104 = vector.broadcast %cst_28 : f32 to vector<32x1xf32>
    %105 = arith.addf %103, %104 : vector<32x1xf32>
    %106 = math.rsqrt %105 : vector<32x1xf32>
    %107 = arith.mulf %91, %106 : vector<32x1xf32>
    %108 = vector.broadcast %107 : vector<32x1xf32> to vector<32x128xf32>
    %109 = arith.mulf %90, %108 : vector<32x128xf32>
    %110 = arith.mulf %96, %107 : vector<32x1xf32>
    %111 = arith.subf %92, %110 : vector<32x1xf32>
    %112 = vector.broadcast %111 : vector<32x1xf32> to vector<32x128xf32>
    %113 = arith.addf %109, %112 : vector<32x128xf32>
    %cst_29 = arith.constant 0.000000e+00 : f32
    %114 = vector.broadcast %cst_29 : f32 to vector<32x128xf32>
    %115 = arith.maximumf %113, %114 : vector<32x128xf32>
    %c0_30 = arith.constant 0 : index
    %c0_31 = arith.constant 0 : index
    %116 = vector.load %arg10[%c0_30, %c0_31] : memref<8x128xf32, #tpu.memory_space<vmem>>, vector<8x128xf32>
    %c64_i32 = arith.constant 64 : i32
    %117 = tpu.dynamic_rotate %115 by %c64_i32 dim 1 : vector<32x128xf32>, i32 -> vector<32x128xf32>
    %118 = vector.extract_strided_slice %116 {offsets = [0, 0], sizes = [1, 128], strides = [1, 1]} : vector<8x128xf32> to vector<1x128xf32>
    %119 = vector.broadcast %118 : vector<1x128xf32> to vector<32x128xf32>
    %120 = arith.mulf %117, %119 : vector<32x128xf32>
    %c72_i32 = arith.constant 72 : i32
    %121 = tpu.dynamic_rotate %115 by %c72_i32 dim 1 : vector<32x128xf32>, i32 -> vector<32x128xf32>
    %122 = vector.extract_strided_slice %116 {offsets = [1, 0], sizes = [1, 128], strides = [1, 1]} : vector<8x128xf32> to vector<1x128xf32>
    %123 = vector.broadcast %122 : vector<1x128xf32> to vector<32x128xf32>
    %124 = arith.mulf %121, %123 : vector<32x128xf32>
    %125 = arith.addf %120, %124 : vector<32x128xf32>
    %c56_i32 = arith.constant 56 : i32
    %126 = tpu.dynamic_rotate %115 by %c56_i32 dim 1 : vector<32x128xf32>, i32 -> vector<32x128xf32>
    %127 = vector.extract_strided_slice %116 {offsets = [2, 0], sizes = [1, 128], strides = [1, 1]} : vector<8x128xf32> to vector<1x128xf32>
    %128 = vector.broadcast %127 : vector<1x128xf32> to vector<32x128xf32>
    %129 = arith.mulf %126, %128 : vector<32x128xf32>
    %c64_i32_32 = arith.constant 64 : i32
    %130 = tpu.dynamic_rotate %115 by %c64_i32_32 dim 1 : vector<32x128xf32>, i32 -> vector<32x128xf32>
    %131 = vector.extract_strided_slice %116 {offsets = [3, 0], sizes = [1, 128], strides = [1, 1]} : vector<8x128xf32> to vector<1x128xf32>
    %132 = vector.broadcast %131 : vector<1x128xf32> to vector<32x128xf32>
    %133 = arith.mulf %130, %132 : vector<32x128xf32>
    %134 = arith.addf %129, %133 : vector<32x128xf32>
    %c32_i32 = arith.constant 32 : i32
    %135 = tpu.dynamic_rotate %125 by %c32_i32 dim 1 : vector<32x128xf32>, i32 -> vector<32x128xf32>
    %136 = vector.extract_strided_slice %116 {offsets = [4, 0], sizes = [1, 128], strides = [1, 1]} : vector<8x128xf32> to vector<1x128xf32>
    %137 = vector.broadcast %136 : vector<1x128xf32> to vector<32x128xf32>
    %138 = arith.mulf %135, %137 : vector<32x128xf32>
    %c98_i32 = arith.constant 98 : i32
    %139 = tpu.dynamic_rotate %125 by %c98_i32 dim 1 : vector<32x128xf32>, i32 -> vector<32x128xf32>
    %140 = vector.extract_strided_slice %116 {offsets = [5, 0], sizes = [1, 128], strides = [1, 1]} : vector<8x128xf32> to vector<1x128xf32>
    %141 = vector.broadcast %140 : vector<1x128xf32> to vector<32x128xf32>
    %142 = arith.mulf %139, %141 : vector<32x128xf32>
    %143 = arith.addf %138, %142 : vector<32x128xf32>
    %c30_i32 = arith.constant 30 : i32
    %144 = tpu.dynamic_rotate %125 by %c30_i32 dim 1 : vector<32x128xf32>, i32 -> vector<32x128xf32>
    %145 = vector.extract_strided_slice %116 {offsets = [6, 0], sizes = [1, 128], strides = [1, 1]} : vector<8x128xf32> to vector<1x128xf32>
    %146 = vector.broadcast %145 : vector<1x128xf32> to vector<32x128xf32>
    %147 = arith.mulf %144, %146 : vector<32x128xf32>
    %c96_i32 = arith.constant 96 : i32
    %148 = tpu.dynamic_rotate %125 by %c96_i32 dim 1 : vector<32x128xf32>, i32 -> vector<32x128xf32>
    %149 = vector.extract_strided_slice %116 {offsets = [7, 0], sizes = [1, 128], strides = [1, 1]} : vector<8x128xf32> to vector<1x128xf32>
    %150 = vector.broadcast %149 : vector<1x128xf32> to vector<32x128xf32>
    %151 = arith.mulf %148, %150 : vector<32x128xf32>
    %152 = arith.addf %147, %151 : vector<32x128xf32>
    %c32_i32_33 = arith.constant 32 : i32
    %153 = tpu.dynamic_rotate %115 by %c32_i32_33 dim 1 : vector<32x128xf32>, i32 -> vector<32x128xf32>
    %154 = vector.extract_strided_slice %116 {offsets = [4, 0], sizes = [1, 128], strides = [1, 1]} : vector<8x128xf32> to vector<1x128xf32>
    %155 = vector.broadcast %154 : vector<1x128xf32> to vector<32x128xf32>
    %156 = arith.mulf %153, %155 : vector<32x128xf32>
    %c98_i32_34 = arith.constant 98 : i32
    %157 = tpu.dynamic_rotate %115 by %c98_i32_34 dim 1 : vector<32x128xf32>, i32 -> vector<32x128xf32>
    %158 = vector.extract_strided_slice %116 {offsets = [5, 0], sizes = [1, 128], strides = [1, 1]} : vector<8x128xf32> to vector<1x128xf32>
    %159 = vector.broadcast %158 : vector<1x128xf32> to vector<32x128xf32>
    %160 = arith.mulf %157, %159 : vector<32x128xf32>
    %161 = arith.addf %156, %160 : vector<32x128xf32>
    %c30_i32_35 = arith.constant 30 : i32
    %162 = tpu.dynamic_rotate %115 by %c30_i32_35 dim 1 : vector<32x128xf32>, i32 -> vector<32x128xf32>
    %163 = vector.extract_strided_slice %116 {offsets = [6, 0], sizes = [1, 128], strides = [1, 1]} : vector<8x128xf32> to vector<1x128xf32>
    %164 = vector.broadcast %163 : vector<1x128xf32> to vector<32x128xf32>
    %165 = arith.mulf %162, %164 : vector<32x128xf32>
    %c96_i32_36 = arith.constant 96 : i32
    %166 = tpu.dynamic_rotate %115 by %c96_i32_36 dim 1 : vector<32x128xf32>, i32 -> vector<32x128xf32>
    %167 = vector.extract_strided_slice %116 {offsets = [7, 0], sizes = [1, 128], strides = [1, 1]} : vector<8x128xf32> to vector<1x128xf32>
    %168 = vector.broadcast %167 : vector<1x128xf32> to vector<32x128xf32>
    %169 = arith.mulf %166, %168 : vector<32x128xf32>
    %170 = arith.addf %165, %169 : vector<32x128xf32>
    %c32_i32_37 = arith.constant 32 : i32
    %171 = tpu.dynamic_rotate %134 by %c32_i32_37 dim 1 : vector<32x128xf32>, i32 -> vector<32x128xf32>
    %172 = vector.extract_strided_slice %116 {offsets = [4, 0], sizes = [1, 128], strides = [1, 1]} : vector<8x128xf32> to vector<1x128xf32>
    %173 = vector.broadcast %172 : vector<1x128xf32> to vector<32x128xf32>
    %174 = arith.mulf %171, %173 : vector<32x128xf32>
    %c98_i32_38 = arith.constant 98 : i32
    %175 = tpu.dynamic_rotate %134 by %c98_i32_38 dim 1 : vector<32x128xf32>, i32 -> vector<32x128xf32>
    %176 = vector.extract_strided_slice %116 {offsets = [5, 0], sizes = [1, 128], strides = [1, 1]} : vector<8x128xf32> to vector<1x128xf32>
    %177 = vector.broadcast %176 : vector<1x128xf32> to vector<32x128xf32>
    %178 = arith.mulf %175, %177 : vector<32x128xf32>
    %179 = arith.addf %174, %178 : vector<32x128xf32>
    %c30_i32_39 = arith.constant 30 : i32
    %180 = tpu.dynamic_rotate %134 by %c30_i32_39 dim 1 : vector<32x128xf32>, i32 -> vector<32x128xf32>
    %181 = vector.extract_strided_slice %116 {offsets = [6, 0], sizes = [1, 128], strides = [1, 1]} : vector<8x128xf32> to vector<1x128xf32>
    %182 = vector.broadcast %181 : vector<1x128xf32> to vector<32x128xf32>
    %183 = arith.mulf %180, %182 : vector<32x128xf32>
    %c96_i32_40 = arith.constant 96 : i32
    %184 = tpu.dynamic_rotate %134 by %c96_i32_40 dim 1 : vector<32x128xf32>, i32 -> vector<32x128xf32>
    %185 = vector.extract_strided_slice %116 {offsets = [7, 0], sizes = [1, 128], strides = [1, 1]} : vector<8x128xf32> to vector<1x128xf32>
    %186 = vector.broadcast %185 : vector<1x128xf32> to vector<32x128xf32>
    %187 = arith.mulf %184, %186 : vector<32x128xf32>
    %188 = arith.addf %183, %187 : vector<32x128xf32>
    %189 = tpu.concatenate %143, %125, %152, %161, %115, %170, %179, %134, %188 in 0 : vector<32x128xf32>, vector<32x128xf32>, vector<32x128xf32>, vector<32x128xf32>, vector<32x128xf32>, vector<32x128xf32>, vector<32x128xf32>, vector<32x128xf32>, vector<32x128xf32> -> vector<288x128xf32>
    %c0_41 = arith.constant 0 : index
    %c0_42 = arith.constant 0 : index
    %190 = vector.load %arg5[%c0_41, %c0_42] : memref<64x288xf32, #tpu.memory_space<vmem>>, vector<64x288xf32>
    %cst_43 = arith.constant dense<0.000000e+00> : vector<64x128xf32>
    %191 = tpu.matmul %190, %189, %cst_43 {dimension_numbers = #tpu.dot_dimension_numbers<[1], [0], [0], [1], [0, 0, 1, 1], [], []>} : vector<64x288xf32>, vector<288x128xf32>, vector<64x128xf32> -> vector<64x128xf32>
    %192 = vector.extract_strided_slice %191 {offsets = [0, 0], sizes = [16, 128], strides = [1, 1]} : vector<64x128xf32> to vector<16x128xf32>
    %193 = vector.extract_strided_slice %191 {offsets = [16, 0], sizes = [16, 128], strides = [1, 1]} : vector<64x128xf32> to vector<16x128xf32>
    %194 = vector.extract_strided_slice %191 {offsets = [32, 0], sizes = [16, 128], strides = [1, 1]} : vector<64x128xf32> to vector<16x128xf32>
    %195 = vector.extract_strided_slice %191 {offsets = [48, 0], sizes = [16, 128], strides = [1, 1]} : vector<64x128xf32> to vector<16x128xf32>
    %196 = tpu.concatenate %192, %193, %194, %195 in 1 : vector<16x128xf32>, vector<16x128xf32>, vector<16x128xf32>, vector<16x128xf32> -> vector<16x512xf32>
    %c0_44 = arith.constant 0 : index
    %c0_45 = arith.constant 0 : index
    %197 = vector.load %arg6[%c0_44, %c0_45] : memref<16x3xf32, #tpu.memory_space<vmem>>, vector<16x1xf32>
    %198 = vector.broadcast %197 : vector<16x1xf32> to vector<16x512xf32>
    %199 = arith.addf %196, %198 : vector<16x512xf32>
    %c0_46 = arith.constant 0 : index
    %c1_47 = arith.constant 1 : index
    %200 = vector.load %arg6[%c0_46, %c1_47] : memref<16x3xf32, #tpu.memory_space<vmem>>, vector<16x1xf32>
    %c0_48 = arith.constant 0 : index
    %c2_49 = arith.constant 2 : index
    %201 = vector.load %arg6[%c0_48, %c2_49] : memref<16x3xf32, #tpu.memory_space<vmem>>, vector<16x1xf32>
    %cst_50 = arith.constant dense<0.000000e+00> : vector<16xf32>
    %202 = vector.multi_reduction <add>, %199, %cst_50 [1] : vector<16x512xf32> to vector<16xf32>
    %203 = vector.shape_cast %202 : vector<16xf32> to vector<16x1xf32>
    %cst_51 = arith.constant 5.120000e+02 : f32
    %204 = vector.broadcast %cst_51 : f32 to vector<16x1xf32>
    %205 = arith.divf %203, %204 : vector<16x1xf32>
    %206 = arith.mulf %199, %199 : vector<16x512xf32>
    %cst_52 = arith.constant dense<0.000000e+00> : vector<16xf32>
    %207 = vector.multi_reduction <add>, %206, %cst_52 [1] : vector<16x512xf32> to vector<16xf32>
    %208 = vector.shape_cast %207 : vector<16xf32> to vector<16x1xf32>
    %cst_53 = arith.constant 5.120000e+02 : f32
    %209 = vector.broadcast %cst_53 : f32 to vector<16x1xf32>
    %210 = arith.divf %208, %209 : vector<16x1xf32>
    %211 = arith.mulf %205, %205 : vector<16x1xf32>
    %212 = arith.subf %210, %211 : vector<16x1xf32>
    %cst_54 = arith.constant 9.99999974E-6 : f32
    %213 = vector.broadcast %cst_54 : f32 to vector<16x1xf32>
    %214 = arith.addf %212, %213 : vector<16x1xf32>
    %215 = math.rsqrt %214 : vector<16x1xf32>
    %216 = arith.mulf %200, %215 : vector<16x1xf32>
    %217 = vector.broadcast %216 : vector<16x1xf32> to vector<16x512xf32>
    %218 = arith.mulf %199, %217 : vector<16x512xf32>
    %219 = arith.mulf %205, %216 : vector<16x1xf32>
    %220 = arith.subf %201, %219 : vector<16x1xf32>
    %221 = vector.broadcast %220 : vector<16x1xf32> to vector<16x512xf32>
    %222 = arith.addf %218, %221 : vector<16x512xf32>
    %cst_55 = arith.constant 0.000000e+00 : f32
    %223 = vector.broadcast %cst_55 : f32 to vector<16x512xf32>
    %224 = arith.maximumf %222, %223 : vector<16x512xf32>
    %c0_56 = arith.constant 0 : index
    %c0_57 = arith.constant 0 : index
    %225 = vector.load %arg11[%c0_56, %c0_57] : memref<12x512xf32, #tpu.memory_space<vmem>>, vector<12x512xf32>
    %c256_i32 = arith.constant 256 : i32
    %226 = tpu.dynamic_rotate %224 by %c256_i32 dim 1 : vector<16x512xf32>, i32 -> vector<16x512xf32>
    %227 = vector.extract_strided_slice %225 {offsets = [0, 0], sizes = [1, 512], strides = [1, 1]} : vector<12x512xf32> to vector<1x512xf32>
    %228 = vector.broadcast %227 : vector<1x512xf32> to vector<16x512xf32>
    %229 = arith.mulf %226, %228 : vector<16x512xf32>
    %c320_i32 = arith.constant 320 : i32
    %230 = tpu.dynamic_rotate %224 by %c320_i32 dim 1 : vector<16x512xf32>, i32 -> vector<16x512xf32>
    %231 = vector.extract_strided_slice %225 {offsets = [1, 0], sizes = [1, 512], strides = [1, 1]} : vector<12x512xf32> to vector<1x512xf32>
    %232 = vector.broadcast %231 : vector<1x512xf32> to vector<16x512xf32>
    %233 = arith.mulf %230, %232 : vector<16x512xf32>
    %234 = arith.addf %229, %233 : vector<16x512xf32>
    %c200_i32 = arith.constant 200 : i32
    %235 = tpu.dynamic_rotate %224 by %c200_i32 dim 1 : vector<16x512xf32>, i32 -> vector<16x512xf32>
    %236 = vector.extract_strided_slice %225 {offsets = [2, 0], sizes = [1, 512], strides = [1, 1]} : vector<12x512xf32> to vector<1x512xf32>
    %237 = vector.broadcast %236 : vector<1x512xf32> to vector<16x512xf32>
    %238 = arith.mulf %235, %237 : vector<16x512xf32>
    %239 = arith.addf %234, %238 : vector<16x512xf32>
    %c312_i32 = arith.constant 312 : i32
    %240 = tpu.dynamic_rotate %224 by %c312_i32 dim 1 : vector<16x512xf32>, i32 -> vector<16x512xf32>
    %241 = vector.extract_strided_slice %225 {offsets = [3, 0], sizes = [1, 512], strides = [1, 1]} : vector<12x512xf32> to vector<1x512xf32>
    %242 = vector.broadcast %241 : vector<1x512xf32> to vector<16x512xf32>
    %243 = arith.mulf %240, %242 : vector<16x512xf32>
    %c192_i32 = arith.constant 192 : i32
    %244 = tpu.dynamic_rotate %224 by %c192_i32 dim 1 : vector<16x512xf32>, i32 -> vector<16x512xf32>
    %245 = vector.extract_strided_slice %225 {offsets = [4, 0], sizes = [1, 512], strides = [1, 1]} : vector<12x512xf32> to vector<1x512xf32>
    %246 = vector.broadcast %245 : vector<1x512xf32> to vector<16x512xf32>
    %247 = arith.mulf %244, %246 : vector<16x512xf32>
    %248 = arith.addf %243, %247 : vector<16x512xf32>
    %c256_i32_58 = arith.constant 256 : i32
    %249 = tpu.dynamic_rotate %224 by %c256_i32_58 dim 1 : vector<16x512xf32>, i32 -> vector<16x512xf32>
    %250 = vector.extract_strided_slice %225 {offsets = [5, 0], sizes = [1, 512], strides = [1, 1]} : vector<12x512xf32> to vector<1x512xf32>
    %251 = vector.broadcast %250 : vector<1x512xf32> to vector<16x512xf32>
    %252 = arith.mulf %249, %251 : vector<16x512xf32>
    %253 = arith.addf %248, %252 : vector<16x512xf32>
    %c128_i32 = arith.constant 128 : i32
    %254 = tpu.dynamic_rotate %239 by %c128_i32 dim 1 : vector<16x512xf32>, i32 -> vector<16x512xf32>
    %255 = vector.extract_strided_slice %225 {offsets = [6, 0], sizes = [1, 512], strides = [1, 1]} : vector<12x512xf32> to vector<1x512xf32>
    %256 = vector.broadcast %255 : vector<1x512xf32> to vector<16x512xf32>
    %257 = arith.mulf %254, %256 : vector<16x512xf32>
    %c416_i32 = arith.constant 416 : i32
    %258 = tpu.dynamic_rotate %239 by %c416_i32 dim 1 : vector<16x512xf32>, i32 -> vector<16x512xf32>
    %259 = vector.extract_strided_slice %225 {offsets = [7, 0], sizes = [1, 512], strides = [1, 1]} : vector<12x512xf32> to vector<1x512xf32>
    %260 = vector.broadcast %259 : vector<1x512xf32> to vector<16x512xf32>
    %261 = arith.mulf %258, %260 : vector<16x512xf32>
    %262 = arith.addf %257, %261 : vector<16x512xf32>
    %c354_i32 = arith.constant 354 : i32
    %263 = tpu.dynamic_rotate %239 by %c354_i32 dim 1 : vector<16x512xf32>, i32 -> vector<16x512xf32>
    %264 = vector.extract_strided_slice %225 {offsets = [8, 0], sizes = [1, 512], strides = [1, 1]} : vector<12x512xf32> to vector<1x512xf32>
    %265 = vector.broadcast %264 : vector<1x512xf32> to vector<16x512xf32>
    %266 = arith.mulf %263, %265 : vector<16x512xf32>
    %267 = arith.addf %262, %266 : vector<16x512xf32>
    %c158_i32 = arith.constant 158 : i32
    %268 = tpu.dynamic_rotate %239 by %c158_i32 dim 1 : vector<16x512xf32>, i32 -> vector<16x512xf32>
    %269 = vector.extract_strided_slice %225 {offsets = [9, 0], sizes = [1, 512], strides = [1, 1]} : vector<12x512xf32> to vector<1x512xf32>
    %270 = vector.broadcast %269 : vector<1x512xf32> to vector<16x512xf32>
    %271 = arith.mulf %268, %270 : vector<16x512xf32>
    %c96_i32_59 = arith.constant 96 : i32
    %272 = tpu.dynamic_rotate %239 by %c96_i32_59 dim 1 : vector<16x512xf32>, i32 -> vector<16x512xf32>
    %273 = vector.extract_strided_slice %225 {offsets = [10, 0], sizes = [1, 512], strides = [1, 1]} : vector<12x512xf32> to vector<1x512xf32>
    %274 = vector.broadcast %273 : vector<1x512xf32> to vector<16x512xf32>
    %275 = arith.mulf %272, %274 : vector<16x512xf32>
    %276 = arith.addf %271, %275 : vector<16x512xf32>
    %c384_i32 = arith.constant 384 : i32
    %277 = tpu.dynamic_rotate %239 by %c384_i32 dim 1 : vector<16x512xf32>, i32 -> vector<16x512xf32>
    %278 = vector.extract_strided_slice %225 {offsets = [11, 0], sizes = [1, 512], strides = [1, 1]} : vector<12x512xf32> to vector<1x512xf32>
    %279 = vector.broadcast %278 : vector<1x512xf32> to vector<16x512xf32>
    %280 = arith.mulf %277, %279 : vector<16x512xf32>
    %281 = arith.addf %276, %280 : vector<16x512xf32>
    %c128_i32_60 = arith.constant 128 : i32
    %282 = tpu.dynamic_rotate %224 by %c128_i32_60 dim 1 : vector<16x512xf32>, i32 -> vector<16x512xf32>
    %283 = vector.extract_strided_slice %225 {offsets = [6, 0], sizes = [1, 512], strides = [1, 1]} : vector<12x512xf32> to vector<1x512xf32>
    %284 = vector.broadcast %283 : vector<1x512xf32> to vector<16x512xf32>
    %285 = arith.mulf %282, %284 : vector<16x512xf32>
    %c416_i32_61 = arith.constant 416 : i32
    %286 = tpu.dynamic_rotate %224 by %c416_i32_61 dim 1 : vector<16x512xf32>, i32 -> vector<16x512xf32>
    %287 = vector.extract_strided_slice %225 {offsets = [7, 0], sizes = [1, 512], strides = [1, 1]} : vector<12x512xf32> to vector<1x512xf32>
    %288 = vector.broadcast %287 : vector<1x512xf32> to vector<16x512xf32>
    %289 = arith.mulf %286, %288 : vector<16x512xf32>
    %290 = arith.addf %285, %289 : vector<16x512xf32>
    %c354_i32_62 = arith.constant 354 : i32
    %291 = tpu.dynamic_rotate %224 by %c354_i32_62 dim 1 : vector<16x512xf32>, i32 -> vector<16x512xf32>
    %292 = vector.extract_strided_slice %225 {offsets = [8, 0], sizes = [1, 512], strides = [1, 1]} : vector<12x512xf32> to vector<1x512xf32>
    %293 = vector.broadcast %292 : vector<1x512xf32> to vector<16x512xf32>
    %294 = arith.mulf %291, %293 : vector<16x512xf32>
    %295 = arith.addf %290, %294 : vector<16x512xf32>
    %c158_i32_63 = arith.constant 158 : i32
    %296 = tpu.dynamic_rotate %224 by %c158_i32_63 dim 1 : vector<16x512xf32>, i32 -> vector<16x512xf32>
    %297 = vector.extract_strided_slice %225 {offsets = [9, 0], sizes = [1, 512], strides = [1, 1]} : vector<12x512xf32> to vector<1x512xf32>
    %298 = vector.broadcast %297 : vector<1x512xf32> to vector<16x512xf32>
    %299 = arith.mulf %296, %298 : vector<16x512xf32>
    %c96_i32_64 = arith.constant 96 : i32
    %300 = tpu.dynamic_rotate %224 by %c96_i32_64 dim 1 : vector<16x512xf32>, i32 -> vector<16x512xf32>
    %301 = vector.extract_strided_slice %225 {offsets = [10, 0], sizes = [1, 512], strides = [1, 1]} : vector<12x512xf32> to vector<1x512xf32>
    %302 = vector.broadcast %301 : vector<1x512xf32> to vector<16x512xf32>
    %303 = arith.mulf %300, %302 : vector<16x512xf32>
    %304 = arith.addf %299, %303 : vector<16x512xf32>
    %c384_i32_65 = arith.constant 384 : i32
    %305 = tpu.dynamic_rotate %224 by %c384_i32_65 dim 1 : vector<16x512xf32>, i32 -> vector<16x512xf32>
    %306 = vector.extract_strided_slice %225 {offsets = [11, 0], sizes = [1, 512], strides = [1, 1]} : vector<12x512xf32> to vector<1x512xf32>
    %307 = vector.broadcast %306 : vector<1x512xf32> to vector<16x512xf32>
    %308 = arith.mulf %305, %307 : vector<16x512xf32>
    %309 = arith.addf %304, %308 : vector<16x512xf32>
    %c128_i32_66 = arith.constant 128 : i32
    %310 = tpu.dynamic_rotate %253 by %c128_i32_66 dim 1 : vector<16x512xf32>, i32 -> vector<16x512xf32>
    %311 = vector.extract_strided_slice %225 {offsets = [6, 0], sizes = [1, 512], strides = [1, 1]} : vector<12x512xf32> to vector<1x512xf32>
    %312 = vector.broadcast %311 : vector<1x512xf32> to vector<16x512xf32>
    %313 = arith.mulf %310, %312 : vector<16x512xf32>
    %c416_i32_67 = arith.constant 416 : i32
    %314 = tpu.dynamic_rotate %253 by %c416_i32_67 dim 1 : vector<16x512xf32>, i32 -> vector<16x512xf32>
    %315 = vector.extract_strided_slice %225 {offsets = [7, 0], sizes = [1, 512], strides = [1, 1]} : vector<12x512xf32> to vector<1x512xf32>
    %316 = vector.broadcast %315 : vector<1x512xf32> to vector<16x512xf32>
    %317 = arith.mulf %314, %316 : vector<16x512xf32>
    %318 = arith.addf %313, %317 : vector<16x512xf32>
    %c354_i32_68 = arith.constant 354 : i32
    %319 = tpu.dynamic_rotate %253 by %c354_i32_68 dim 1 : vector<16x512xf32>, i32 -> vector<16x512xf32>
    %320 = vector.extract_strided_slice %225 {offsets = [8, 0], sizes = [1, 512], strides = [1, 1]} : vector<12x512xf32> to vector<1x512xf32>
    %321 = vector.broadcast %320 : vector<1x512xf32> to vector<16x512xf32>
    %322 = arith.mulf %319, %321 : vector<16x512xf32>
    %323 = arith.addf %318, %322 : vector<16x512xf32>
    %c158_i32_69 = arith.constant 158 : i32
    %324 = tpu.dynamic_rotate %253 by %c158_i32_69 dim 1 : vector<16x512xf32>, i32 -> vector<16x512xf32>
    %325 = vector.extract_strided_slice %225 {offsets = [9, 0], sizes = [1, 512], strides = [1, 1]} : vector<12x512xf32> to vector<1x512xf32>
    %326 = vector.broadcast %325 : vector<1x512xf32> to vector<16x512xf32>
    %327 = arith.mulf %324, %326 : vector<16x512xf32>
    %c96_i32_70 = arith.constant 96 : i32
    %328 = tpu.dynamic_rotate %253 by %c96_i32_70 dim 1 : vector<16x512xf32>, i32 -> vector<16x512xf32>
    %329 = vector.extract_strided_slice %225 {offsets = [10, 0], sizes = [1, 512], strides = [1, 1]} : vector<12x512xf32> to vector<1x512xf32>
    %330 = vector.broadcast %329 : vector<1x512xf32> to vector<16x512xf32>
    %331 = arith.mulf %328, %330 : vector<16x512xf32>
    %332 = arith.addf %327, %331 : vector<16x512xf32>
    %c384_i32_71 = arith.constant 384 : i32
    %333 = tpu.dynamic_rotate %253 by %c384_i32_71 dim 1 : vector<16x512xf32>, i32 -> vector<16x512xf32>
    %334 = vector.extract_strided_slice %225 {offsets = [11, 0], sizes = [1, 512], strides = [1, 1]} : vector<12x512xf32> to vector<1x512xf32>
    %335 = vector.broadcast %334 : vector<1x512xf32> to vector<16x512xf32>
    %336 = arith.mulf %333, %335 : vector<16x512xf32>
    %337 = arith.addf %332, %336 : vector<16x512xf32>
    %338 = tpu.concatenate %267, %239, %281, %295, %224, %309, %323, %253, %337 in 0 : vector<16x512xf32>, vector<16x512xf32>, vector<16x512xf32>, vector<16x512xf32>, vector<16x512xf32>, vector<16x512xf32>, vector<16x512xf32>, vector<16x512xf32>, vector<16x512xf32> -> vector<144x512xf32>
    %c0_72 = arith.constant 0 : index
    %c0_73 = arith.constant 0 : index
    %339 = vector.load %arg7[%c0_72, %c0_73] : memref<12x144xf32, #tpu.memory_space<vmem>>, vector<12x144xf32>
    %cst_74 = arith.constant dense<0.000000e+00> : vector<12x512xf32>
    %340 = tpu.matmul %339, %338, %cst_74 {dimension_numbers = #tpu.dot_dimension_numbers<[1], [0], [0], [1], [0, 0, 1, 1], [], []>} : vector<12x144xf32>, vector<144x512xf32>, vector<12x512xf32> -> vector<12x512xf32>
    %c0_75 = arith.constant 0 : index
    %c0_76 = arith.constant 0 : index
    %341 = vector.load %arg8[%c0_75, %c0_76] : memref<12x1xf32, #tpu.memory_space<vmem>>, vector<12x1xf32>
    %342 = vector.broadcast %341 : vector<12x1xf32> to vector<12x512xf32>
    %343 = arith.addf %340, %342 : vector<12x512xf32>
    %344 = math.tanh %343 : vector<12x512xf32>
    %c0_77 = arith.constant 0 : index
    %c0_78 = arith.constant 0 : index
    %345 = vector.load %arg12[%c0_77, %c0_78] : memref<12x512xf32, #tpu.memory_space<vmem>>, vector<12x512xf32>
    tpu.vector_store %arg12[%c0_77, %c0_78], %344 {strides = array<i32>} : memref<12x512xf32, #tpu.memory_space<vmem>>, vector<12x512xf32>,
    return
  }
}

</mosaic_0001>

<bundles_post_ra>
// kernel: forward.1
= control target key start
LH: loop header
LB: loop body
LE: loop exit
PB: predicated region body
PF: predicated region fallthrough
CT: control target
= control target key end

     0   :  { %v7664_v7 = vmov 0   ;;  %s7650_s0 = inlined_call_operand.vmem [shape: f32[512,32], index: 0, kind: input, shape index: {}]   ;;  %s7651_s1 = inlined_call_operand.vmem [shape: f32[64,512], index: 1, kind: input, shape index: {}]   ;;  %s7652_s2 = inlined_call_operand.vmem [shape: f32[64,3], index: 2, kind: input, shape index: {}]   ;;  %s7653_s3 = inlined_call_operand.vmem [shape: f32[128,576], index: 3, kind: input, shape index: {}]   ;;  %s7654_s4 = inlined_call_operand.vmem [shape: f32[32,3], index: 4, kind: input, shape index: {}]   ;;  %s7655_s5 = inlined_call_operand.vmem [shape: f32[64,288], index: 5, kind: input, shape index: {}]   ;;  %s7656_s6 = inlined_call_operand.vmem [shape: f32[16,3], index: 6, kind: input, shape index: {}]   ;;  %s7657_s7 = inlined_call_operand.vmem [shape: f32[12,144], index: 7, kind: input, shape index: {}]   ;;  %s7658_s8 = inlined_call_operand.vmem [shape: f32[12,1], index: 8, kind: input, shape index: {}]   ;;  %s7659_s9 = inlined_call_operand.vmem [shape: f32[4,32], index: 9, kind: input, shape index: {}]   ;;  %s7660_s10 = inlined_call_operand.vmem [shape: f32[8,128], index: 10, kind: input, shape index: {}]   ;;  %s7661_s11 = inlined_call_operand.vmem [shape: f32[12,512], index: 11, kind: input, shape index: {}]   ;;  %s7662_s12 = inlined_call_operand.hbm [shape: f32[12,512], index: 12, kind: output, shape index: {}]  }
   0x1   :  { %v90_v0 = vld [vmem:[%s7650_s0 + $0x80] sm:$0xff]  ;;  %v91_v1 = vld [vmem:[%s7650_s0 + $0x88] sm:$0xff]  ;;  %4448 = vset.pattern.permute.xlu0 %v7664_v7  ;;  %4449 = vset.pattern.permute.xlu1 %v7664_v7  ;;  %v92_v12 = vld [vmem:[%s7650_s0 + $0x90] sm:$0xff] }
   0x2   :  { %v74_v2 = vld [vmem:[%s7650_s0] sm:$0xff]  ;;  %v4173_v3 = vpack.c.bf16 %v91_v1, %v90_v0  ;;  %v75_v4 = vld [vmem:[%s7650_s0 + $0x8] sm:$0xff]  ;;  %v93_v14 = vld [vmem:[%s7650_s0 + $0x98] sm:$0xff] }
   0x3   :  { %v122_v5 = vld [vmem:[%s7650_s0 + $0x180] sm:$0xff]  ;;  %v123_v6 = vld [vmem:[%s7650_s0 + $0x188] sm:$0xff]  ;;  %v4175_v8 = vpack.c.bf16 %v75_v4, %v74_v2  ;;  %v76_v15 = vld [vmem:[%s7650_s0 + $0x10] sm:$0xff]  ;;  %v4177_v17 = vpack.c.bf16 %v93_v14, %v92_v12 }
   0x4   :  { %v4205_v9 = vpack.c.bf16 %v123_v6, %v122_v5  ;;  %v106_v10 = vld [vmem:[%s7650_s0 + $0x100] sm:$0xff]  ;;  %v107_v11 = vld [vmem:[%s7650_s0 + $0x108] sm:$0xff]  ;;  %4174 = vmatprep.subr.bf16.mxu0 %v4173_v3  ;;  %v77_v16 = vld [vmem:[%s7650_s0 + $0x18] sm:$0xff] }
   0x5   :  { %v4207_v13 = vpack.c.bf16 %v107_v11, %v106_v10  ;;  %4176 = vmatpush3.bf16.msra.mxu0 %v4175_v8  ;;  %v4179_v18 = vpack.c.bf16 %v77_v16, %v76_v15  ;;  %v124_v19 = vld [vmem:[%s7650_s0 + $0x190] sm:$0xff]  ;;  %v125_v20 = vld [vmem:[%s7650_s0 + $0x198] sm:$0xff]  ;;  %v94_v24 = vld [vmem:[%s7650_s0 + $0xa0] sm:$0xff] }
   0x6   :  { %4206 = vmatprep.subr.bf16.mxu1 %v4205_v9  ;;  %v108_v21 = vld [vmem:[%s7650_s0 + $0x110] sm:$0xff]  ;;  %v4209_v22 = vpack.c.bf16 %v125_v20, %v124_v19  ;;  %v109_v23 = vld [vmem:[%s7650_s0 + $0x118] sm:$0xff]  ;;  %v95_v25 = vld [vmem:[%s7650_s0 + $0xa8] sm:$0xff]  ;;  %4178 = vmatprep.subr.bf16.mxu0 %v4177_v17 }
   0x7   :  { %4208 = vmatpush3.bf16.msra.mxu1 %v4207_v13  ;;  %v4211_v26 = vpack.c.bf16 %v109_v23, %v108_v21  ;;  %v4181_v27 = vpack.c.bf16 %v95_v25, %v94_v24  ;;  %v78_v28 = vld [vmem:[%s7650_s0 + $0x20] sm:$0xff]  ;;  %v79_v29 = vld [vmem:[%s7650_s0 + $0x28] sm:$0xff]  ;;  %v96_v36 = vld [vmem:[%s7650_s0 + $0xb0] sm:$0xff] }
   0x8   :  { %v126_v30 = vld [vmem:[%s7650_s0 + $0x1a0] sm:$0xff]  ;;  %4210 = vmatprep.subr.bf16.mxu1 %v4209_v22  ;;  %v127_v31 = vld [vmem:[%s7650_s0 + $0x1a8] sm:$0xff]  ;;  %v4183_v34 = vpack.c.bf16 %v79_v29, %v78_v28  ;;  %v97_v37 = vld [vmem:[%s7650_s0 + $0xb8] sm:$0xff] }
   0x9   :  { %v110_v32 = vld [vmem:[%s7650_s0 + $0x120] sm:$0xff]  ;;  %v111_v33 = vld [vmem:[%s7650_s0 + $0x128] sm:$0xff]  ;;  %4180 = vmatpush3.bf16.msra.mxu0 %v4179_v18  ;;  %v4213_v35 = vpack.c.bf16 %v127_v31, %v126_v30  ;;  %v80_v38 = vld [vmem:[%s7650_s0 + $0x30] sm:$0xff]  ;;  %v4185_v40 = vpack.c.bf16 %v97_v37, %v96_v36 }
   0xa   :  { %4182 = vmatprep.subr.bf16.mxu0 %v4181_v27  ;;  %v4215_v39 = vpack.c.bf16 %v111_v33, %v110_v32  ;;  %v81_v41 = vld [vmem:[%s7650_s0 + $0x38] sm:$0xff]  ;;  %v128_v42 = vld [vmem:[%s7650_s0 + $0x1b0] sm:$0xff]  ;;  %v98_v47 = vld [vmem:[%s7650_s0 + $0xc0] sm:$0xff] }
   0xb   :  { %4212 = vmatpush3.bf16.msra.mxu1 %v4211_v26  ;;  %v129_v43 = vld [vmem:[%s7650_s0 + $0x1b8] sm:$0xff]  ;;  %v112_v45 = vld [vmem:[%s7650_s0 + $0x130] sm:$0xff]  ;;  %v99_v48 = vld [vmem:[%s7650_s0 + $0xc8] sm:$0xff]  ;;  %v4187_v49 = vpack.c.bf16 %v81_v41, %v80_v38 }
   0xc   :  { %4214 = vmatprep.subr.bf16.mxu1 %v4213_v35  ;;  %v4217_v44 = vpack.c.bf16 %v129_v43, %v128_v42  ;;  %v113_v46 = vld [vmem:[%s7650_s0 + $0x138] sm:$0xff]  ;;  %v130_v50 = vld [vmem:[%s7650_s0 + $0x1c0] sm:$0xff]  ;;  %v131_v51 = vld [vmem:[%s7650_s0 + $0x1c8] sm:$0xff]  ;;  %v4189_v53 = vpack.c.bf16 %v99_v48, %v98_v47 }
   0xd   :  { %4184 = vmatpush3.bf16.msra.mxu0 %v4183_v34  ;;  %v4219_v52 = vpack.c.bf16 %v113_v46, %v112_v45  ;;  %v82_v54 = vld [vmem:[%s7650_s0 + $0x40] sm:$0xff]  ;;  %v83_v55 = vld [vmem:[%s7650_s0 + $0x48] sm:$0xff]  ;;  %v4221_v57 = vpack.c.bf16 %v131_v51, %v130_v50  ;;  %v100_v59 = vld [vmem:[%s7650_s0 + $0xd0] sm:$0xff] }
   0xe   :  { %4186 = vmatprep.subr.bf16.mxu0 %v4185_v40  ;;  %v114_v56 = vld [vmem:[%s7650_s0 + $0x140] sm:$0xff]  ;;  %v115_v58 = vld [vmem:[%s7650_s0 + $0x148] sm:$0xff]  ;;  %v101_v60 = vld [vmem:[%s7650_s0 + $0xd8] sm:$0xff]  ;;  %v4191_v63 = vpack.c.bf16 %v83_v55, %v82_v54 }
   0xf   :  { %4216 = vmatpush3.bf16.msra.mxu1 %v4215_v39  ;;  %v132_v61 = vld [vmem:[%s7650_s0 + $0x1d0] sm:$0xff]  ;;  %v133_v62 = vld [vmem:[%s7650_s0 + $0x1d8] sm:$0xff]  ;;  %v4223_v0 = vpack.c.bf16 %v115_v58, %v114_v56  ;;  %v4193_v1 = vpack.c.bf16 %v101_v60, %v100_v59  ;;  %v102_v8 = vld [vmem:[%s7650_s0 + $0xe0] sm:$0xff] }
  0x10   :  { %4218 = vmatprep.subr.bf16.mxu1 %v4217_v44  ;;  %v84_v2 = vld [vmem:[%s7650_s0 + $0x50] sm:$0xff]  ;;  %v85_v3 = vld [vmem:[%s7650_s0 + $0x58] sm:$0xff]  ;;  %v4225_v5 = vpack.c.bf16 %v133_v62, %v132_v61  ;;  %v103_v9 = vld [vmem:[%s7650_s0 + $0xe8] sm:$0xff] }
  0x11   :  { %4188 = vmatpush3.bf16.msra.mxu0 %v4187_v49  ;;  %v116_v4 = vld [vmem:[%s7650_s0 + $0x150] sm:$0xff]  ;;  %v117_v6 = vld [vmem:[%s7650_s0 + $0x158] sm:$0xff]  ;;  %v134_v10 = vld [vmem:[%s7650_s0 + $0x1e0] sm:$0xff]  ;;  %v4195_v12 = vpack.c.bf16 %v85_v3, %v84_v2  ;;  %v4197_v16 = vpack.c.bf16 %v103_v9, %v102_v8 }
  0x12   :  { %4190 = vmatprep.subr.bf16.mxu0 %v4189_v53  ;;  %v135_v11 = vld [vmem:[%s7650_s0 + $0x1e8] sm:$0xff]  ;;  %v86_v13 = vld [vmem:[%s7650_s0 + $0x60] sm:$0xff]  ;;  %v4227_v15 = vpack.c.bf16 %v117_v6, %v116_v4  ;;  %v104_v21 = vld [vmem:[%s7650_s0 + $0xf0] sm:$0xff] }
  0x13   :  { %4220 = vmatpush3.bf16.msra.mxu1 %v4219_v52  ;;  %v87_v14 = vld [vmem:[%s7650_s0 + $0x68] sm:$0xff]  ;;  %v118_v17 = vld [vmem:[%s7650_s0 + $0x160] sm:$0xff]  ;;  %v4229_v20 = vpack.c.bf16 %v135_v11, %v134_v10  ;;  %v105_v22 = vld [vmem:[%s7650_s0 + $0xf8] sm:$0xff] }
  0x14   :  { %4222 = vmatprep.subr.bf16.mxu1 %v4221_v57  ;;  %v119_v18 = vld [vmem:[%s7650_s0 + $0x168] sm:$0xff]  ;;  %v45_v23 = vld [vmem:[%s7651_s1 + $0x18] sm:$0xff]  ;;  %v136_v24 = vld [vmem:[%s7650_s0 + $0x1f0] sm:$0xff]  ;;  %v4199_v26 = vpack.c.bf16 %v87_v14, %v86_v13  ;;  %v4201_v28 = vpack.c.bf16 %v105_v22, %v104_v21 }
  0x15   :  { %4192 = vmatpush3.bf16.msra.mxu0 %v4191_v63  ;;  %v43_v19 = vld [vmem:[%s7651_s1 + $0x8] sm:$0xff]  ;;  %v137_v25 = vld [vmem:[%s7650_s0 + $0x1f8] sm:$0xff]  ;;  %355 = vmatprep.mubr.f32.mxu1 %v45_v23  ;;  %v4231_v27 = vpack.c.bf16 %v119_v18, %v118_v17  ;;  %v88_v29 = vld [vmem:[%s7650_s0 + $0x70] sm:$0xff] }
  0x16   :  { %4194 = vmatprep.subr.bf16.mxu0 %v4193_v1  ;;  %250 = vmatprep.mubr.f32.mxu0 %v43_v19  ;;  %v89_v30 = vld [vmem:[%s7650_s0 + $0x78] sm:$0xff]  ;;  %v4233_v31 = vpack.c.bf16 %v137_v25, %v136_v24  ;;  %v120_v32 = vld [vmem:[%s7650_s0 + $0x170] sm:$0xff]  ;;  %v42_v36 = vld [vmem:[%s7651_s1] sm:$0xff] }
  0x17   :  { %4224 = vmatpush3.bf16.msra.mxu1 %v4223_v0  ;;  %v121_v33 = vld [vmem:[%s7650_s0 + $0x178] sm:$0xff]  ;;  %v4203_v34 = vpack.c.bf16 %v89_v30, %v88_v29  ;;  %v4825_v37 = vld [vmem:[%s7652_s2] sm:$0xff]  ;;  %v44_v38 = vld [vmem:[%s7651_s1 + $0x10] sm:$0xff] }
  0x18   :  { %4226 = vmatprep.subr.bf16.mxu1 %v4225_v5  ;;  %v4235_v35 = vpack.c.bf16 %v121_v33, %v120_v32  ;;  %v47_v39 = vld [vmem:[%s7651_s1 + $0x28] sm:$0xff]  ;;  %148 = vperm.xlu0 %4448, %v4825_v37   ;;  %v4837_v40 = vld [vmem:[%s7652_s2 + $0x10] sm:$0xff]  ;;  %v49_v41 = vld [vmem:[%s7651_s1 + $0x38] sm:$0xff] }
  0x19   :  { %4196 = vmatpush3.bf16.msra.mxu0 %v4195_v12  ;;  %v4845_v42 = vld [vmem:[%s7652_s2 + $0x8] sm:$0xff]  ;;  %158 = vperm.xlu1 %4449, %v4837_v40  }
  0x1a   :  { %4198 = vmatprep.subr.bf16.mxu0 %v4197_v16 }
  0x1b   :  { %4228 = vmatpush3.bf16.msra.mxu1 %v4227_v15 }
  0x1c   :  { %4230 = vmatprep.subr.bf16.mxu1 %v4229_v20 }
  0x1d   :  { %4200 = vmatpush3.bf16.msra.mxu0 %v4199_v26 }
  0x1e   :  { %4202 = vmatprep.subr.bf16.mxu0 %v4201_v28 }
  0x1f   :  { %4232 = vmatpush3.bf16.msra.mxu1 %v4231_v27 }
  0x20   :  { %4234 = vmatprep.subr.bf16.mxu1 %v4233_v31 }
  0x21   :  { %4204 = vmatpush3.bf16.msra.mxu0 %v4203_v34 }
  0x23   :  { %4236 = vmatpush3.bf16.msra.mxu1 %v4235_v35 }
  0x24   :  { %17 = vsyncpa [#allocation3], 0  ;;  %251 = vmatmul.mubr.f32.vlgmr.msra.gmra.mrb[0].mxu0 %v42_v36  ;;  %v4851_v43 = vld [vmem:[%s7652_s2 + $0x18] sm:$0xff]  ;;  %v46_v44 = vld [vmem:[%s7651_s1 + $0x20] sm:$0xff]  ;;  %153 = vperm.xlu0 %4448, %v4845_v42   ;;  %vm396_vm0 = vcmask 261120   ;;  %s4539_s25 = smov 104  }
  0x25   :  { %255 = vmatprep.mubr.f32.mxu0 %v47_v39  ;;  %v48_v45 = vld [vmem:[%s7651_s1 + $0x30] sm:$0xff]  ;;  %v51_v46 = vld [vmem:[%s7651_s1 + $0x48] sm:$0xff]  ;;  %v53_v47 = vld [vmem:[%s7651_s1 + $0x58] sm:$0xff]  ;;  %163 = vperm.xlu1 %4449, %v4851_v43   ;;  %s4540_s26 = smov 8   ;;  %s4541_s27 = smov 120   ;;  %vm719_vm1 = vcmask 64512  }
  0x26   :  { %356 = vmatmul.mubr.f32.vlgmr.msra.gmra.mrb[0].mxu1 %v44_v38  ;;  %v4869_v48 = vld [vmem:[%s7652_s2 + $0x20] sm:$0xff]  ;;  %v4875_v49 = vld [vmem:[%s7652_s2 + $0x28] sm:$0xff]  ;;  %v52_v51 = vld [vmem:[%s7651_s1 + $0x50] sm:$0xff]  ;;  %s4542_s28 = smov 24   ;;  %s4543_s29 = smov 98   ;;  %vm788_vm2 = vcmask 195584  }
  0x27   :  { %360 = vmatprep.mubr.f32.mxu1 %v49_v41  ;;  %v50_v50 = vld [vmem:[%s7651_s1 + $0x40] sm:$0xff]  ;;  %v55_v52 = vld [vmem:[%s7651_s1 + $0x68] sm:$0xff]  ;;  %v57_v53 = vld [vmem:[%s7651_s1 + $0x78] sm:$0xff]  ;;  %s4544_s30 = smov 2   ;;  %s4545_s0 = smov 126   ;;  %vm934_vm3 = vcmask 244736  }
  0x28   :  { %256 = vmatmul.mubr.f32.gmra.mrb[2].mxu0 %v46_v44  ;;  %168 = vperm.xlu0 %4448, %v4869_v48   ;;  %v4893_v54 = vld [vmem:[%s7652_s2 + $0x30] sm:$0xff]  ;;  %v4899_v55 = vld [vmem:[%s7652_s2 + $0x38] sm:$0xff]  ;;  %v54_v56 = vld [vmem:[%s7651_s1 + $0x60] sm:$0xff]  ;;  %s4546_s15 = smov 30   ;;  %vm865_vm4 = vcmask 15360   ;;  %vm1299_vm5 = vcmask 523264  }
  0x29   :  { %260 = vmatprep.mubr.f32.mxu0 %v51_v46  ;;  %173 = vperm.xlu1 %4449, %v4875_v49   ;;  %v56_v57 = vld [vmem:[%s7651_s1 + $0x70] sm:$0xff]  ;;  %v59_v58 = vld [vmem:[%s7651_s1 + $0x88] sm:$0xff]  ;;  %v61_v59 = vld [vmem:[%s7651_s1 + $0x98] sm:$0xff]  ;;  %s4549_s13 = smov 96   ;;  %vm1839_vm6 = vcmask 785408   ;;  %s4550_s14 = smov 72  }
  0x2a   :  { %361 = vmatmul.mubr.f32.gmra.mrb[2].mxu1 %v48_v45  ;;  %v58_v60 = vld [vmem:[%s7651_s1 + $0x80] sm:$0xff]  ;;  %v60_v61 = vld [vmem:[%s7651_s1 + $0x90] sm:$0xff]  ;;  %v63_v62 = vld [vmem:[%s7651_s1 + $0xa8] sm:$0xff]  ;;  %vm3528_vm14 = vcmask 130048  }
  0x2b   :  { %365 = vmatprep.mubr.f32.mxu1 %v53_v47  ;;  %v65_v63 = vld [vmem:[%s7651_s1 + $0xb8] sm:$0xff]  ;;  %v62_v0 = vld [vmem:[%s7651_s1 + $0xa0] sm:$0xff]  ;;  %v64_v1 = vld [vmem:[%s7651_s1 + $0xb0] sm:$0xff] }
  0x2c   :  { %261 = vmatmul.mubr.f32.gmra.mrb[4].mxu0 %v50_v50  ;;  %178 = vperm.xlu0 %4448, %v4893_v54   ;;  %v67_v2 = vld [vmem:[%s7651_s1 + $0xc8] sm:$0xff]  ;;  %v69_v3 = vld [vmem:[%s7651_s1 + $0xd8] sm:$0xff]  ;;  %v66_v4 = vld [vmem:[%s7651_s1 + $0xc0] sm:$0xff] }
  0x2d   :  { %265 = vmatprep.mubr.f32.mxu0 %v55_v52  ;;  %183 = vperm.xlu1 %4449, %v4899_v55   ;;  %v68_v5 = vld [vmem:[%s7651_s1 + $0xd0] sm:$0xff]  ;;  %v71_v6 = vld [vmem:[%s7651_s1 + $0xe8] sm:$0xff]  ;;  %v73_v8 = vld [vmem:[%s7651_s1 + $0xf8] sm:$0xff] }
  0x2e   :  { %366 = vmatmul.mubr.f32.gmra.mrb[4].mxu1 %v52_v51  ;;  %v70_v9 = vld [vmem:[%s7651_s1 + $0xe0] sm:$0xff]  ;;  %v72_v10 = vld [vmem:[%s7651_s1 + $0xf0] sm:$0xff]  ;;  %s4537_s1 = smov 1  }
  0x2f   :  { %370 = vmatprep.mubr.f32.mxu1 %v57_v53 }
  0x30   :  { %266 = vmatmul.mubr.f32.gmra.mrb[6].mxu0 %v54_v56 }
  0x31   :  { %270 = vmatprep.mubr.f32.mxu0 %v59_v58 }
  0x32   :  { %371 = vmatmul.mubr.f32.gmra.mrb[6].mxu1 %v56_v57 }
  0x33   :  { %375 = vmatprep.mubr.f32.mxu1 %v61_v59 }
  0x34   :  { %271 = vmatmul.mubr.f32.gmra.mrb[8].mxu0 %v58_v60 }
  0x35   :  { %275 = vmatprep.mubr.f32.mxu0 %v63_v62 }
  0x36   :  { %376 = vmatmul.mubr.f32.gmra.mrb[8].mxu1 %v60_v61 }
  0x37   :  { %380 = vmatprep.mubr.f32.mxu1 %v65_v63 }
  0x38   :  { %276 = vmatmul.mubr.f32.gmra.mrb[10].mxu0 %v62_v0 }
  0x39   :  { %280 = vmatprep.mubr.f32.mxu0 %v67_v2 }
  0x3a   :  { %381 = vmatmul.mubr.f32.gmra.mrb[10].mxu1 %v64_v1 }
  0x3b   :  { %385 = vmatprep.mubr.f32.mxu1 %v69_v3 }
  0x3c   :  { %281 = vmatmul.mubr.f32.gmra.mrb[12].mxu0 %v66_v4 }
  0x3d   :  { %285 = vmatprep.mubr.f32.mxu0 %v71_v6 }
  0x3e   :  { %386 = vmatmul.mubr.f32.gmra.mrb[12].mxu1 %v68_v5 }
  0x3f   :  { %390 = vmatprep.mubr.f32.mxu1 %v73_v8 }
  0x40   :  { %286 = vmatmul.mubr.f32.gmra.mrb[14].mxu0 %v70_v9 }
  0x42   :  { %391 = vmatmul.mubr.f32.gmra.mrb[14].mxu1 %v72_v10 }
  0x97   :  { %v149_v11 = vpop.permute.xlu0 %148 }
  0x98   :  { %v159_v28 = vpop.permute.xlu1 %158 }
  0xa3   :  { %v154_v25 = vpop.permute.xlu0 %153 }
  0xa4   :  { %v164_v56 = vpop.permute.xlu1 %163 }
  0xa7   :  { %v169_v5 = vpop.permute.xlu0 %168 }
  0xf7   :  { %v3781_v12 = vpop.f32.mrb[0].mxu0 }
  0xf8   :  { %v3782_v13 = vpop.f32.mrb[1].mxu0 }
  0xf9   :  { %v3837_v14 = vpop.f32.mrb[0].mxu1  ;;  %v3783_v15 = vadd.f32 %v3782_v13, %v3781_v12 }
  0xfa   :  { %v3838_v16 = vpop.f32.mrb[1].mxu1 }
  0xfb   :  { %v3839_v17 = vadd.f32 %v3838_v16, %v3837_v14  ;;  %v253_v18 = vadd.f32 %v3783_v15, %v149_v11  ;;  %v3784_v19 = vpop.f32.mrb[2].mxu0 }
  0xfc   :  { %v3785_v20 = vpop.f32.mrb[3].mxu0 }
  0xfd   :  { %v3840_v21 = vpop.f32.mrb[2].mxu1  ;;  %v4957_v22 = vadd.f32 %v3839_v17, %v253_v18  ;;  %v3786_v23 = vadd.f32 %v3785_v20, %v3784_v19  ;;  %v174_v18 = vpop.permute.xlu1 %173 }
  0xfe   :  { %v3841_v24 = vpop.f32.mrb[3].mxu1 }
  0xff   :  { %v3842_v26 = vadd.f32 %v3841_v24, %v3840_v21  ;;  %v258_v27 = vadd.f32 %v3786_v23, %v154_v25  ;;  %v3787_v29 = vpop.f32.mrb[4].mxu0  ;;  %v397_v30 = vsel %vm396_vm0, %v4957_v22, 0.0  ;;  %v430_v31 = vmul.f32 %v4957_v22, %v4957_v22 }
 0x100   :  { %v3788_v32 = vpop.f32.mrb[5].mxu0  ;;  %398 = vadd.xlane.f32.xlu0 %v397_v30  ;;  %v179_v30 = vpop.permute.xlu0 %178 }
 0x101   :  { %v3843_v33 = vpop.f32.mrb[4].mxu1  ;;  %v4963_v34 = vadd.f32 %v3842_v26, %v258_v27  ;;  %v3789_v35 = vadd.f32 %v3788_v32, %v3787_v29  ;;  %v438_v45 = vsel %vm396_vm0, %v430_v31, 0.0 }
 0x102   :  { %v3844_v36 = vpop.f32.mrb[5].mxu1 }
 0x103   :  { %v3845_v38 = vadd.f32 %v3844_v36, %v3843_v33  ;;  %v263_v39 = vadd.f32 %v3789_v35, %v159_v28  ;;  %v3790_v41 = vpop.f32.mrb[6].mxu0  ;;  %v400_v44 = vsel %vm396_vm0, %v4963_v34, 0.0  ;;  %v431_v46 = vmul.f32 %v4963_v34, %v4963_v34 }
 0x104   :  { %v3791_v47 = vpop.f32.mrb[7].mxu0  ;;  %401 = vadd.xlane.f32.xlu1 %v400_v44  ;;  %439 = vadd.xlane.f32.xlu0 %v438_v45 }
 0x105   :  { %v3846_v50 = vpop.f32.mrb[6].mxu1  ;;  %v4970_v51 = vadd.f32 %v3845_v38, %v263_v39  ;;  %v3792_v52 = vadd.f32 %v3791_v47, %v3790_v41  ;;  %v441_v61 = vsel %vm396_vm0, %v431_v46, 0.0  ;;  %v184_v47 = vpop.permute.xlu1 %183 }
 0x106   :  { %v3847_v53 = vpop.f32.mrb[7].mxu1 }
 0x107   :  { %v3848_v57 = vadd.f32 %v3847_v53, %v3846_v50  ;;  %v268_v58 = vadd.f32 %v3792_v52, %v164_v56  ;;  %v3793_v59 = vpop.f32.mrb[8].mxu0  ;;  %v403_v60 = vsel %vm396_vm0, %v4970_v51, 0.0  ;;  %v432_v62 = vmul.f32 %v4970_v51, %v4970_v51 }
 0x108   :  { %v3794_v63 = vpop.f32.mrb[9].mxu0  ;;  %404 = vadd.xlane.f32.xlu1 %v403_v60  ;;  %442 = vadd.xlane.f32.xlu0 %v441_v61 }
 0x109   :  { %v3849_v0 = vpop.f32.mrb[8].mxu1  ;;  %v4977_v1 = vadd.f32 %v3848_v57, %v268_v58  ;;  %v3795_v2 = vadd.f32 %v3794_v63, %v3793_v59  ;;  %v444_v4 = vsel %vm396_vm0, %v432_v62, 0.0  ;;  %v7668_v63 = vmov 1  }
 0x10a   :  { %v3850_v3 = vpop.f32.mrb[9].mxu1  ;;  %4450 = vset.pattern.permute.xlu0 %v7668_v63  ;;  %4451 = vset.pattern.permute.xlu1 %v7668_v63 }
 0x10b   :  { %v3851_v6 = vadd.f32 %v3850_v3, %v3849_v0  ;;  %v273_v8 = vadd.f32 %v3795_v2, %v169_v5  ;;  %v3796_v9 = vpop.f32.mrb[10].mxu0  ;;  %v406_v10 = vsel %vm396_vm0, %v4977_v1, 0.0  ;;  %v433_v11 = vmul.f32 %v4977_v1, %v4977_v1 }
 0x10c   :  { %v3797_v12 = vpop.f32.mrb[11].mxu0  ;;  %445 = vadd.xlane.f32.xlu1 %v444_v4  ;;  %407 = vadd.xlane.f32.xlu0 %v406_v10 }
 0x10d   :  { %v3852_v13 = vpop.f32.mrb[10].mxu1  ;;  %v4984_v14 = vadd.f32 %v3851_v6, %v273_v8  ;;  %v3798_v15 = vadd.f32 %v3797_v12, %v3796_v9  ;;  %v447_v17 = vsel %vm396_vm0, %v433_v11, 0.0 }
 0x10e   :  { %v3853_v16 = vpop.f32.mrb[11].mxu1 }
 0x10f   :  { %v3854_v19 = vadd.f32 %v3853_v16, %v3852_v13  ;;  %v278_v20 = vadd.f32 %v3798_v15, %v174_v18  ;;  %v3799_v21 = vpop.f32.mrb[12].mxu0  ;;  %v409_v23 = vsel %vm396_vm0, %v4984_v14, 0.0  ;;  %v434_v24 = vmul.f32 %v4984_v14, %v4984_v14 }
 0x110   :  { %v3800_v25 = vpop.f32.mrb[13].mxu0  ;;  %410 = vadd.xlane.f32.xlu1 %v409_v23  ;;  %448 = vadd.xlane.f32.xlu0 %v447_v17 }
 0x111   :  { %v3855_v26 = vpop.f32.mrb[12].mxu1  ;;  %v4991_v27 = vadd.f32 %v3854_v19, %v278_v20  ;;  %v3801_v28 = vadd.f32 %v3800_v25, %v3799_v21  ;;  %v450_v35 = vsel %vm396_vm0, %v434_v24, 0.0 }
 0x112   :  { %v3856_v29 = vpop.f32.mrb[13].mxu1 }
 0x113   :  { %v3857_v31 = vadd.f32 %v3856_v29, %v3855_v26  ;;  %v283_v32 = vadd.f32 %v3801_v28, %v179_v30  ;;  %v3802_v33 = vpop.f32.mrb[14].mxu0  ;;  %v412_v36 = vsel %vm396_vm0, %v4991_v27, 0.0  ;;  %v435_v38 = vmul.f32 %v4991_v27, %v4991_v27 }
 0x114   :  { %v3803_v39 = vpop.f32.mrb[15].mxu0  ;;  %451 = vadd.xlane.f32.xlu1 %v450_v35  ;;  %413 = vadd.xlane.f32.xlu0 %v412_v36 }
 0x115   :  { %v3858_v41 = vpop.f32.mrb[14].mxu1  ;;  %v4998_v44 = vadd.f32 %v3857_v31, %v283_v32  ;;  %v3804_v45 = vadd.f32 %v3803_v39, %v3802_v33  ;;  %v453_v56 = vsel %vm396_vm0, %v435_v38, 0.0 }
 0x116   :  { %v3859_v46 = vpop.f32.mrb[15].mxu1 }
 0x117   :  { %v3860_v50 = vadd.f32 %v3859_v46, %v3858_v41  ;;  %v288_v52 = vadd.f32 %v3804_v45, %v184_v47  ;;  %v415_v53 = vsel %vm396_vm0, %v4998_v44, 0.0  ;;  %v436_v57 = vmul.f32 %v4998_v44, %v4998_v44 }
 0x118   :  { %416 = vadd.xlane.f32.xlu1 %v415_v53  ;;  %454 = vadd.xlane.f32.xlu0 %v453_v56 }
 0x119   :  { %v5005_v58 = vadd.f32 %v3860_v50, %v288_v52  ;;  %v456_v59 = vsel %vm396_vm0, %v436_v57, 0.0 }
 0x11b   :  { %v418_v60 = vsel %vm396_vm0, %v5005_v58, 0.0  ;;  %v437_v61 = vmul.f32 %v5005_v58, %v5005_v58 }
 0x11c   :  { %457 = vadd.xlane.f32.xlu1 %v456_v59  ;;  %419 = vadd.xlane.f32.xlu0 %v418_v60 }
 0x11d   :  { %v459_v62 = vsel %vm396_vm0, %v437_v61, 0.0 }
 0x120   :  { %460 = vadd.xlane.f32.xlu0 %v459_v62 }
 0x18d   :  { %v399_v0 = vpop.xlane.xlu0 %398 }
 0x18e   :  { %v422_v2 = vmul.f32 0.03125, %v399_v0 }
 0x190   :  { %v470_v5 = vmul.f32 %v422_v2, %v422_v2 }
 0x191   :  { %v402_v3 = vpop.xlane.xlu1 %401  ;;  %v440_v4 = vpop.xlane.xlu0 %439 }
 0x192   :  { %v423_v6 = vmul.f32 0.03125, %v402_v3  ;;  %v462_v8 = vmul.f32 0.03125, %v440_v4 }
 0x194   :  { %v478_v9 = vsub.f32 %v462_v8, %v470_v5  ;;  %v471_v12 = vmul.f32 %v423_v6, %v423_v6 }
 0x195   :  { %v405_v10 = vpop.xlane.xlu1 %404  ;;  %v443_v11 = vpop.xlane.xlu0 %442 }
 0x196   :  { %v486_v13 = vadd.f32 1e-05, %v478_v9  ;;  %v5015_v15 = vmul.f32 0.03125, %v405_v10  ;;  %v463_v16 = vmul.f32 0.03125, %v443_v11 }
 0x198   :  { %4467 = vrsqrt.f32 %v486_v13  ;;  %v472_v17 = vmul.f32 %v5015_v15, %v5015_v15  ;;  %v479_v18 = vsub.f32 %v463_v16, %v471_v12 }
 0x199   :  { %v446_v19 = vpop.xlane.xlu1 %445  ;;  %v408_v20 = vpop.xlane.xlu0 %407 }
 0x19a   :  { %v487_v21 = vadd.f32 1e-05, %v479_v18  ;;  %v464_v23 = vmul.f32 0.03125, %v446_v19  ;;  %v5019_v24 = vmul.f32 0.03125, %v408_v20 }
 0x19c   :  { %4469 = vrsqrt.f32 %v487_v21  ;;  %v480_v25 = vsub.f32 %v464_v23, %v472_v17  ;;  %v473_v26 = vmul.f32 %v5019_v24, %v5019_v24 }
 0x19d   :  { %v411_v28 = vpop.xlane.xlu1 %410  ;;  %v449_v29 = vpop.xlane.xlu0 %448 }
 0x19e   :  { %v488_v30 = vadd.f32 1e-05, %v480_v25  ;;  %v426_v31 = vmul.f32 0.03125, %v411_v28  ;;  %v465_v32 = vmul.f32 0.03125, %v449_v29 }
 0x1a0   :  { %4471 = vrsqrt.f32 %v488_v30  ;;  %v481_v33 = vsub.f32 %v465_v32, %v473_v26  ;;  %v474_v39 = vmul.f32 %v426_v31, %v426_v31 }
 0x1a1   :  { %v452_v35 = vpop.xlane.xlu1 %451  ;;  %v414_v36 = vpop.xlane.xlu0 %413 }
 0x1a2   :  { %v4468_v38 = vpop.eup %4467  ;;  %v466_v41 = vmul.f32 0.03125, %v452_v35  ;;  %v427_v45 = vmul.f32 0.03125, %v414_v36  ;;  %v489_v46 = vadd.f32 1e-05, %v481_v33 }
 0x1a3   :  { %v502_v47 = vmul.f32 %v4468_v38, %v4825_v37 }
 0x1a4   :  { %v482_v50 = vsub.f32 %v466_v41, %v474_v39  ;;  %v475_v60 = vmul.f32 %v427_v45, %v427_v45  ;;  %4473 = vrsqrt.f32 %v489_v46 }
 0x1a5   :  { %v417_v52 = vpop.xlane.xlu1 %416  ;;  %512 = vperm.xlu0 %4450, %v502_v47   ;;  %v455_v53 = vpop.xlane.xlu0 %454  ;;  %v558_v56 = vmul.f32 %v502_v47, %v422_v2 }
 0x1a6   :  { %v4470_v57 = vpop.eup %4469  ;;  %v490_v59 = vadd.f32 1e-05, %v482_v50  ;;  %v428_v61 = vmul.f32 0.03125, %v417_v52  ;;  %v467_v62 = vmul.f32 0.03125, %v455_v53 }
 0x1a7   :  { %574 = vrot.lane.b32.xlu1 %v558_v56, %s4537_s1  ;;  %v503_v0 = vmul.f32 %v4470_v57, %v4845_v42 }
 0x1a8   :  { %4475 = vrsqrt.f32 %v490_v59  ;;  %v483_v3 = vsub.f32 %v467_v62, %v475_v60  ;;  %v476_v10 = vmul.f32 %v428_v61, %v428_v61 }
 0x1a9   :  { %v458_v4 = vpop.xlane.xlu1 %457  ;;  %v420_v5 = vpop.xlane.xlu0 %419  ;;  %v559_v8 = vmul.f32 %v503_v0, %v423_v6 }
 0x1aa   :  { %v4472_v9 = vpop.eup %4471  ;;  %v468_v11 = vmul.f32 0.03125, %v458_v4  ;;  %v491_v2 = vadd.f32 1e-05, %v483_v3  ;;  %v429_v18 = vmul.f32 0.03125, %v420_v5 }
 0x1ab   :  { %517 = vperm.xlu1 %4451, %v503_v0   ;;  %576 = vrot.lane.b32.xlu0 %v559_v8, %s4537_s1  ;;  %v504_v16 = vmul.f32 %v4472_v9, %v4837_v40 }
 0x1ac   :  { %v484_v12 = vsub.f32 %v468_v11, %v476_v10  ;;  %4477 = vrsqrt.f32 %v491_v2  ;;  %v477_v23 = vmul.f32 %v429_v18, %v429_v18 }
 0x1ad   :  { %v461_v13 = vpop.xlane.xlu0 %460  ;;  %v560_v6 = vmul.f32 %v504_v16, %v5015_v15  ;;  %v7666_v15 = vmov 2  }
 0x1ae   :  { %v492_v17 = vadd.f32 1e-05, %v484_v12  ;;  %v469_v19 = vmul.f32 0.03125, %v461_v13  ;;  %v4474_v20 = vpop.eup %4473 }
 0x1af   :  { %522 = vperm.xlu1 %4451, %v504_v16   ;;  %v505_v28 = vmul.f32 %v4474_v20, %v4851_v43 }
 0x1b0   :  { %4479 = vrsqrt.f32 %v492_v17  ;;  %v485_v26 = vsub.f32 %v469_v19, %v477_v23 }
 0x1b1   :  { %v561_v33 = vmul.f32 %v505_v28, %v5019_v24 }
 0x1b2   :  { %v4476_v21 = vpop.eup %4475  ;;  %v493_v30 = vadd.f32 1e-05, %v485_v26 }
 0x1b3   :  { %578 = vrot.lane.b32.xlu1 %v560_v6, %s4537_s1  ;;  %v506_v25 = vmul.f32 %v4476_v21, %v4869_v48 }
 0x1b4   :  { %4481 = vrsqrt.f32 %v493_v30 }
 0x1b5   :  { %532 = vperm.xlu0 %4450, %v506_v25   ;;  %v562_v29 = vmul.f32 %v506_v25, %v426_v31 }
 0x1b6   :  { %v4478_v32 = vpop.eup %4477 }
 0x1b7   :  { %527 = vperm.xlu1 %4451, %v505_v28   ;;  %v507_v39 = vmul.f32 %v4478_v32, %v4875_v49 }
 0x1b9   :  { %582 = vrot.lane.b32.xlu0 %v562_v29, %s4537_s1  ;;  %v563_v31 = vmul.f32 %v507_v39, %v427_v45 }
 0x1ba   :  { %v4480_v35 = vpop.eup %4479  ;;  %4453 = vset.pattern.permute.xlu0 %v7666_v15 }
 0x1bb   :  { %580 = vrot.lane.b32.xlu1 %v561_v33, %s4537_s1  ;;  %v508_v36 = vmul.f32 %v4480_v35, %v4893_v54 }
 0x1bd   :  { %v564_v38 = vmul.f32 %v508_v36, %v428_v61 }
 0x1be   :  { %v4482_v41 = vpop.eup %4481 }
 0x1bf   :  { %586 = vrot.lane.b32.xlu0 %v564_v38, %s4537_s1  ;;  %537 = vperm.xlu1 %4451, %v507_v39   ;;  %v509_v24 = vmul.f32 %v4482_v41, %v4899_v55 }
 0x1c1   :  { %v565_v46 = vmul.f32 %v509_v24, %v429_v18 }
 0x1c3   :  { %584 = vrot.lane.b32.xlu1 %v563_v31, %s4537_s1 }
 0x1c7   :  { %542 = vperm.xlu1 %4451, %v508_v36  }
 0x1cb   :  { %547 = vperm.xlu1 %4451, %v509_v24   ;;  %v5191_v24 = vld [vmem:[%s7659_s9] sm:$0xf] }
 0x1cf   :  { %588 = vrot.lane.b32.xlu1 %v565_v46, %s4537_s1 }
 0x1d0   :  { %4452 = vset.pattern.permute.xlu1 %v7666_v15  ;;  %v1222_v15 = vld [vmem:[%s7653_s3 + $0x18] sm:$0xff] }
 0x1d1   :  { %1557 = vmatprep.mubr.f32.mxu1 %v1222_v15 }
 0x219   :  { %v575_v47 = vpop.permute.xlu1 %574 }
 0x21a   :  { %v598_v50 = vsub.f32 %v4825_v37, %v575_v47 }
 0x21c   :  { %608 = vperm.xlu1 %4452, %v598_v50  }
 0x224   :  { %v513_v52 = vpop.permute.xlu0 %512 }
 0x228   :  { %v577_v53 = vpop.permute.xlu0 %576 }
 0x229   :  { %v599_v45 = vsub.f32 %v4845_v42, %v577_v53 }
 0x22a   :  { %v518_v56 = vpop.permute.xlu1 %517 }
 0x22b   :  { %613 = vperm.xlu0 %4453, %v599_v45  }
 0x22e   :  { %v523_v57 = vpop.permute.xlu1 %522 }
 0x22f   :  { %v552_v17 = vmul.f32 %v523_v57, %v4970_v51 }
 0x232   :  { %v579_v59 = vpop.permute.xlu1 %578 }
 0x233   :  { %v600_v60 = vsub.f32 %v4837_v40, %v579_v59 }
 0x234   :  { %v533_v61 = vpop.permute.xlu0 %532 }
 0x235   :  { %618 = vperm.xlu0 %4453, %v600_v60  }
 0x236   :  { %v528_v62 = vpop.permute.xlu1 %527 }
 0x237   :  { %v553_v20 = vmul.f32 %v528_v62, %v4977_v1  ;;  %v554_v1 = vmul.f32 %v533_v61, %v4984_v14 }
 0x238   :  { %v583_v4 = vpop.permute.xlu0 %582 }
 0x239   :  { %v602_v5 = vsub.f32 %v4869_v48, %v583_v4  ;;  %v550_v48 = vmul.f32 %v513_v52, %v4957_v22 }
 0x23a   :  { %v581_v0 = vpop.permute.xlu1 %580 }
 0x23b   :  { %v601_v3 = vsub.f32 %v4851_v43, %v581_v0 }
 0x23c   :  { %v587_v9 = vpop.permute.xlu0 %586 }
 0x23d   :  { %623 = vperm.xlu1 %4452, %v601_v3   ;;  %v604_v40 = vsub.f32 %v4893_v54, %v587_v9  ;;  %v551_v54 = vmul.f32 %v518_v56, %v4963_v34 }
 0x23e   :  { %v5047_v37 = vpop.permute.xlu1 %537 }
 0x23f   :  { %v555_v28 = vmul.f32 %v5047_v37, %v4991_v27 }
 0x241   :  { %628 = vperm.xlu1 %4452, %v602_v5  }
 0x242   :  { %v585_v42 = vpop.permute.xlu1 %584 }
 0x243   :  { %v603_v8 = vsub.f32 %v4875_v49, %v585_v42 }
 0x245   :  { %633 = vperm.xlu0 %4453, %v603_v8  }
 0x246   :  { %v5051_v10 = vpop.permute.xlu1 %542 }
 0x247   :  { %v556_v27 = vmul.f32 %v5051_v10, %v4998_v44 }
 0x249   :  { %638 = vperm.xlu0 %4453, %v604_v40  }
 0x24a   :  { %v5054_v11 = vpop.permute.xlu1 %547 }
 0x24b   :  { %v557_v36 = vmul.f32 %v5054_v11, %v5005_v58  ;;  %v7663_v58 = vlaneseq }
 0x24d   :  { %4454 = vset.pattern.permute.xlu0 %v7664_v7  ;;  %v5183_v31 = vshrl.u32 %v7663_v58, 7 }
 0x24e   :  { %v589_v43 = vpop.permute.xlu1 %588 }
 0x24f   :  { %v605_v2 = vsub.f32 %v4899_v55, %v589_v43  ;;  %v5186_v41 = vsub.s32 0, %v5183_v31  ;;  %v5206_v57 = vsub.s32 1, %v5183_v31 }
 0x251   :  { %643 = vperm.xlu1 %4452, %v605_v2   ;;  %v5195_v47 = vrot.slane %v5191_v24, %v5186_v41  ;;  %7765 = vst [vmem:[#allocation5_spill] sm:$0xff] %v5206_v57  ;;  %v5214_v61 = vrot.slane %v5191_v24, %v5206_v57 }
 0x255   :  { %4455 = vset.pattern.permute.xlu1 %v7664_v7 }
 0x29b   :  { %v609_v49 = vpop.permute.xlu1 %608 }
 0x29c   :  { %v646_v12 = vadd.f32 %v609_v49, %v550_v48 }
 0x29e   :  { %v5060_v13 = vmax.f32 %v646_v12, 0.0 }
 0x2a0   :  { %671 = vrot.lane.b32.xlu0 %v5060_v13, %s4539_s25 }
 0x2a4   :  { %695 = vrot.lane.b32.xlu0 %v5060_v13, %s4540_s26 }
 0x2a8   :  { %740 = vrot.lane.b32.xlu0 %v5060_v13, %s4541_s27 }
 0x2aa   :  { %v614_v55 = vpop.permute.xlu0 %613 }
 0x2ab   :  { %v647_v22 = vadd.f32 %v614_v55, %v551_v54 }
 0x2ac   :  { %764 = vrot.lane.b32.xlu0 %v5060_v13, %s4542_s28 }
 0x2ad   :  { %v5071_v16 = vmax.f32 %v647_v22, 0.0 }
 0x2af   :  { %673 = vrot.lane.b32.xlu1 %v5071_v16, %s4539_s25 }
 0x2b0   :  { %955 = vrot.lane.b32.xlu0 %v5060_v13, %s4543_s29 }
 0x2b3   :  { %697 = vrot.lane.b32.xlu1 %v5071_v16, %s4540_s26 }
 0x2b4   :  { %979 = vrot.lane.b32.xlu0 %v5060_v13, %s4544_s30  ;;  %v619_v34 = vpop.permute.xlu0 %618 }
 0x2b5   :  { %v648_v18 = vadd.f32 %v619_v34, %v552_v17 }
 0x2b7   :  { %v5082_v19 = vmax.f32 %v648_v18, 0.0  ;;  %742 = vrot.lane.b32.xlu1 %v5071_v16, %s4541_s27 }
 0x2b9   :  { %675 = vrot.lane.b32.xlu0 %v5082_v19, %s4539_s25 }
 0x2bb   :  { %766 = vrot.lane.b32.xlu1 %v5071_v16, %s4542_s28 }
 0x2bc   :  { %v624_v51 = vpop.permute.xlu1 %623 }
 0x2bd   :  { %699 = vrot.lane.b32.xlu0 %v5082_v19, %s4540_s26  ;;  %v649_v6 = vadd.f32 %v624_v51, %v553_v20 }
 0x2bf   :  { %957 = vrot.lane.b32.xlu1 %v5071_v16, %s4543_s29  ;;  %v5099_v21 = vmax.f32 %v649_v6, 0.0 }
 0x2c0   :  { %v629_v23 = vpop.permute.xlu1 %628 }
 0x2c1   :  { %744 = vrot.lane.b32.xlu0 %v5082_v19, %s4541_s27  ;;  %v650_v25 = vadd.f32 %v629_v23, %v554_v1 }
 0x2c3   :  { %981 = vrot.lane.b32.xlu1 %v5071_v16, %s4544_s30  ;;  %v5112_v26 = vmax.f32 %v650_v25, 0.0 }
 0x2c4   :  { %v634_v14 = vpop.permute.xlu0 %633 }
 0x2c5   :  { %768 = vrot.lane.b32.xlu0 %v5082_v19, %s4542_s28  ;;  %v651_v29 = vadd.f32 %v634_v14, %v555_v28 }
 0x2c7   :  { %677 = vrot.lane.b32.xlu1 %v5099_v21, %s4539_s25  ;;  %v5130_v30 = vmax.f32 %v651_v29, 0.0 }
 0x2c8   :  { %v639_v32 = vpop.permute.xlu0 %638 }
 0x2c9   :  { %959 = vrot.lane.b32.xlu0 %v5082_v19, %s4543_s29  ;;  %v652_v33 = vadd.f32 %v639_v32, %v556_v27 }
 0x2cb   :  { %701 = vrot.lane.b32.xlu1 %v5099_v21, %s4540_s26  ;;  %v5144_v35 = vmax.f32 %v652_v33, 0.0 }
 0x2cd   :  { %983 = vrot.lane.b32.xlu0 %v5082_v19, %s4544_s30 }
 0x2cf   :  { %746 = vrot.lane.b32.xlu1 %v5099_v21, %s4541_s27 }
 0x2d0   :  { %v644_v44 = vpop.permute.xlu1 %643 }
 0x2d1   :  { %679 = vrot.lane.b32.xlu0 %v5112_v26, %s4539_s25  ;;  %v653_v38 = vadd.f32 %v644_v44, %v557_v36 }
 0x2d3   :  { %770 = vrot.lane.b32.xlu1 %v5099_v21, %s4542_s28  ;;  %v5162_v39 = vmax.f32 %v653_v38, 0.0 }
 0x2d5   :  { %703 = vrot.lane.b32.xlu0 %v5112_v26, %s4540_s26 }
 0x2d7   :  { %961 = vrot.lane.b32.xlu1 %v5099_v21, %s4543_s29 }
 0x2d9   :  { %748 = vrot.lane.b32.xlu0 %v5112_v26, %s4541_s27 }
 0x2db   :  { %985 = vrot.lane.b32.xlu1 %v5099_v21, %s4544_s30 }
 0x2dd   :  { %772 = vrot.lane.b32.xlu0 %v5112_v26, %s4542_s28 }
 0x2df   :  { %681 = vrot.lane.b32.xlu1 %v5130_v30, %s4539_s25 }
 0x2e1   :  { %963 = vrot.lane.b32.xlu0 %v5112_v26, %s4543_s29 }
 0x2e3   :  { %705 = vrot.lane.b32.xlu1 %v5130_v30, %s4540_s26 }
 0x2e5   :  { %987 = vrot.lane.b32.xlu0 %v5112_v26, %s4544_s30 }
 0x2e7   :  { %750 = vrot.lane.b32.xlu1 %v5130_v30, %s4541_s27 }
 0x2e9   :  { %683 = vrot.lane.b32.xlu0 %v5144_v35, %s4539_s25 }
 0x2eb   :  { %774 = vrot.lane.b32.xlu1 %v5130_v30, %s4542_s28 }
 0x2ed   :  { %707 = vrot.lane.b32.xlu0 %v5144_v35, %s4540_s26 }
 0x2ef   :  { %965 = vrot.lane.b32.xlu1 %v5130_v30, %s4543_s29 }
 0x2f1   :  { %752 = vrot.lane.b32.xlu0 %v5144_v35, %s4541_s27 }
 0x2f3   :  { %989 = vrot.lane.b32.xlu1 %v5130_v30, %s4544_s30 }
 0x2f5   :  { %776 = vrot.lane.b32.xlu0 %v5144_v35, %s4542_s28 }
 0x2f7   :  { %685 = vrot.lane.b32.xlu1 %v5162_v39, %s4539_s25 }
 0x2f9   :  { %967 = vrot.lane.b32.xlu0 %v5144_v35, %s4543_s29 }
 0x2fb   :  { %709 = vrot.lane.b32.xlu1 %v5162_v39, %s4540_s26 }
 0x2fd   :  { %991 = vrot.lane.b32.xlu0 %v5144_v35, %s4544_s30 }
 0x2ff   :  { %754 = vrot.lane.b32.xlu1 %v5162_v39, %s4541_s27 }
 0x303   :  { %778 = vrot.lane.b32.xlu1 %v5162_v39, %s4542_s28 }
 0x307   :  { %969 = vrot.lane.b32.xlu1 %v5162_v39, %s4543_s29 }
 0x30b   :  { %993 = vrot.lane.b32.xlu1 %v5162_v39, %s4544_s30 }
 0x312   :  { %v672_v46 = vpop.permute.xlu0 %671 }
 0x316   :  { %v696_v50 = vpop.permute.xlu0 %695 }
 0x317   :  { %v720_v52 = vsel %vm719_vm1, %v672_v46, %v696_v50 }
 0x318   :  { %v5199_v53 = vmul.f32 %v5195_v47, %v720_v52 }
 0x31a   :  { %886 = vrot.lane.b32.xlu0 %v5199_v53, %s4545_s0  ;;  %v741_v45 = vpop.permute.xlu0 %740 }
 0x31e   :  { %910 = vrot.lane.b32.xlu0 %v5199_v53, %s4546_s15  ;;  %v765_v56 = vpop.permute.xlu0 %764 }
 0x31f   :  { %v789_v62 = vsel %vm788_vm2, %v741_v45, %v765_v56 }
 0x320   :  { %v5226_v5 = vmul.f32 %v5214_v61, %v789_v62 }
 0x321   :  { %v674_v59 = vpop.permute.xlu1 %673 }
 0x322   :  { %817 = vrot.lane.b32.xlu0 %v5199_v53, %s4543_s29  ;;  %v5210_v60 = vpop.permute.xlu0 %955 }
 0x325   :  { %v698_v0 = vpop.permute.xlu1 %697 }
 0x326   :  { %v721_v3 = vsel %vm719_vm1, %v674_v59, %v698_v0  ;;  %841 = vrot.lane.b32.xlu0 %v5199_v53, %s4544_s30  ;;  %v5220_v4 = vpop.permute.xlu0 %979 }
 0x327   :  { %v5223_v37 = vmul.f32 %v5195_v47, %v721_v3 }
 0x329   :  { %v743_v42 = vpop.permute.xlu1 %742  ;;  %888 = vrot.lane.b32.xlu1 %v5223_v37, %s4545_s0  ;;  %v4255_v8 = vpack.c.bf16 %v5223_v37, %v5199_v53 }
 0x32a   :  { %1091 = vrot.lane.b32.xlu0 %v5226_v5, %s4543_s29 }
 0x32b   :  { %v676_v9 = vpop.permute.xlu0 %675 }
 0x32d   :  { %v767_v10 = vpop.permute.xlu1 %766  ;;  %912 = vrot.lane.b32.xlu1 %v5223_v37, %s4546_s15 }
 0x32e   :  { %1115 = vrot.lane.b32.xlu0 %v5226_v5, %s4544_s30  ;;  %v790_v49 = vsel %vm788_vm2, %v743_v42, %v767_v10 }
 0x32f   :  { %v700_v40 = vpop.permute.xlu0 %699  ;;  %v5254_v54 = vmul.f32 %v5214_v61, %v790_v49 }
 0x330   :  { %v722_v11 = vsel %vm719_vm1, %v676_v9, %v700_v40 }
 0x331   :  { %v5240_v43 = vmul.f32 %v5195_v47, %v722_v11  ;;  %v5242_v2 = vpop.permute.xlu1 %957  ;;  %819 = vrot.lane.b32.xlu1 %v5223_v37, %s4543_s29 }
 0x333   :  { %890 = vrot.lane.b32.xlu0 %v5240_v43, %s4545_s0  ;;  %v745_v48 = vpop.permute.xlu0 %744 }
 0x335   :  { %v5249_v12 = vpop.permute.xlu1 %981  ;;  %843 = vrot.lane.b32.xlu1 %v5223_v37, %s4544_s30 }
 0x337   :  { %914 = vrot.lane.b32.xlu0 %v5240_v43, %s4546_s15  ;;  %v769_v55 = vpop.permute.xlu0 %768 }
 0x338   :  { %v791_v18 = vsel %vm788_vm2, %v745_v48, %v769_v55 }
 0x339   :  { %v678_v22 = vpop.permute.xlu1 %677  ;;  %1093 = vrot.lane.b32.xlu1 %v5254_v54, %s4543_s29  ;;  %v5276_v23 = vmul.f32 %v5214_v61, %v791_v18 }
 0x33b   :  { %821 = vrot.lane.b32.xlu0 %v5240_v43, %s4543_s29  ;;  %v5262_v17 = vpop.permute.xlu0 %959 }
 0x33d   :  { %v702_v34 = vpop.permute.xlu1 %701  ;;  %1117 = vrot.lane.b32.xlu1 %v5254_v54, %s4544_s30 }
 0x33e   :  { %v723_v51 = vsel %vm719_vm1, %v678_v22, %v702_v34 }
 0x33f   :  { %v5269_v20 = vmul.f32 %v5195_v47, %v723_v51  ;;  %845 = vrot.lane.b32.xlu0 %v5240_v43, %s4544_s30  ;;  %v5273_v6 = vpop.permute.xlu0 %983 }
 0x341   :  { %v747_v1 = vpop.permute.xlu1 %746  ;;  %892 = vrot.lane.b32.xlu1 %v5269_v20, %s4545_s0 }
 0x343   :  { %1095 = vrot.lane.b32.xlu0 %v5276_v23, %s4543_s29  ;;  %v680_v14 = vpop.permute.xlu0 %679 }
 0x345   :  { %v771_v28 = vpop.permute.xlu1 %770  ;;  %916 = vrot.lane.b32.xlu1 %v5269_v20, %s4546_s15 }
 0x346   :  { %v792_v36 = vsel %vm788_vm2, %v747_v1, %v771_v28 }
 0x347   :  { %1119 = vrot.lane.b32.xlu0 %v5276_v23, %s4544_s30  ;;  %v704_v29 = vpop.permute.xlu0 %703  ;;  %v5304_v46 = vmul.f32 %v5214_v61, %v792_v36 }
 0x348   :  { %v724_v32 = vsel %vm719_vm1, %v680_v14, %v704_v29 }
 0x349   :  { %v5290_v27 = vmul.f32 %v5195_v47, %v724_v32  ;;  %v5292_v33 = vpop.permute.xlu1 %961  ;;  %823 = vrot.lane.b32.xlu1 %v5269_v20, %s4543_s29 }
 0x34b   :  { %894 = vrot.lane.b32.xlu0 %v5290_v27, %s4545_s0  ;;  %v749_v44 = vpop.permute.xlu0 %748 }
 0x34d   :  { %v5299_v38 = vpop.permute.xlu1 %985  ;;  %847 = vrot.lane.b32.xlu1 %v5269_v20, %s4544_s30 }
 0x34f   :  { %918 = vrot.lane.b32.xlu0 %v5290_v27, %s4546_s15  ;;  %v773_v50 = vpop.permute.xlu0 %772 }
 0x350   :  { %v793_v59 = vsel %vm788_vm2, %v749_v44, %v773_v50 }
 0x351   :  { %1097 = vrot.lane.b32.xlu1 %v5304_v46, %s4543_s29  ;;  %v682_v52 = vpop.permute.xlu1 %681  ;;  %v5326_v42 = vmul.f32 %v5214_v61, %v793_v59  ;;  %v1220_v59 = vld [vmem:[%s7653_s3 + $0x8] sm:$0xff] }
 0x352   :  { %1412 = vmatprep.mubr.f32.mxu0 %v1220_v59 }
 0x353   :  { %825 = vrot.lane.b32.xlu0 %v5290_v27, %s4543_s29  ;;  %v5312_v45 = vpop.permute.xlu0 %963 }
 0x355   :  { %1121 = vrot.lane.b32.xlu1 %v5304_v46, %s4544_s30  ;;  %v706_v56 = vpop.permute.xlu1 %705 }
 0x356   :  { %v725_v62 = vsel %vm719_vm1, %v682_v52, %v706_v56 }
 0x357   :  { %v5319_v0 = vmul.f32 %v5195_v47, %v725_v62  ;;  %849 = vrot.lane.b32.xlu0 %v5290_v27, %s4544_s30  ;;  %v5323_v3 = vpop.permute.xlu0 %987 }
 0x359   :  { %896 = vrot.lane.b32.xlu1 %v5319_v0, %s4545_s0  ;;  %v751_v9 = vpop.permute.xlu1 %750 }
 0x35b   :  { %1099 = vrot.lane.b32.xlu0 %v5326_v42, %s4543_s29  ;;  %v684_v40 = vpop.permute.xlu0 %683 }
 0x35d   :  { %920 = vrot.lane.b32.xlu1 %v5319_v0, %s4546_s15  ;;  %v775_v11 = vpop.permute.xlu1 %774 }
 0x35e   :  { %v794_v34 = vsel %vm788_vm2, %v751_v9, %v775_v11 }
 0x35f   :  { %v708_v48 = vpop.permute.xlu0 %707  ;;  %v5352_v51 = vmul.f32 %v5214_v61, %v794_v34 }
 0x360   :  { %v726_v49 = vsel %vm719_vm1, %v684_v40, %v708_v48 }
 0x361   :  { %v5338_v55 = vmul.f32 %v5195_v47, %v726_v49  ;;  %827 = vrot.lane.b32.xlu1 %v5319_v0, %s4543_s29  ;;  %v5342_v22 = vpop.permute.xlu1 %965 }
 0x363   :  { %898 = vrot.lane.b32.xlu0 %v5338_v55, %s4545_s0  ;;  %v753_v1 = vpop.permute.xlu0 %752 }
 0x365   :  { %851 = vrot.lane.b32.xlu1 %v5319_v0, %s4544_s30  ;;  %v5349_v18 = vpop.permute.xlu1 %989 }
 0x367   :  { %922 = vrot.lane.b32.xlu0 %v5338_v55, %s4546_s15  ;;  %v777_v32 = vpop.permute.xlu0 %776 }
 0x368   :  { %v795_v50 = vsel %vm788_vm2, %v753_v1, %v777_v32 }
 0x369   :  { %1101 = vrot.lane.b32.xlu1 %v5352_v51, %s4543_s29  ;;  %v686_v14 = vpop.permute.xlu1 %685  ;;  %v5374_v52 = vmul.f32 %v5214_v61, %v795_v50 }
 0x36b   :  { %829 = vrot.lane.b32.xlu0 %v5338_v55, %s4543_s29 }
 0x36d   :  { %v710_v28 = vpop.permute.xlu1 %709 }
 0x36e   :  { %v727_v29 = vsel %vm719_vm1, %v686_v14, %v710_v28  ;;  %v5428_v28 = vsub.s32 3, %v5183_v31 }
 0x36f   :  { %v5362_v44 = vmul.f32 %v5195_v47, %v727_v29  ;;  %853 = vrot.lane.b32.xlu0 %v5338_v55, %s4544_s30  ;;  %v5390_v47 = vpop.permute.xlu0 %967 }
 0x370   :  { %v5436_v50 = vrot.slane %v5191_v24, %v5428_v28 }
 0x371   :  { %900 = vrot.lane.b32.xlu1 %v5362_v44, %s4545_s0  ;;  %v755_v56 = vpop.permute.xlu1 %754 }
 0x373   :  { %1123 = vrot.lane.b32.xlu0 %v5326_v42, %s4544_s30  ;;  %v5401_v62 = vpop.permute.xlu0 %991 }
 0x375   :  { %924 = vrot.lane.b32.xlu1 %v5362_v44, %s4546_s15  ;;  %v779_v9 = vpop.permute.xlu1 %778 }
 0x376   :  { %v796_v40 = vsel %vm788_vm2, %v755_v56, %v779_v9 }
 0x377   :  { %1103 = vrot.lane.b32.xlu0 %v5374_v52, %s4543_s29  ;;  %v5411_v48 = vmul.f32 %v5214_v61, %v796_v40 }
 0x379   :  { %831 = vrot.lane.b32.xlu1 %v5362_v44, %s4543_s29  ;;  %v5415_v34 = vpop.permute.xlu1 %969 }
 0x37b   :  { %1127 = vrot.lane.b32.xlu0 %v5374_v52, %s4544_s30 }
 0x37d   :  { %855 = vrot.lane.b32.xlu1 %v5362_v44, %s4544_s30  ;;  %v5423_v14 = vpop.permute.xlu1 %993 }
 0x37f   :  { %1019 = vrot.lane.b32.xlu0 %v5060_v13, %s4545_s0 }
 0x381   :  { %1125 = vrot.lane.b32.xlu1 %v5352_v51, %s4544_s30 }
 0x383   :  { %1043 = vrot.lane.b32.xlu0 %v5060_v13, %s4546_s15 }
 0x385   :  { %1021 = vrot.lane.b32.xlu1 %v5071_v16, %s4545_s0 }
 0x387   :  { %1023 = vrot.lane.b32.xlu0 %v5082_v19, %s4545_s0 }
 0x389   :  { %1045 = vrot.lane.b32.xlu1 %v5071_v16, %s4546_s15 }
 0x38b   :  { %1047 = vrot.lane.b32.xlu0 %v5082_v19, %s4546_s15 }
 0x38c   :  { %v887_v11 = vpop.permute.xlu0 %886 }
 0x38d   :  { %1025 = vrot.lane.b32.xlu1 %v5099_v21, %s4545_s0 }
 0x38f   :  { %1027 = vrot.lane.b32.xlu0 %v5112_v26, %s4545_s0 }
 0x390   :  { %v911_v49 = vpop.permute.xlu0 %910 }
 0x391   :  { %1105 = vrot.lane.b32.xlu1 %v5411_v48, %s4543_s29  ;;  %v935_v56 = vsel %vm934_vm3, %v887_v11, %v911_v49  ;;  %v5452_v11 = vsub.s32 2, %v5183_v31 }
 0x392   :  { %v947_v58 = vmul.f32 %v5436_v50, %v935_v56 }
 0x393   :  { %1051 = vrot.lane.b32.xlu0 %v5112_v26, %s4546_s15  ;;  %7766 = vst [vmem:[#allocation6_spill] sm:$0xff] %v5452_v11 }
 0x394   :  { %v818_v1 = vpop.permute.xlu0 %817 }
 0x395   :  { %1129 = vrot.lane.b32.xlu1 %v5411_v48, %s4544_s30  ;;  %s4548_s30 = smov 64  }
 0x397   :  { %1031 = vrot.lane.b32.xlu0 %v5144_v35, %s4545_s0 }
 0x398   :  { %v842_v61 = vpop.permute.xlu0 %841 }
 0x399   :  { %1049 = vrot.lane.b32.xlu1 %v5099_v21, %s4546_s15 }
 0x39b   :  { %v889_v29 = vpop.permute.xlu1 %888  ;;  %1055 = vrot.lane.b32.xlu0 %v5144_v35, %s4546_s15 }
 0x39c   :  { %v1092_v32 = vpop.permute.xlu0 %1091 }
 0x39d   :  { %1029 = vrot.lane.b32.xlu1 %v5130_v30, %s4545_s0 }
 0x39f   :  { %v913_v59 = vpop.permute.xlu1 %912  ;;  %1155 = vrot.lane.b32.xlu0 %v5226_v5, %s4545_s0 }
 0x3a0   :  { %v936_v9 = vsel %vm934_vm3, %v889_v29, %v913_v59  ;;  %v1116_v40 = vpop.permute.xlu0 %1115  ;;  %v866_v59 = vsel %vm865_vm4, %v818_v1, %v842_v61 }
 0x3a1   :  { %v948_v7 = vmul.f32 %v5436_v50, %v936_v9  ;;  %1053 = vrot.lane.b32.xlu1 %v5130_v30, %s4546_s15  ;;  %v5461_v9 = vrot.slane %v5191_v24, %v5452_v11  ;;  %v1139_v61 = vsel %vm865_vm4, %v1092_v32, %v1116_v40  ;;  %v4271_v32 = vpack.c.bf16 %v5071_v16, %v5060_v13 }
 0x3a3   :  { %v820_v49 = vpop.permute.xlu1 %819  ;;  %1179 = vrot.lane.b32.xlu0 %v5226_v5, %s4546_s15  ;;  %v4237_v29 = vpack.c.bf16 %v948_v7, %v947_v58  ;;  %v878_v7 = vmul.f32 %v5461_v9, %v866_v59  ;;  %v1147_v59 = vmul.f32 %v1139_v61, %v5461_v9 }
 0x3a5   :  { %1033 = vrot.lane.b32.xlu1 %v5162_v39, %s4545_s0  ;;  %4238 = vmatprep.subr.bf16.mxu0 %v4237_v29  ;;  %v891_v56 = vpop.permute.xlu0 %890 }
 0x3a7   :  { %v844_v15 = vpop.permute.xlu1 %843  ;;  %1159 = vrot.lane.b32.xlu0 %v5276_v23, %s4545_s0 }
 0x3a8   :  { %v867_v63 = vsel %vm865_vm4, %v820_v49, %v844_v15 }
 0x3a9   :  { %v879_v58 = vmul.f32 %v5461_v9, %v867_v63  ;;  %1057 = vrot.lane.b32.xlu1 %v5162_v39, %s4546_s15  ;;  %v915_v29 = vpop.permute.xlu0 %914 }
 0x3ab   :  { %v4239_v36 = vpack.c.bf16 %v879_v58, %v878_v7  ;;  %v1094_v1 = vpop.permute.xlu1 %1093  ;;  %1183 = vrot.lane.b32.xlu0 %v5276_v23, %s4546_s15 }
 0x3ad   :  { %1157 = vrot.lane.b32.xlu1 %v5254_v54, %s4545_s0  ;;  %4240 = vmatpush3.bf16.msra.mxu0 %v4239_v36  ;;  %v822_v24 = vpop.permute.xlu0 %821 }
 0x3af   :  { %v1118_v49 = vpop.permute.xlu1 %1117  ;;  %1163 = vrot.lane.b32.xlu0 %v5326_v42, %s4545_s0 }
 0x3b0   :  { %v1140_v63 = vsel %vm865_vm4, %v1094_v1, %v1118_v49  ;;  %v937_v1 = vsel %vm934_vm3, %v891_v56, %v915_v29 }
 0x3b1   :  { %v1148_v15 = vmul.f32 %v1140_v63, %v5461_v9  ;;  %1181 = vrot.lane.b32.xlu1 %v5254_v54, %s4546_s15  ;;  %v846_v7 = vpop.permute.xlu0 %845  ;;  %v949_v63 = vmul.f32 %v5436_v50, %v937_v1 }
 0x3b3   :  { %v893_v58 = vpop.permute.xlu1 %892  ;;  %1187 = vrot.lane.b32.xlu0 %v5326_v42, %s4546_s15  ;;  %v4269_v36 = vpack.c.bf16 %v1148_v15, %v1147_v59  ;;  %v868_v15 = vsel %vm865_vm4, %v822_v24, %v846_v7 }
 0x3b5   :  { %1161 = vrot.lane.b32.xlu1 %v5304_v46, %s4545_s0  ;;  %4270 = vmatprep.subr.bf16.mxu1 %v4269_v36  ;;  %v1096_v40 = vpop.permute.xlu0 %1095 }
 0x3b6   :  { %4272 = vmatpush3.bf16.msra.mxu1 %v4271_v32  ;;  %v880_v32 = vmul.f32 %v5461_v9, %v868_v15 }
 0x3b7   :  { %v917_v61 = vpop.permute.xlu1 %916  ;;  %1167 = vrot.lane.b32.xlu0 %v5374_v52, %s4545_s0 }
 0x3b8   :  { %v938_v49 = vsel %vm934_vm3, %v893_v58, %v917_v61 }
 0x3b9   :  { %v950_v59 = vmul.f32 %v5436_v50, %v938_v49  ;;  %1185 = vrot.lane.b32.xlu1 %v5304_v46, %s4546_s15  ;;  %v1120_v13 = vpop.permute.xlu0 %1119 }
 0x3ba   :  { %v1141_v24 = vsel %vm865_vm4, %v1096_v40, %v1120_v13 }
 0x3bb   :  { %v824_v16 = vpop.permute.xlu1 %823  ;;  %1191 = vrot.lane.b32.xlu0 %v5374_v52, %s4546_s15  ;;  %v4241_v56 = vpack.c.bf16 %v950_v59, %v949_v63 }
 0x3bd   :  { %1165 = vrot.lane.b32.xlu1 %v5352_v51, %s4545_s0  ;;  %4242 = vmatprep.subr.bf16.mxu0 %v4241_v56  ;;  %v895_v29 = vpop.permute.xlu0 %894  ;;  %v1149_v56 = vmul.f32 %v1141_v24, %v5461_v9 }
 0x3bf   :  { %v848_v58 = vpop.permute.xlu1 %847 }
 0x3c0   :  { %v869_v36 = vsel %vm865_vm4, %v824_v16, %v848_v58 }
 0x3c1   :  { %v881_v1 = vmul.f32 %v5461_v9, %v869_v36  ;;  %1189 = vrot.lane.b32.xlu1 %v5352_v51, %s4546_s15  ;;  %v919_v61 = vpop.permute.xlu0 %918 }
 0x3c3   :  { %v4243_v49 = vpack.c.bf16 %v881_v1, %v880_v32  ;;  %v1098_v63 = vpop.permute.xlu1 %1097  ;;  %v4275_v1 = vpack.c.bf16 %v5099_v21, %v5082_v19 }
 0x3c5   :  { %1169 = vrot.lane.b32.xlu1 %v5411_v48, %s4545_s0  ;;  %4244 = vmatpush3.bf16.msra.mxu0 %v4243_v49  ;;  %v826_v59 = vpop.permute.xlu0 %825  ;;  %v939_v49 = vsel %vm934_vm3, %v895_v29, %v919_v61  ;;  %s4551_s0 = smov 56  }
 0x3c7   :  { %v1122_v7 = vpop.permute.xlu1 %1121 }
 0x3c8   :  { %v1142_v16 = vsel %vm865_vm4, %v1098_v63, %v1122_v7  ;;  %v951_v63 = vmul.f32 %v5436_v50, %v939_v49 }
 0x3c9   :  { %v1150_v15 = vmul.f32 %v1142_v16, %v5461_v9  ;;  %1193 = vrot.lane.b32.xlu1 %v5411_v48, %s4546_s15  ;;  %v850_v58 = vpop.permute.xlu0 %849 }
 0x3cb   :  { %v897_v36 = vpop.permute.xlu1 %896  ;;  %v4273_v32 = vpack.c.bf16 %v1150_v15, %v1149_v56  ;;  %v870_v56 = vsel %vm865_vm4, %v826_v59, %v850_v58 }
 0x3cc   :  { %v882_v21 = vmul.f32 %v5461_v9, %v870_v56 }
 0x3cd   :  { %4274 = vmatprep.subr.bf16.mxu1 %v4273_v32  ;;  %v1100_v24 = vpop.permute.xlu0 %1099 }
 0x3ce   :  { %4276 = vmatpush3.bf16.msra.mxu1 %v4275_v1 }
 0x3cf   :  { %v921_v40 = vpop.permute.xlu1 %920 }
 0x3d0   :  { %v940_v13 = vsel %vm934_vm3, %v897_v36, %v921_v40 }
 0x3d1   :  { %v952_v7 = vmul.f32 %v5436_v50, %v940_v13 }
 0x3d3   :  { %v828_v16 = vpop.permute.xlu1 %827  ;;  %v4245_v10 = vpack.c.bf16 %v952_v7, %v951_v63 }
 0x3d5   :  { %4246 = vmatprep.subr.bf16.mxu0 %v4245_v10  ;;  %v899_v25 = vpop.permute.xlu0 %898 }
 0x3d7   :  { %v852_v15 = vpop.permute.xlu1 %851 }
 0x3d8   :  { %v871_v19 = vsel %vm865_vm4, %v828_v16, %v852_v15 }
 0x3d9   :  { %v883_v29 = vmul.f32 %v5461_v9, %v871_v19  ;;  %v923_v61 = vpop.permute.xlu0 %922  ;;  %v1004_v19 = vsel %vm865_vm4, %v5242_v2, %v5249_v12 }
 0x3da   :  { %v941_v10 = vsel %vm934_vm3, %v899_v25, %v923_v61  ;;  %v1003_v25 = vsel %vm865_vm4, %v5210_v60, %v5220_v4  ;;  %v1005_v60 = vsel %vm865_vm4, %v5262_v17, %v5273_v6  ;;  %v1007_v17 = vsel %vm865_vm4, %v5312_v45, %v5323_v3 }
 0x3db   :  { %v4247_v36 = vpack.c.bf16 %v883_v29, %v882_v21  ;;  %v1102_v1 = vpop.permute.xlu1 %1101  ;;  %v953_v58 = vmul.f32 %v5436_v50, %v941_v10  ;;  %v1006_v10 = vsel %vm865_vm4, %v5292_v33, %v5299_v38  ;;  %v1008_v38 = vsel %vm865_vm4, %v5342_v22, %v5349_v18 }
 0x3dc   :  { %v4279_v22 = vpack.c.bf16 %v5130_v30, %v5112_v26  ;;  %v1010_v18 = vsel %vm865_vm4, %v5415_v34, %v5423_v14  ;;  %v1015_v45 = vmul.f32 %v1007_v17, %v5461_v9  ;;  %v1009_v3 = vsel %vm865_vm4, %v5390_v47, %v5401_v62 }
 0x3dd   :  { %4248 = vmatpush3.bf16.msra.mxu0 %v4247_v36  ;;  %v830_v32 = vpop.permute.xlu0 %829  ;;  %v1012_v36 = vmul.f32 %v1004_v19, %v5461_v9  ;;  %v1016_v19 = vmul.f32 %v1008_v38, %v5461_v9  ;;  %v1018_v26 = vmul.f32 %v1010_v18, %v5461_v9  ;;  %v7767_v34 = vpack.c.bf16 %v5269_v20, %v5240_v43  ;;  %v1219_v43 = vld [vmem:[%s7653_s3] sm:$0xff] }
 0x3de   :  { %v1017_v37 = vmul.f32 %v1009_v3, %v5461_v9  ;;  %v7769_v62 = vpack.c.bf16 %v5362_v44, %v5338_v55  ;;  %v1245_v3 = vld [vmem:[%s7653_s3 + $0xd0] sm:$0xff] }
 0x3df   :  { %v4261_v30 = vpack.c.bf16 %v1016_v19, %v1015_v45  ;;  %v1239_v45 = vld [vmem:[%s7653_s3 + $0xa0] sm:$0xff] }
 0x3e0   :  { %v4265_v14 = vpack.c.bf16 %v1018_v26, %v1017_v37 }
 0x3e1   :  { %v854_v49 = vpop.permute.xlu0 %853 }
 0x3e2   :  { %v872_v29 = vsel %vm865_vm4, %v830_v32, %v854_v49  ;;  %v1011_v32 = vmul.f32 %v1003_v25, %v5461_v9 }
 0x3e3   :  { %v901_v40 = vpop.permute.xlu1 %900 }
 0x3e4   :  { %v4253_v33 = vpack.c.bf16 %v1012_v36, %v1011_v32  ;;  %v7768_v36 = vpack.c.bf16 %v5319_v0, %v5290_v27 }
 0x3e5   :  { %v1124_v13 = vpop.permute.xlu0 %1123 }
 0x3e6   :  { %v1143_v49 = vsel %vm865_vm4, %v1100_v24, %v1124_v13  ;;  %v1013_v13 = vmul.f32 %v1005_v60, %v5461_v9 }
 0x3e7   :  { %v925_v63 = vpop.permute.xlu1 %924 }
 0x3e8   :  { %v942_v59 = vsel %vm934_vm3, %v901_v40, %v925_v63  ;;  %v884_v63 = vmul.f32 %v5461_v9, %v872_v29 }
 0x3e9   :  { %v954_v7 = vmul.f32 %v5436_v50, %v942_v59  ;;  %v1104_v16 = vpop.permute.xlu0 %1103 }
 0x3eb   :  { %v832_v56 = vpop.permute.xlu1 %831  ;;  %v4249_v15 = vpack.c.bf16 %v954_v7, %v953_v58  ;;  %v1014_v58 = vmul.f32 %v1006_v10, %v5461_v9 }
 0x3ed   :  { %4250 = vmatprep.subr.bf16.mxu0 %v4249_v15  ;;  %v1128_v21 = vpop.permute.xlu0 %1127  ;;  %v4257_v29 = vpack.c.bf16 %v1014_v58, %v1013_v13  ;;  %v1234_v13 = vld [vmem:[%s7653_s3 + $0x78] sm:$0xff] }
 0x3ee   :  { %v1145_v20 = vsel %vm865_vm4, %v1104_v16, %v1128_v21  ;;  %v1224_v16 = vld [vmem:[%s7653_s3 + $0x28] sm:$0xff]  ;;  %v1230_v21 = vld [vmem:[%s7653_s3 + $0x58] sm:$0xff] }
 0x3ef   :  { %v856_v61 = vpop.permute.xlu1 %855 }
 0x3f0   :  { %v873_v40 = vsel %vm865_vm4, %v832_v56, %v856_v61  ;;  %v1151_v56 = vmul.f32 %v1143_v49, %v5461_v9 }
 0x3f1   :  { %v885_v2 = vmul.f32 %v5461_v9, %v873_v40  ;;  %v1020_v12 = vpop.permute.xlu0 %1019 }
 0x3f3   :  { %v4251_v4 = vpack.c.bf16 %v885_v2, %v884_v63  ;;  %v1126_v59 = vpop.permute.xlu1 %1125  ;;  %v1225_v63 = vld [vmem:[%s7653_s3 + $0x30] sm:$0xff]  ;;  %v1153_v2 = vmul.f32 %v1145_v20, %v5461_v9 }
 0x3f4   :  { %v1144_v7 = vsel %vm865_vm4, %v1102_v1, %v1126_v59 }
 0x3f5   :  { %v1152_v15 = vmul.f32 %v1144_v7, %v5461_v9  ;;  %4252 = vmatpush3.bf16.msra.mxu0 %v4251_v4  ;;  %v1044_v24 = vpop.permute.xlu0 %1043 }
 0x3f6   :  { %4254 = vmatprep.subr.bf16.mxu0 %v4253_v33  ;;  %v1067_v49 = vsel %vm934_vm3, %v1020_v12, %v1044_v24  ;;  %v4285_v33 = vpack.c.bf16 %v5254_v54, %v5226_v5  ;;  %v1229_v12 = vld [vmem:[%s7653_s3 + $0x50] sm:$0xff]  ;;  %v4289_v54 = vpack.c.bf16 %v5304_v46, %v5276_v23 }
 0x3f7   :  { %v1022_v6 = vpop.permute.xlu1 %1021  ;;  %v4277_v1 = vpack.c.bf16 %v1152_v15, %v1151_v56  ;;  %v1075_v38 = vmul.f32 %v1067_v49, %v5436_v50  ;;  %v1235_v56 = vld [vmem:[%s7653_s3 + $0x80] sm:$0xff]  ;;  %v1265_v49 = vld [vmem:[%s7653_s3 + $0x170] sm:$0xff] }
 0x3f9   :  { %4256 = vmatpush3.bf16.msra.mxu0 %v4255_v8  ;;  %4278 = vmatprep.subr.bf16.mxu1 %v4277_v1  ;;  %v1024_v25 = vpop.permute.xlu0 %1023  ;;  %v1240_v1 = vld [vmem:[%s7653_s3 + $0xa8] sm:$0xff] }
 0x3fa   :  { %4258 = vmatprep.subr.bf16.mxu0 %v4257_v29  ;;  %4280 = vmatpush3.bf16.msra.mxu1 %v4279_v22 }
 0x3fb   :  { %v1046_v61 = vpop.permute.xlu1 %1045 }
 0x3fc   :  { %v1068_v55 = vsel %vm934_vm3, %v1022_v6, %v1046_v61 }
 0x3fd   :  { %4260 = vmatpush3.bf16.msra.mxu0 %v7767_v34  ;;  %v1048_v53 = vpop.permute.xlu0 %1047  ;;  %v1076_v59 = vmul.f32 %v1068_v55, %v5436_v50  ;;  %v4297_v34 = vpack.c.bf16 %v5411_v48, %v5374_v52  ;;  %v1249_v48 = vld [vmem:[%s7653_s3 + $0xf0] sm:$0xff] }
 0x3fe   :  { %4262 = vmatprep.subr.bf16.mxu0 %v4261_v30 }
 0x3ff   :  { %v1026_v8 = vpop.permute.xlu1 %1025  ;;  %v4287_v15 = vpack.c.bf16 %v1076_v59, %v1075_v38  ;;  %v1232_v59 = vld [vmem:[%s7653_s3 + $0x68] sm:$0xff] }
 0x401   :  { %4264 = vmatpush3.bf16.msra.mxu0 %v7768_v36  ;;  %v1028_v40 = vpop.permute.xlu0 %1027  ;;  %v1255_v36 = vld [vmem:[%s7653_s3 + $0x120] sm:$0xff] }
 0x402   :  { %4266 = vmatprep.subr.bf16.mxu0 %v4265_v14 }
 0x403   :  { %v1106_v47 = vpop.permute.xlu1 %1105 }
 0x405   :  { %4268 = vmatpush3.bf16.msra.mxu0 %v7769_v62  ;;  %v1052_v10 = vpop.permute.xlu0 %1051 }
 0x406   :  { %v1071_v6 = vsel %vm934_vm3, %v1028_v40, %v1052_v10  ;;  %v1254_v10 = vld [vmem:[%s7653_s3 + $0x118] sm:$0xff] }
 0x407   :  { %v1130_v27 = vpop.permute.xlu1 %1129  ;;  %v1079_v23 = vmul.f32 %v1071_v6, %v5436_v50  ;;  %v1242_v6 = vld [vmem:[%s7653_s3 + $0xb8] sm:$0xff] }
 0x408   :  { %v1146_v0 = vsel %vm865_vm4, %v1106_v47, %v1130_v27  ;;  %1413 = vmatmul.mubr.f32.vlgmr.msra.gmra.mrb[16].mxu0 %v1219_v43  ;;  %v1221_v43 = vld [vmem:[%s7653_s3 + $0x10] sm:$0xff]  ;;  %v1227_v27 = vld [vmem:[%s7653_s3 + $0x40] sm:$0xff] }
 0x409   :  { %v1154_v44 = vmul.f32 %v1146_v0, %v5461_v9  ;;  %v1032_v32 = vpop.permute.xlu0 %1031  ;;  %1417 = vmatprep.mubr.f32.mxu0 %v1225_v63  ;;  %v4283_v9 = vpack.c.bf16 %v5162_v39, %v5144_v35  ;;  %v1069_v35 = vsel %vm934_vm3, %v1024_v25, %v1048_v53  ;;  %v4293_v25 = vpack.c.bf16 %v5352_v51, %v5326_v42  ;;  %v1244_v42 = vld [vmem:[%s7653_s3 + $0xc8] sm:$0xff]  ;;  %v1250_v53 = vld [vmem:[%s7653_s3 + $0xf8] sm:$0xff] }
 0x40a   :  { %v1077_v17 = vmul.f32 %v1069_v35, %v5436_v50  ;;  %v1260_v63 = vld [vmem:[%s7653_s3 + $0x148] sm:$0xff] }
 0x40b   :  { %v1050_v60 = vpop.permute.xlu1 %1049  ;;  %v4281_v4 = vpack.c.bf16 %v1154_v44, %v1153_v2 }
 0x40c   :  { %1418 = vmatmul.mubr.f32.gmra.mrb[18].mxu0 %v1224_v16  ;;  %v1070_v58 = vsel %vm934_vm3, %v1026_v8, %v1050_v60  ;;  %v1259_v16 = vld [vmem:[%s7653_s3 + $0x140] sm:$0xff] }
 0x40d   :  { %4282 = vmatprep.subr.bf16.mxu1 %v4281_v4  ;;  %v1056_v7 = vpop.permute.xlu0 %1055  ;;  %1422 = vmatprep.mubr.f32.mxu0 %v1230_v21  ;;  %v1078_v24 = vmul.f32 %v1070_v58, %v5436_v50  ;;  %v1226_v21 = vld [vmem:[%s7653_s3 + $0x38] sm:$0xff]  ;;  %v1231_v58 = vld [vmem:[%s7653_s3 + $0x60] sm:$0xff] }
 0x40e   :  { %4284 = vmatpush3.bf16.msra.mxu1 %v4283_v9  ;;  %v1073_v51 = vsel %vm934_vm3, %v1032_v32, %v1056_v7  ;;  %v1264_v9 = vld [vmem:[%s7653_s3 + $0x168] sm:$0xff] }
 0x40f   :  { %v1030_v39 = vpop.permute.xlu1 %1029  ;;  %4286 = vmatprep.subr.bf16.mxu1 %v4285_v33  ;;  %v4291_v29 = vpack.c.bf16 %v1078_v24, %v1077_v17  ;;  %v1081_v14 = vmul.f32 %v1073_v51, %v5436_v50  ;;  %v1270_v33 = vld [vmem:[%s7653_s3 + $0x198] sm:$0xff]  ;;  %v1269_v24 = vld [vmem:[%s7653_s3 + $0x190] sm:$0xff] }
 0x410   :  { %1423 = vmatmul.mubr.f32.gmra.mrb[20].mxu0 %v1229_v12  ;;  %v1237_v12 = vld [vmem:[%s7653_s3 + $0x90] sm:$0xff] }
 0x411   :  { %v1156_v5 = vpop.permute.xlu0 %1155  ;;  %1427 = vmatprep.mubr.f32.mxu0 %v1235_v56 }
 0x412   :  { %4288 = vmatpush3.bf16.msra.mxu1 %v4287_v15 }
 0x413   :  { %v1054_v19 = vpop.permute.xlu1 %1053  ;;  %4290 = vmatprep.subr.bf16.mxu1 %v4289_v54  ;;  %v1275_v54 = vld [vmem:[%s7653_s3 + $0x1c0] sm:$0xff] }
 0x414   :  { %v1072_v22 = vsel %vm934_vm3, %v1030_v39, %v1054_v19  ;;  %1428 = vmatmul.mubr.f32.gmra.mrb[22].mxu0 %v1234_v13  ;;  %v1274_v19 = vld [vmem:[%s7653_s3 + $0x1b8] sm:$0xff] }
 0x415   :  { %v1080_v46 = vmul.f32 %v1072_v22, %v5436_v50  ;;  %v1180_v18 = vpop.permute.xlu0 %1179  ;;  %1432 = vmatprep.mubr.f32.mxu0 %v1240_v1 }
 0x416   :  { %4292 = vmatpush3.bf16.msra.mxu1 %v4291_v29  ;;  %v1203_v20 = vsel %vm934_vm3, %v1156_v5, %v1180_v18  ;;  %v1236_v5 = vld [vmem:[%s7653_s3 + $0x88] sm:$0xff]  ;;  %v1241_v29 = vld [vmem:[%s7653_s3 + $0xb0] sm:$0xff] }
 0x417   :  { %v4295_v61 = vpack.c.bf16 %v1080_v46, %v1079_v23  ;;  %v1034_v26 = vpop.permute.xlu1 %1033  ;;  %4294 = vmatprep.subr.bf16.mxu1 %v4293_v25  ;;  %v1211_v55 = vmul.f32 %v1203_v20, %v5436_v50  ;;  %v1280_v23 = vld [vmem:[%s7653_s3 + $0x1e8] sm:$0xff]  ;;  %v1247_v46 = vld [vmem:[%s7653_s3 + $0xe0] sm:$0xff] }
 0x418   :  { %1433 = vmatmul.mubr.f32.gmra.mrb[24].mxu0 %v1239_v45  ;;  %v1295_v20 = vld [vmem:[%s7653_s3 + $0x260] sm:$0xff] }
 0x419   :  { %v1160_v30 = vpop.permute.xlu0 %1159  ;;  %1437 = vmatprep.mubr.f32.mxu0 %v1245_v3 }
 0x41a   :  { %4296 = vmatpush3.bf16.msra.mxu1 %v4295_v61  ;;  %v1279_v61 = vld [vmem:[%s7653_s3 + $0x1e0] sm:$0xff] }
 0x41b   :  { %v1058_v37 = vpop.permute.xlu1 %1057  ;;  %4298 = vmatprep.subr.bf16.mxu1 %v4297_v34 }
 0x41c   :  { %v1074_v8 = vsel %vm934_vm3, %v1034_v26, %v1058_v37  ;;  %1438 = vmatmul.mubr.f32.gmra.mrb[26].mxu0 %v1244_v42  ;;  %v1246_v26 = vld [vmem:[%s7653_s3 + $0xd8] sm:$0xff]  ;;  %v1284_v37 = vld [vmem:[%s7653_s3 + $0x208] sm:$0xff] }
 0x41d   :  { %v1082_v52 = vmul.f32 %v1074_v8, %v5436_v50  ;;  %1442 = vmatprep.mubr.f32.mxu0 %v1250_v53  ;;  %v1184_v47 = vpop.permute.xlu0 %1183  ;;  %v1252_v53 = vld [vmem:[%s7653_s3 + $0x108] sm:$0xff]  ;;  %v1251_v8 = vld [vmem:[%s7653_s3 + $0x100] sm:$0xff] }
 0x41e   :  { %v1205_v7 = vsel %vm934_vm3, %v1160_v30, %v1184_v47  ;;  %v1285_v30 = vld [vmem:[%s7653_s3 + $0x210] sm:$0xff] }
 0x41f   :  { %v4299_v40 = vpack.c.bf16 %v1082_v52, %v1081_v14  ;;  %v1158_v62 = vpop.permute.xlu1 %1157  ;;  %v1213_v39 = vmul.f32 %v1205_v7, %v5436_v50  ;;  %v1290_v52 = vld [vmem:[%s7653_s3 + $0x238] sm:$0xff] }
 0x420   :  { %1443 = vmatmul.mubr.f32.gmra.mrb[28].mxu0 %v1249_v48  ;;  %v1257_v48 = vld [vmem:[%s7653_s3 + $0x130] sm:$0xff]  ;;  %v1282_v7 = vld [vmem:[%s7653_s3 + $0x1f8] sm:$0xff] }
 0x421   :  { %4300 = vmatpush3.bf16.msra.mxu1 %v4299_v40  ;;  %1447 = vmatprep.mubr.f32.mxu0 %v1255_v36  ;;  %v1164_v44 = vpop.permute.xlu0 %1163 }
 0x423   :  { %v1182_v0 = vpop.permute.xlu1 %1181 }
 0x424   :  { %v1204_v2 = vsel %vm934_vm3, %v1158_v62, %v1182_v0  ;;  %1448 = vmatmul.mubr.f32.gmra.mrb[30].mxu0 %v1254_v10  ;;  %1558 = vmatmul.mubr.f32.vlgmr.msra.gmra.mrb[16].mxu1 %v1221_v43  ;;  %v1289_v10 = vld [vmem:[%s7653_s3 + $0x230] sm:$0xff]  ;;  %v1256_v43 = vld [vmem:[%s7653_s3 + $0x128] sm:$0xff] }
 0x425   :  { %v1212_v32 = vmul.f32 %v1204_v2, %v5436_v50  ;;  %1452 = vmatprep.mubr.f32.mxu0 %v1260_v63  ;;  %1562 = vmatprep.mubr.f32.mxu1 %v1227_v27  ;;  %v1188_v38 = vpop.permute.xlu0 %1187  ;;  %v1262_v27 = vld [vmem:[%s7653_s3 + $0x158] sm:$0xff]  ;;  %v1261_v0 = vld [vmem:[%s7653_s3 + $0x150] sm:$0xff]  ;;  %v1267_v2 = vld [vmem:[%s7653_s3 + $0x180] sm:$0xff] }
 0x426   :  { %v1207_v22 = vsel %vm934_vm3, %v1164_v44, %v1188_v38  ;;  %v1266_v44 = vld [vmem:[%s7653_s3 + $0x178] sm:$0xff] }
 0x427   :  { %v1162_v60 = vpop.permute.xlu1 %1161  ;;  %v4301_v4 = vpack.c.bf16 %v1212_v32, %v1211_v55  ;;  %v1215_v45 = vmul.f32 %v1207_v22, %v5436_v50  ;;  %v1223_v55 = vld [vmem:[%s7653_s3 + $0x20] sm:$0xff]  ;;  %v1228_v32 = vld [vmem:[%s7653_s3 + $0x48] sm:$0xff]  ;;  %v1258_v38 = vld [vmem:[%s7653_s3 + $0x138] sm:$0xff] }
 0x428   :  { %1453 = vmatmul.mubr.f32.gmra.mrb[32].mxu0 %v1259_v16  ;;  %1563 = vmatmul.mubr.f32.gmra.mrb[18].mxu1 %v1226_v21  ;;  %v1272_v16 = vld [vmem:[%s7653_s3 + $0x1a8] sm:$0xff]  ;;  %v1233_v21 = vld [vmem:[%s7653_s3 + $0x70] sm:$0xff]  ;;  %v1298_v22 = vld [vmem:[%s7653_s3 + $0x278] sm:$0xff] }
 0x429   :  { %4302 = vmatprep.subr.bf16.mxu0 %v4301_v4  ;;  %1457 = vmatprep.mubr.f32.mxu0 %v1265_v49  ;;  %v1168_v1 = vpop.permute.xlu0 %1167  ;;  %v1271_v49 = vld [vmem:[%s7653_s3 + $0x1a0] sm:$0xff] }
 0x42a   :  { %4304 = vmatpush3.bf16.msra.mxu0 %v4301_v4  ;;  %1567 = vmatprep.mubr.f32.mxu1 %v1232_v59  ;;  %v1277_v4 = vld [vmem:[%s7653_s3 + $0x1d0] sm:$0xff]  ;;  %v1243_v59 = vld [vmem:[%s7653_s3 + $0xc0] sm:$0xff] }
 0x42b   :  { %v1186_v56 = vpop.permute.xlu1 %1185 }
 0x42c   :  { %v1206_v35 = vsel %vm934_vm3, %v1162_v60, %v1186_v56  ;;  %1458 = vmatmul.mubr.f32.gmra.mrb[34].mxu0 %v1264_v9  ;;  %1568 = vmatmul.mubr.f32.gmra.mrb[20].mxu1 %v1231_v58  ;;  %v1238_v60 = vld [vmem:[%s7653_s3 + $0x98] sm:$0xff]  ;;  %v1276_v9 = vld [vmem:[%s7653_s3 + $0x1c8] sm:$0xff]  ;;  %v1287_v56 = vld [vmem:[%s7653_s3 + $0x220] sm:$0xff] }
 0x42d   :  { %v1214_v15 = vmul.f32 %v1206_v35, %v5436_v50  ;;  %1462 = vmatprep.mubr.f32.mxu0 %v1270_v33  ;;  %1572 = vmatprep.mubr.f32.mxu1 %v1237_v12  ;;  %v1192_v34 = vpop.permute.xlu0 %1191  ;;  %v1248_v58 = vld [vmem:[%s7653_s3 + $0xe8] sm:$0xff]  ;;  %v1253_v33 = vld [vmem:[%s7653_s3 + $0x110] sm:$0xff]  ;;  %v1263_v35 = vld [vmem:[%s7653_s3 + $0x160] sm:$0xff] }
 0x42e   :  { %v1209_v14 = vsel %vm934_vm3, %v1168_v1, %v1192_v34  ;;  %v1281_v12 = vld [vmem:[%s7653_s3 + $0x1f0] sm:$0xff]  ;;  %v1296_v1 = vld [vmem:[%s7653_s3 + $0x268] sm:$0xff] }
 0x42f   :  { %v1166_v13 = vpop.permute.xlu1 %1165  ;;  %v4305_v17 = vpack.c.bf16 %v1214_v15, %v1213_v39  ;;  %v1217_v47 = vmul.f32 %v1209_v14, %v5436_v50  ;;  %v1286_v39 = vld [vmem:[%s7653_s3 + $0x218] sm:$0xff]  ;;  %v1268_v15 = vld [vmem:[%s7653_s3 + $0x188] sm:$0xff] }
 0x430   :  { %1463 = vmatmul.mubr.f32.gmra.mrb[36].mxu0 %v1269_v24  ;;  %1573 = vmatmul.mubr.f32.gmra.mrb[22].mxu1 %v1236_v5  ;;  %v1292_v24 = vld [vmem:[%s7653_s3 + $0x248] sm:$0xff]  ;;  %v1273_v5 = vld [vmem:[%s7653_s3 + $0x1b0] sm:$0xff] }
 0x431   :  { %4306 = vmatprep.subr.bf16.mxu0 %v4305_v17  ;;  %1467 = vmatprep.mubr.f32.mxu0 %v1275_v54  ;;  %v1291_v54 = vld [vmem:[%s7653_s3 + $0x240] sm:$0xff] }
 0x432   :  { %4308 = vmatpush3.bf16.msra.mxu0 %v4305_v17  ;;  %1577 = vmatprep.mubr.f32.mxu1 %v1242_v6  ;;  %v1297_v17 = vld [vmem:[%s7653_s3 + $0x270] sm:$0xff]  ;;  %v1283_v6 = vld [vmem:[%s7653_s3 + $0x200] sm:$0xff] }
 0x433   :  { %v1190_v18 = vpop.permute.xlu1 %1189 }
 0x434   :  { %v1208_v25 = vsel %vm934_vm3, %v1166_v13, %v1190_v18  ;;  %1468 = vmatmul.mubr.f32.gmra.mrb[38].mxu0 %v1274_v19  ;;  %1578 = vmatmul.mubr.f32.gmra.mrb[24].mxu1 %v1241_v29  ;;  %v1278_v13 = vld [vmem:[%s7653_s3 + $0x1d8] sm:$0xff]  ;;  %v1288_v19 = vld [vmem:[%s7653_s3 + $0x228] sm:$0xff]  ;;  %v1293_v29 = vld [vmem:[%s7653_s3 + $0x250] sm:$0xff] }
 0x435   :  { %v1216_v3 = vmul.f32 %v1208_v25, %v5436_v50  ;;  %1472 = vmatprep.mubr.f32.mxu0 %v1280_v23  ;;  %1582 = vmatprep.mubr.f32.mxu1 %v1247_v46  ;;  %v5881_v23 = vld [vmem:[%s7654_s4 + $0x8] sm:$0xff]  ;;  %v5887_v46 = vld [vmem:[%s7654_s4] sm:$0xff]  ;;  %v5893_v18 = vld [vmem:[%s7654_s4 + $0x10] sm:$0xff] }
 0x436   :  { %1855 = vperm.xlu1 %4455, %v5881_v23   ;;  %1850 = vperm.xlu0 %4454, %v5887_v46   ;;  %v5899_v25 = vld [vmem:[%s7654_s4 + $0x18] sm:$0xff]  ;;  %s4547_s4 = smov 32  }
 0x437   :  { %v1170_v42 = vpop.permute.xlu1 %1169  ;;  %v4309_v51 = vpack.c.bf16 %v1216_v3, %v1215_v45  ;;  %v7770_v45 = vmov 1  }
 0x438   :  { %1473 = vmatmul.mubr.f32.gmra.mrb[40].mxu0 %v1279_v61  ;;  %1583 = vmatmul.mubr.f32.gmra.mrb[26].mxu1 %v1246_v26 }
 0x439   :  { %4310 = vmatprep.subr.bf16.mxu0 %v4309_v51  ;;  %1477 = vmatprep.mubr.f32.mxu0 %v1285_v30 }
 0x43a   :  { %4312 = vmatpush3.bf16.msra.mxu0 %v4309_v51  ;;  %1587 = vmatprep.mubr.f32.mxu1 %v1252_v53 }
 0x43b   :  { %v1194_v36 = vpop.permute.xlu1 %1193  ;;  %1860 = vperm.xlu1 %4455, %v5893_v18   ;;  %1865 = vperm.xlu0 %4454, %v5899_v25  }
 0x43c   :  { %v1210_v40 = vsel %vm934_vm3, %v1170_v42, %v1194_v36  ;;  %1478 = vmatmul.mubr.f32.gmra.mrb[42].mxu0 %v1284_v37  ;;  %1588 = vmatmul.mubr.f32.gmra.mrb[28].mxu1 %v1251_v8 }
 0x43d   :  { %v1218_v62 = vmul.f32 %v1210_v40, %v5436_v50  ;;  %1482 = vmatprep.mubr.f32.mxu0 %v1290_v52  ;;  %1592 = vmatprep.mubr.f32.mxu1 %v1257_v48  ;;  %v1294_v50 = vld [vmem:[%s7653_s3 + $0x258] sm:$0xff] }
 0x43f   :  { %v4313_v63 = vpack.c.bf16 %v1218_v62, %v1217_v47  ;;  %4456 = vset.pattern.permute.xlu1 %v7770_v45  ;;  %4457 = vset.pattern.permute.xlu0 %v7770_v45 }
 0x440   :  { %1483 = vmatmul.mubr.f32.gmra.mrb[44].mxu0 %v1289_v10  ;;  %1593 = vmatmul.mubr.f32.gmra.mrb[30].mxu1 %v1256_v43 }
 0x441   :  { %4314 = vmatprep.subr.bf16.mxu0 %v4313_v63  ;;  %1487 = vmatprep.mubr.f32.mxu0 %v1295_v20 }
 0x442   :  { %4316 = vmatpush3.bf16.msra.mxu0 %v4313_v63  ;;  %1597 = vmatprep.mubr.f32.mxu1 %v1262_v27 }
 0x444   :  { %1488 = vmatmul.mubr.f32.gmra.mrb[46].mxu0 %v1294_v50  ;;  %1598 = vmatmul.mubr.f32.gmra.mrb[32].mxu1 %v1261_v0 }
 0x445   :  { %1602 = vmatprep.mubr.f32.mxu1 %v1267_v2  ;;  %4129 = vmatprep.mubr.msk.f32.mxu0 %vm1299_vm5, %v1223_v55 }
 0x448   :  { %1603 = vmatmul.mubr.f32.gmra.mrb[34].mxu1 %v1266_v44  ;;  %4130 = vmatmul.mubr.msk.f32.vlgmr.msra.gmra.mrb[48].mxu0 %vm1299_vm5, %v1228_v32 }
 0x449   :  { %1607 = vmatprep.mubr.f32.mxu1 %v1272_v16  ;;  %4132 = vmatprep.mubr.msk.f32.mxu0 %vm1299_vm5, %v1233_v21 }
 0x44c   :  { %1608 = vmatmul.mubr.f32.gmra.mrb[36].mxu1 %v1271_v49  ;;  %4133 = vmatmul.mubr.msk.f32.gmra.mrb[50].mxu0 %vm1299_vm5, %v1238_v60 }
 0x44d   :  { %1612 = vmatprep.mubr.f32.mxu1 %v1277_v4  ;;  %4135 = vmatprep.mubr.msk.f32.mxu0 %vm1299_vm5, %v1243_v59 }
 0x450   :  { %1613 = vmatmul.mubr.f32.gmra.mrb[38].mxu1 %v1276_v9  ;;  %4136 = vmatmul.mubr.msk.f32.gmra.mrb[52].mxu0 %vm1299_vm5, %v1248_v58 }
 0x451   :  { %1617 = vmatprep.mubr.f32.mxu1 %v1282_v7  ;;  %4138 = vmatprep.mubr.msk.f32.mxu0 %vm1299_vm5, %v1253_v33 }
 0x454   :  { %1618 = vmatmul.mubr.f32.gmra.mrb[40].mxu1 %v1281_v12  ;;  %4139 = vmatmul.mubr.msk.f32.gmra.mrb[54].mxu0 %vm1299_vm5, %v1258_v38 }
 0x455   :  { %1622 = vmatprep.mubr.f32.mxu1 %v1287_v56  ;;  %4141 = vmatprep.mubr.msk.f32.mxu0 %vm1299_vm5, %v1263_v35 }
 0x458   :  { %1623 = vmatmul.mubr.f32.gmra.mrb[42].mxu1 %v1286_v39  ;;  %4142 = vmatmul.mubr.msk.f32.gmra.mrb[56].mxu0 %vm1299_vm5, %v1268_v15 }
 0x459   :  { %1627 = vmatprep.mubr.f32.mxu1 %v1292_v24  ;;  %4144 = vmatprep.mubr.msk.f32.mxu0 %vm1299_vm5, %v1273_v5 }
 0x45c   :  { %1628 = vmatmul.mubr.f32.gmra.mrb[44].mxu1 %v1291_v54  ;;  %4145 = vmatmul.mubr.msk.f32.gmra.mrb[58].mxu0 %vm1299_vm5, %v1278_v13 }
 0x45d   :  { %1632 = vmatprep.mubr.f32.mxu1 %v1297_v17  ;;  %4147 = vmatprep.mubr.msk.f32.mxu0 %vm1299_vm5, %v1283_v6 }
 0x460   :  { %1633 = vmatmul.mubr.f32.gmra.mrb[46].mxu1 %v1296_v1  ;;  %4148 = vmatmul.mubr.msk.f32.gmra.mrb[60].mxu0 %vm1299_vm5, %v1288_v19 }
 0x461   :  { %4150 = vmatprep.mubr.msk.f32.mxu0 %vm1299_vm5, %v1293_v29 }
 0x464   :  { %4151 = vmatmul.mubr.msk.f32.gmra.mrb[62].mxu0 %vm1299_vm5, %v1298_v22 }
 0x4db   :  { %v3893_v3 = vpop.f32.mrb[16].mxu0 }
 0x4dc   :  { %v3894_v61 = vpop.f32.mrb[17].mxu0 }
 0x4dd   :  { %v3895_v26 = vadd.f32 %v3894_v61, %v3893_v3 }
 0x4df   :  { %v3896_v30 = vpop.f32.mrb[18].mxu0 }
 0x4e0   :  { %v3897_v34 = vpop.f32.mrb[19].mxu0 }
 0x4e1   :  { %v3898_v42 = vadd.f32 %v3897_v34, %v3896_v30 }
 0x4e3   :  { %v3899_v51 = vpop.f32.mrb[20].mxu0 }
 0x4e4   :  { %v3900_v53 = vpop.f32.mrb[21].mxu0 }
 0x4e5   :  { %v3901_v37 = vadd.f32 %v3900_v53, %v3899_v51 }
 0x4e7   :  { %v3902_v8 = vpop.f32.mrb[22].mxu0 }
 0x4e8   :  { %v3903_v14 = vpop.f32.mrb[23].mxu0 }
 0x4e9   :  { %v3904_v52 = vadd.f32 %v3903_v14, %v3902_v8 }
 0x4eb   :  { %v3905_v48 = vpop.f32.mrb[24].mxu0 }
 0x4ec   :  { %v3906_v36 = vpop.f32.mrb[25].mxu0 }
 0x4ed   :  { %v3907_v40 = vadd.f32 %v3906_v36, %v3905_v48 }
 0x4ef   :  { %v3908_v47 = vpop.f32.mrb[26].mxu0 }
 0x4f0   :  { %v3909_v62 = vpop.f32.mrb[27].mxu0 }
 0x4f1   :  { %v3910_v10 = vadd.f32 %v3909_v62, %v3908_v47 }
 0x4f3   :  { %v3911_v43 = vpop.f32.mrb[28].mxu0 }
 0x4f4   :  { %v3912_v20 = vpop.f32.mrb[29].mxu0 }
 0x4f5   :  { %v3913_v63 = vadd.f32 %v3912_v20, %v3911_v43 }
 0x4f7   :  { %v3973_v27 = vpop.f32.mrb[16].mxu1  ;;  %v3914_v50 = vpop.f32.mrb[30].mxu0 }
 0x4f8   :  { %v3974_v0 = vpop.f32.mrb[17].mxu1  ;;  %v3915_v2 = vpop.f32.mrb[31].mxu0 }
 0x4f9   :  { %v3975_v55 = vadd.f32 %v3974_v0, %v3973_v27  ;;  %v3916_v44 = vadd.f32 %v3915_v2, %v3914_v50 }
 0x4fb   :  { %v3976_v32 = vpop.f32.mrb[18].mxu1  ;;  %v3917_v16 = vpop.f32.mrb[32].mxu0  ;;  %v1560_v21 = vadd.f32 %v3975_v55, %v3895_v26 }
 0x4fc   :  { %v3977_v49 = vpop.f32.mrb[19].mxu1  ;;  %v3918_v60 = vpop.f32.mrb[33].mxu0 }
 0x4fd   :  { %v3978_v4 = vadd.f32 %v3977_v49, %v3976_v32  ;;  %v3919_v59 = vadd.f32 %v3918_v60, %v3917_v16 }
 0x4ff   :  { %v3979_v9 = vpop.f32.mrb[20].mxu1  ;;  %v3920_v58 = vpop.f32.mrb[34].mxu0  ;;  %v1565_v7 = vadd.f32 %v3978_v4, %v3898_v42 }
 0x500   :  { %v3980_v33 = vpop.f32.mrb[21].mxu1  ;;  %v3921_v12 = vpop.f32.mrb[35].mxu0 }
 0x501   :  { %v3981_v38 = vadd.f32 %v3980_v33, %v3979_v9  ;;  %v3922_v56 = vadd.f32 %v3921_v12, %v3920_v58 }
 0x503   :  { %v3982_v35 = vpop.f32.mrb[22].mxu1  ;;  %v3923_v39 = vpop.f32.mrb[36].mxu0  ;;  %v1570_v15 = vadd.f32 %v3981_v38, %v3901_v37 }
 0x504   :  { %v3983_v24 = vpop.f32.mrb[23].mxu1  ;;  %v3924_v5 = vpop.f32.mrb[37].mxu0 }
 0x505   :  { %v3984_v54 = vadd.f32 %v3983_v24, %v3982_v35  ;;  %v3925_v13 = vadd.f32 %v3924_v5, %v3923_v39 }
 0x507   :  { %v3985_v17 = vpop.f32.mrb[24].mxu1  ;;  %v3926_v6 = vpop.f32.mrb[38].mxu0  ;;  %v1575_v1 = vadd.f32 %v3984_v54, %v3904_v52 }
 0x508   :  { %v3986_v19 = vpop.f32.mrb[25].mxu1  ;;  %v3927_v29 = vpop.f32.mrb[39].mxu0 }
 0x509   :  { %v3987_v22 = vadd.f32 %v3986_v19, %v3985_v17  ;;  %v3928_v3 = vadd.f32 %v3927_v29, %v3926_v6 }
 0x50b   :  { %v3988_v61 = vpop.f32.mrb[26].mxu1  ;;  %v3929_v26 = vpop.f32.mrb[40].mxu0  ;;  %v1580_v30 = vadd.f32 %v3987_v22, %v3907_v40 }
 0x50c   :  { %v3989_v34 = vpop.f32.mrb[27].mxu1  ;;  %v3930_v42 = vpop.f32.mrb[41].mxu0 }
 0x50d   :  { %v3990_v51 = vadd.f32 %v3989_v34, %v3988_v61  ;;  %v3931_v53 = vadd.f32 %v3930_v42, %v3929_v26 }
 0x50f   :  { %v3991_v8 = vpop.f32.mrb[28].mxu1  ;;  %v3932_v37 = vpop.f32.mrb[42].mxu0  ;;  %v1585_v14 = vadd.f32 %v3990_v51, %v3910_v10 }
 0x510   :  { %v3992_v48 = vpop.f32.mrb[29].mxu1  ;;  %v3933_v36 = vpop.f32.mrb[43].mxu0 }
 0x511   :  { %v3993_v47 = vadd.f32 %v3992_v48, %v3991_v8  ;;  %v5904_v62 = vadd.f32 %v3933_v36, %v3932_v37 }
 0x513   :  { %v3994_v52 = vpop.f32.mrb[30].mxu1  ;;  %v3935_v43 = vpop.f32.mrb[44].mxu0  ;;  %v1590_v20 = vadd.f32 %v3993_v47, %v3913_v63 }
 0x514   :  { %v3995_v27 = vpop.f32.mrb[31].mxu1  ;;  %v3936_v50 = vpop.f32.mrb[45].mxu0 }
 0x515   :  { %v3996_v0 = vadd.f32 %v3995_v27, %v3994_v52  ;;  %v5906_v2 = vadd.f32 %v3936_v50, %v3935_v43 }
 0x517   :  { %v3997_v40 = vpop.f32.mrb[32].mxu1  ;;  %v3938_v55 = vpop.f32.mrb[46].mxu0  ;;  %v1595_v32 = vadd.f32 %v3996_v0, %v3916_v44 }
 0x518   :  { %v3998_v16 = vpop.f32.mrb[33].mxu1  ;;  %v3939_v49 = vpop.f32.mrb[47].mxu0 }
 0x519   :  { %v3999_v60 = vadd.f32 %v3998_v16, %v3997_v40  ;;  %v5908_v10 = vadd.f32 %v3939_v49, %v3938_v55 }
 0x51b   :  { %v4000_v4 = vpop.f32.mrb[34].mxu1  ;;  %v4131_v9 = vpop.f32.mrb[48].mxu0  ;;  %v1600_v58 = vadd.f32 %v3999_v60, %v3919_v59 }
 0x51c   :  { %v5910_v33 = vadd.f32 %v4131_v9, %v1565_v7  ;;  %v4001_v12 = vpop.f32.mrb[35].mxu1  ;;  %v1704_v63 = vpop.f32.mrb[49].mxu0 }
 0x51d   :  { %v4002_v38 = vadd.f32 %v4001_v12, %v4000_v4  ;;  %v5912_v35 = vadd.f32 %v1704_v63, %v1560_v21 }
 0x51f   :  { %v4003_v39 = vpop.f32.mrb[36].mxu1  ;;  %v4134_v24 = vpop.f32.mrb[50].mxu0  ;;  %v1605_v5 = vadd.f32 %v4002_v38, %v3922_v56 }
 0x520   :  { %v5914_v54 = vadd.f32 %v4134_v24, %v1575_v1  ;;  %v4004_v44 = vpop.f32.mrb[37].mxu1  ;;  %v1714_v17 = vpop.f32.mrb[51].mxu0 }
 0x521   :  { %v4005_v6 = vadd.f32 %v4004_v44, %v4003_v39  ;;  %v5916_v19 = vadd.f32 %v1714_v17, %v1570_v15  ;;  %v1856_v44 = vpop.permute.xlu1 %1855 }
 0x523   :  { %v4006_v29 = vpop.f32.mrb[38].mxu1  ;;  %v4137_v22 = vpop.f32.mrb[52].mxu0  ;;  %v1610_v59 = vadd.f32 %v4005_v6, %v3925_v13 }
 0x524   :  { %v1730_v7 = vadd.f32 %v4137_v22, %v1585_v14  ;;  %v4007_v61 = vpop.f32.mrb[39].mxu1  ;;  %v1724_v26 = vpop.f32.mrb[53].mxu0 }
 0x525   :  { %v4008_v34 = vadd.f32 %v4007_v61, %v4006_v29  ;;  %v1725_v42 = vadd.f32 %v1724_v26, %v1580_v30  ;;  %v1861_v6 = vpop.permute.xlu1 %1860 }
 0x526   :  { %1789 = vrot.lane.b32.xlu0 %v1730_v7, %s4547_s4 }
 0x527   :  { %v4009_v21 = vpop.f32.mrb[40].mxu1  ;;  %v4140_v56 = vpop.f32.mrb[54].mxu0  ;;  %1787 = vrot.lane.b32.xlu1 %v1725_v42, %s4547_s4  ;;  %v1615_v1 = vadd.f32 %v4008_v34, %v3928_v3 }
 0x528   :  { %v1740_v51 = vadd.f32 %v4140_v56, %v1595_v32  ;;  %v4010_v8 = vpop.f32.mrb[41].mxu1  ;;  %v1734_v15 = vpop.f32.mrb[55].mxu0 }
 0x529   :  { %v4011_v37 = vadd.f32 %v4010_v8, %v4009_v21  ;;  %v1735_v48 = vadd.f32 %v1734_v15, %v1590_v20 }
 0x52a   :  { %1793 = vrot.lane.b32.xlu0 %v1740_v51, %s4547_s4 }
 0x52b   :  { %v4012_v13 = vpop.f32.mrb[42].mxu1  ;;  %v4143_v14 = vpop.f32.mrb[56].mxu0  ;;  %1791 = vrot.lane.b32.xlu1 %v1735_v48, %s4547_s4  ;;  %v1620_v30 = vadd.f32 %v4011_v37, %v3931_v53 }
 0x52c   :  { %v1750_v36 = vadd.f32 %v4143_v14, %v1605_v5  ;;  %v4013_v47 = vpop.f32.mrb[43].mxu1  ;;  %v1744_v52 = vpop.f32.mrb[57].mxu0 }
 0x52d   :  { %v4014_v43 = vadd.f32 %v4013_v47, %v4012_v13  ;;  %v1745_v27 = vadd.f32 %v1744_v52, %v1600_v58 }
 0x52e   :  { %1805 = vrot.lane.b32.xlu0 %v1750_v36, %s4548_s30 }
 0x52f   :  { %v4015_v3 = vpop.f32.mrb[44].mxu1  ;;  %v4146_v50 = vpop.f32.mrb[58].mxu0  ;;  %1803 = vrot.lane.b32.xlu1 %v1745_v27, %s4548_s30  ;;  %v1625_v20 = vadd.f32 %v4014_v43, %v5904_v62 }
 0x530   :  { %v1760_v0 = vadd.f32 %v4146_v50, %v1615_v1  ;;  %v4016_v40 = vpop.f32.mrb[45].mxu1  ;;  %v1754_v55 = vpop.f32.mrb[59].mxu0 }
 0x531   :  { %v4017_v32 = vadd.f32 %v4016_v40, %v4015_v3  ;;  %v1755_v16 = vadd.f32 %v1754_v55, %v1610_v59 }
 0x532   :  { %1809 = vrot.lane.b32.xlu0 %v1760_v0, %s4548_s30 }
 0x533   :  { %v4018_v53 = vpop.f32.mrb[46].mxu1  ;;  %v4149_v49 = vpop.f32.mrb[60].mxu0  ;;  %1807 = vrot.lane.b32.xlu1 %v1755_v16, %s4548_s30  ;;  %v1630_v60 = vadd.f32 %v4017_v32, %v5906_v2 }
 0x534   :  { %v1770_v4 = vadd.f32 %v4149_v49, %v1625_v20  ;;  %v4019_v9 = vpop.f32.mrb[47].mxu1  ;;  %v1764_v58 = vpop.f32.mrb[61].mxu0 }
 0x535   :  { %v4020_v12 = vadd.f32 %v4019_v9, %v4018_v53  ;;  %v1765_v63 = vadd.f32 %v1764_v58, %v1620_v30  ;;  %v1851_v2 = vpop.permute.xlu0 %1850 }
 0x536   :  { %1821 = vrot.lane.b32.xlu0 %v1770_v4, %s4549_s13 }
 0x537   :  { %v1635_v62 = vadd.f32 %v4020_v12, %v5908_v10  ;;  %v4152_v38 = vpop.f32.mrb[62].mxu0  ;;  %1819 = vrot.lane.b32.xlu1 %v1765_v63, %s4549_s13 }
 0x538   :  { %v1774_v39 = vpop.f32.mrb[63].mxu0 }
 0x539   :  { %v1780_v24 = vadd.f32 %v4152_v38, %v1635_v62  ;;  %v1775_v5 = vadd.f32 %v1774_v39, %v1630_v60  ;;  %v1866_v17 = vpop.permute.xlu0 %1865 }
 0x53b   :  { %1825 = vrot.lane.b32.xlu0 %v1780_v24, %s4549_s13  ;;  %1823 = vrot.lane.b32.xlu1 %v1775_v5, %s4549_s13 }
 0x598   :  { %v1790_v29 = vpop.permute.xlu0 %1789 }
 0x599   :  { %v1788_v22 = vpop.permute.xlu1 %1787  ;;  %v1832_v42 = vsel %vm396_vm0, %v5910_v33, %v1790_v29 }
 0x59a   :  { %v1831_v21 = vsel %vm396_vm0, %v5912_v35, %v1788_v22 }
 0x59c   :  { %v1794_v59 = vpop.permute.xlu0 %1793 }
 0x59d   :  { %v1792_v7 = vpop.permute.xlu1 %1791  ;;  %v1834_v36 = vsel %vm396_vm0, %v5914_v54, %v1794_v59 }
 0x59e   :  { %v1833_v33 = vsel %vm396_vm0, %v5916_v19, %v1792_v7 }
 0x5a0   :  { %v1806_v61 = vpop.permute.xlu0 %1805 }
 0x5a1   :  { %v1804_v10 = vpop.permute.xlu1 %1803  ;;  %v1836_v56 = vsel %vm1299_vm5, %v1832_v42, %v1806_v61 }
 0x5a2   :  { %v1835_v51 = vsel %vm1299_vm5, %v1831_v21, %v1804_v10 }
 0x5a4   :  { %v1810_v26 = vpop.permute.xlu0 %1809 }
 0x5a5   :  { %v1808_v34 = vpop.permute.xlu1 %1807  ;;  %v1838_v52 = vsel %vm1299_vm5, %v1834_v36, %v1810_v26 }
 0x5a6   :  { %v1837_v47 = vsel %vm1299_vm5, %v1833_v33, %v1808_v34 }
 0x5a8   :  { %v1822_v1 = vpop.permute.xlu0 %1821 }
 0x5a9   :  { %v1841_v8 = vsel %vm1839_vm6, %v1836_v56, %v1822_v1  ;;  %v1820_v15 = vpop.permute.xlu1 %1819 }
 0x5aa   :  { %v5940_v37 = vadd.f32 %v1856_v44, %v1841_v8  ;;  %v1840_v48 = vsel %vm1839_vm6, %v1835_v51, %v1820_v15 }
 0x5ab   :  { %v5943_v13 = vadd.f32 %v1851_v2, %v1840_v48 }
 0x5ac   :  { %1874 = vadd.xlane.f32.xlu0 %v5940_v37  ;;  %v1886_v27 = vmul.f32 %v5940_v37, %v5940_v37 }
 0x5ad   :  { %v1824_v35 = vpop.permute.xlu1 %1823  ;;  %1872 = vadd.xlane.f32.xlu1 %v5943_v13  ;;  %v1826_v14 = vpop.permute.xlu0 %1825  ;;  %v1885_v30 = vmul.f32 %v5943_v13, %v5943_v13 }
 0x5ae   :  { %v1842_v43 = vsel %vm1839_vm6, %v1837_v47, %v1824_v35  ;;  %v1843_v19 = vsel %vm1839_vm6, %v1838_v52, %v1826_v14  ;;  %v7771_v14 = vmov 2  }
 0x5af   :  { %v5959_v3 = vadd.f32 %v1861_v6, %v1842_v43  ;;  %v5961_v50 = vadd.f32 %v1866_v17, %v1843_v19 }
 0x5b0   :  { %1889 = vadd.xlane.f32.xlu0 %v1885_v30 }
 0x5b1   :  { %1891 = vadd.xlane.f32.xlu1 %v1886_v27  ;;  %v1887_v54 = vmul.f32 %v5959_v3, %v5959_v3  ;;  %v1888_v20 = vmul.f32 %v5961_v50, %v5961_v50 }
 0x5b4   :  { %1876 = vadd.xlane.f32.xlu0 %v5959_v3 }
 0x5b5   :  { %1878 = vadd.xlane.f32.xlu1 %v5961_v50 }
 0x5b8   :  { %1893 = vadd.xlane.f32.xlu0 %v1887_v54 }
 0x5b9   :  { %1895 = vadd.xlane.f32.xlu1 %v1888_v20  ;;  %v7772_v20 = vmov 0  }
 0x639   :  { %v1875_v0 = vpop.xlane.xlu0 %1874 }
 0x63a   :  { %v1873_v40 = vpop.xlane.xlu1 %1872  ;;  %v1882_v55 = vmul.f32 0.0078125, %v1875_v0 }
 0x63b   :  { %v1881_v32 = vmul.f32 0.0078125, %v1873_v40 }
 0x63c   :  { %v1902_v4 = vmul.f32 %v1882_v55, %v1882_v55 }
 0x63d   :  { %v1901_v16 = vmul.f32 %v1881_v32, %v1881_v32  ;;  %v1890_v53 = vpop.xlane.xlu0 %1889 }
 0x63e   :  { %v1897_v49 = vmul.f32 0.0078125, %v1890_v53  ;;  %v1892_v60 = vpop.xlane.xlu1 %1891 }
 0x63f   :  { %v1898_v9 = vmul.f32 0.0078125, %v1892_v60 }
 0x640   :  { %v1905_v58 = vsub.f32 %v1897_v49, %v1901_v16 }
 0x641   :  { %v1906_v12 = vsub.f32 %v1898_v9, %v1902_v4  ;;  %v1877_v63 = vpop.xlane.xlu0 %1876 }
 0x642   :  { %v1909_v62 = vadd.f32 1e-05, %v1905_v58  ;;  %v1883_v38 = vmul.f32 0.0078125, %v1877_v63  ;;  %v1879_v39 = vpop.xlane.xlu1 %1878 }
 0x643   :  { %v1910_v24 = vadd.f32 1e-05, %v1906_v12  ;;  %v1884_v5 = vmul.f32 0.0078125, %v1879_v39 }
 0x644   :  { %4483 = vrsqrt.f32 %v1909_v62  ;;  %v1903_v44 = vmul.f32 %v1883_v38, %v1883_v38 }
 0x645   :  { %4485 = vrsqrt.f32 %v1910_v24  ;;  %v1894_v2 = vpop.xlane.xlu0 %1893  ;;  %v1904_v29 = vmul.f32 %v1884_v5, %v1884_v5 }
 0x646   :  { %v1899_v17 = vmul.f32 0.0078125, %v1894_v2  ;;  %v1896_v6 = vpop.xlane.xlu1 %1895 }
 0x647   :  { %v1900_v22 = vmul.f32 0.0078125, %v1896_v6 }
 0x648   :  { %v1907_v59 = vsub.f32 %v1899_v17, %v1903_v44 }
 0x649   :  { %v1908_v7 = vsub.f32 %v1900_v22, %v1904_v29 }
 0x64a   :  { %v1911_v61 = vadd.f32 1e-05, %v1907_v59 }
 0x64b   :  { %v1912_v10 = vadd.f32 1e-05, %v1908_v7 }
 0x64c   :  { %4487 = vrsqrt.f32 %v1911_v61 }
 0x64d   :  { %4489 = vrsqrt.f32 %v1912_v10 }
 0x64e   :  { %v4484_v26 = vpop.eup %4483 }
 0x64f   :  { %v4486_v34 = vpop.eup %4485  ;;  %v1917_v42 = vmul.f32 %v4484_v26, %v5887_v46 }
 0x650   :  { %v1918_v21 = vmul.f32 %v4486_v34, %v5881_v23 }
 0x651   :  { %v1945_v56 = vmul.f32 %v1917_v42, %v1881_v32 }
 0x652   :  { %v1946_v1 = vmul.f32 %v1918_v21, %v1882_v55 }
 0x653   :  { %1953 = vrot.lane.b32.xlu0 %v1945_v56, %s4537_s1 }
 0x654   :  { %1955 = vrot.lane.b32.xlu1 %v1946_v1, %s4537_s1 }
 0x656   :  { %v4488_v51 = vpop.eup %4487 }
 0x657   :  { %v4490_v8 = vpop.eup %4489  ;;  %v1919_v15 = vmul.f32 %v4488_v51, %v5893_v18 }
 0x658   :  { %v1920_v48 = vmul.f32 %v4490_v8, %v5899_v25 }
 0x659   :  { %v1947_v33 = vmul.f32 %v1919_v15, %v1883_v38 }
 0x65a   :  { %v1948_v35 = vmul.f32 %v1920_v48, %v1884_v5 }
 0x65b   :  { %1957 = vrot.lane.b32.xlu1 %v1947_v33, %s4537_s1 }
 0x65c   :  { %1959 = vrot.lane.b32.xlu0 %v1948_v35, %s4537_s1 }
 0x65f   :  { %1923 = vperm.xlu1 %4456, %v1917_v42  }
 0x660   :  { %1928 = vperm.xlu0 %4457, %v1918_v21  }
 0x663   :  { %1938 = vperm.xlu1 %4456, %v1920_v48  }
 0x664   :  { %1933 = vperm.xlu0 %4457, %v1919_v15  }
 0x667   :  { %4458 = vset.pattern.permute.xlu1 %v7771_v14 }
 0x668   :  { %4459 = vset.pattern.permute.xlu0 %v7771_v14 }
 0x6c5   :  { %v1954_v47 = vpop.permute.xlu0 %1953 }
 0x6c6   :  { %v1956_v30 = vpop.permute.xlu1 %1955  ;;  %v1965_v52 = vsub.f32 %v5887_v46, %v1954_v47 }
 0x6c7   :  { %v1966_v36 = vsub.f32 %v5881_v23, %v1956_v30 }
 0x6c9   :  { %1976 = vperm.xlu1 %4458, %v1966_v36  }
 0x6cd   :  { %v1958_v43 = vpop.permute.xlu1 %1957  ;;  %1971 = vperm.xlu1 %4458, %v1965_v52  }
 0x6ce   :  { %v1967_v27 = vsub.f32 %v5893_v18, %v1958_v43  ;;  %v1960_v19 = vpop.permute.xlu0 %1959 }
 0x6cf   :  { %v1968_v54 = vsub.f32 %v5899_v25, %v1960_v19 }
 0x6d0   :  { %1981 = vperm.xlu0 %4459, %v1967_v27  }
 0x6d1   :  { %1986 = vperm.xlu1 %4458, %v1968_v54  }
 0x6d4   :  { %4461 = vset.pattern.permute.xlu0 %v7772_v20 }
 0x6d5   :  { %4460 = vset.pattern.permute.xlu1 %v7772_v20 }
 0x6de   :  { %v1924_v0 = vpop.permute.xlu1 %1923 }
 0x6df   :  { %v1929_v40 = vpop.permute.xlu0 %1928  ;;  %v1941_v16 = vmul.f32 %v1924_v0, %v5943_v13 }
 0x6e0   :  { %v1942_v55 = vmul.f32 %v1929_v40, %v5940_v37 }
 0x6e2   :  { %v1939_v23 = vpop.permute.xlu1 %1938 }
 0x6e3   :  { %v1934_v18 = vpop.permute.xlu0 %1933  ;;  %v1944_v25 = vmul.f32 %v1939_v23, %v5961_v50 }
 0x6e4   :  { %v1943_v12 = vmul.f32 %v1934_v18, %v5959_v3  ;;  %v6030_v3 = vld [vmem:[%s7660_s10] sm:$0xff] }
 0x6e5   :  { %v2009_v39 = vrot.slane %v6030_v3, %v5186_v41  ;;  %v2025_v24 = vrot.slane %v6030_v3, %v5206_v57  ;;  %v2053_v10 = vrot.slane %v6030_v3, %v5428_v28  ;;  %v2045_v42 = vrot.slane %v6030_v3, %v5452_v11 }
 0x748   :  { %v1977_v32 = vpop.permute.xlu1 %1976 }
 0x749   :  { %v1990_v46 = vadd.f32 %v1977_v32, %v1942_v55 }
 0x74b   :  { %v1994_v53 = vmax.f32 %v1990_v46, 0.0 }
 0x74c   :  { %v1972_v49 = vpop.permute.xlu1 %1971 }
 0x74d   :  { %v1989_v60 = vadd.f32 %v1972_v49, %v1941_v16  ;;  %2000 = vrot.lane.b32.xlu0 %v1994_v53, %s4548_s30 }
 0x74f   :  { %v1993_v4 = vmax.f32 %v1989_v60, 0.0  ;;  %v1982_v9 = vpop.permute.xlu0 %1981 }
 0x750   :  { %v1987_v58 = vpop.permute.xlu1 %1986  ;;  %v1991_v13 = vadd.f32 %v1982_v9, %v1943_v12  ;;  %v2248_v9 = vld [vmem:[%s7655_s5 + $0x10] sm:$0xff]  ;;  %v6150_v12 = vld [vmem:[%s7656_s6] sm:$0xff] }
 0x751   :  { %v1992_v63 = vadd.f32 %v1987_v58, %v1944_v25  ;;  %1998 = vrot.lane.b32.xlu1 %v1993_v4, %s4548_s30  ;;  %2016 = vrot.lane.b32.xlu0 %v1994_v53, %s4550_s14  ;;  %v4317_v37 = vpack.c.bf16 %v1994_v53, %v1993_v4 }
 0x752   :  { %v5997_v50 = vmax.f32 %v1991_v13, 0.0  ;;  %4161 = vmatprep.mubr.msk.f32.mxu0 %vm396_vm0, %v2248_v9 }
 0x753   :  { %v5992_v62 = vmax.f32 %v1992_v63, 0.0  ;;  %4318 = vmatprep.subr.bf16.mxu1 %v4317_v37  ;;  %v6155_v63 = vld [vmem:[%s7656_s6 + $0x8] sm:$0xff] }
 0x755   :  { %2014 = vrot.lane.b32.xlu1 %v1993_v4, %s4550_s14  ;;  %2004 = vrot.lane.b32.xlu0 %v5992_v62, %s4548_s30 }
 0x759   :  { %2020 = vrot.lane.b32.xlu0 %v5992_v62, %s4550_s14  ;;  %2002 = vrot.lane.b32.xlu1 %v5997_v50, %s4548_s30 }
 0x75d   :  { %2036 = vrot.lane.b32.xlu0 %v1994_v53, %s4551_s0  ;;  %2018 = vrot.lane.b32.xlu1 %v5997_v50, %s4550_s14 }
 0x761   :  { %2040 = vrot.lane.b32.xlu0 %v5992_v62, %s4551_s0  ;;  %2034 = vrot.lane.b32.xlu1 %v1993_v4, %s4551_s0 }
 0x765   :  { %2164 = vrot.lane.b32.xlu0 %v1994_v53, %s4546_s15  ;;  %2162 = vrot.lane.b32.xlu1 %v1993_v4, %s4546_s15 }
 0x769   :  { %2176 = vrot.lane.b32.xlu0 %v1994_v53, %s4549_s13  ;;  %2174 = vrot.lane.b32.xlu1 %v1993_v4, %s4549_s13 }
 0x76d   :  { %2168 = vrot.lane.b32.xlu0 %v5992_v62, %s4546_s15  ;;  %2038 = vrot.lane.b32.xlu1 %v5997_v50, %s4551_s0 }
 0x771   :  { %2180 = vrot.lane.b32.xlu0 %v5992_v62, %s4549_s13  ;;  %2134 = vrot.lane.b32.xlu1 %v1993_v4, %s4547_s4 }
 0x775   :  { %2136 = vrot.lane.b32.xlu0 %v1994_v53, %s4547_s4  ;;  %2146 = vrot.lane.b32.xlu1 %v1993_v4, %s4543_s29  ;;  %v2247_v4 = vld [vmem:[%s7655_s5 + $0x8] sm:$0xff] }
 0x776   :  { %2358 = vmatprep.mubr.f32.mxu1 %v2247_v4 }
 0x779   :  { %2148 = vrot.lane.b32.xlu0 %v1994_v53, %s4543_s29  ;;  %2166 = vrot.lane.b32.xlu1 %v5997_v50, %s4546_s15 }
 0x77d   :  { %2178 = vrot.lane.b32.xlu1 %v5997_v50, %s4549_s13 }
 0x7bf   :  { %v2001_v38 = vpop.permute.xlu0 %2000 }
 0x7c0   :  { %v2011_v44 = vmul.f32 %v2009_v39, %v2001_v38  ;;  %v2055_v1 = vmul.f32 %v2053_v10, %v2001_v38 }
 0x7c3   :  { %v1999_v5 = vpop.permute.xlu1 %1998  ;;  %v2017_v2 = vpop.permute.xlu0 %2016 }
 0x7c4   :  { %v2027_v17 = vmul.f32 %v2025_v24, %v2017_v2  ;;  %v2010_v59 = vmul.f32 %v2009_v39, %v1999_v5  ;;  %v2054_v43 = vmul.f32 %v2053_v10, %v1999_v5 }
 0x7c6   :  { %v6036_v6 = vadd.f32 %v2027_v17, %v2011_v44 }
 0x7c7   :  { %v2015_v29 = vpop.permute.xlu1 %2014  ;;  %v2005_v22 = vpop.permute.xlu0 %2004 }
 0x7c8   :  { %v2026_v7 = vmul.f32 %v2025_v24, %v2015_v29  ;;  %2064 = vrot.lane.b32.xlu0 %v6036_v6, %s4547_s4  ;;  %v2013_v15 = vmul.f32 %v2009_v39, %v2005_v22  ;;  %v2057_v16 = vmul.f32 %v2053_v10, %v2005_v22  ;;  %v6170_v22 = vsub.s32 5, %v5183_v31 }
 0x7ca   :  { %v6040_v61 = vadd.f32 %v2026_v7, %v2010_v59 }
 0x7cb   :  { %v2003_v26 = vpop.permute.xlu1 %2002  ;;  %v2021_v34 = vpop.permute.xlu0 %2020 }
 0x7cc   :  { %2062 = vrot.lane.b32.xlu1 %v6040_v61, %s4547_s4  ;;  %2080 = vrot.lane.b32.xlu0 %v6036_v6, %s4543_s29  ;;  %v2029_v56 = vmul.f32 %v2025_v24, %v2021_v34  ;;  %v2012_v48 = vmul.f32 %v2009_v39, %v2003_v26  ;;  %v2056_v53 = vmul.f32 %v2053_v10, %v2003_v26 }
 0x7cd   :  { %v6177_v10 = vrot.slane %v6030_v3, %v6170_v22 }
 0x7ce   :  { %v6054_v30 = vadd.f32 %v2029_v56, %v2013_v15 }
 0x7cf   :  { %v2019_v51 = vpop.permute.xlu1 %2018  ;;  %v2037_v8 = vpop.permute.xlu0 %2036 }
 0x7d0   :  { %v2028_v33 = vmul.f32 %v2025_v24, %v2019_v51  ;;  %v2047_v35 = vmul.f32 %v2045_v42, %v2037_v8  ;;  %2078 = vrot.lane.b32.xlu1 %v6040_v61, %s4543_s29 }
 0x7d2   :  { %v6056_v36 = vadd.f32 %v2028_v33, %v2012_v48  ;;  %v6058_v47 = vadd.f32 %v2055_v1, %v2047_v35  ;;  %v4321_v35 = vpack.c.bf16 %v5992_v62, %v5997_v50 }
 0x7d3   :  { %v2035_v52 = vpop.permute.xlu1 %2034  ;;  %v2041_v23 = vpop.permute.xlu0 %2040 }
 0x7d4   :  { %v2046_v27 = vmul.f32 %v2045_v42, %v2035_v52  ;;  %2192 = vrot.lane.b32.xlu0 %v6058_v47, %s4547_s4  ;;  %v2049_v32 = vmul.f32 %v2045_v42, %v2041_v23 }
 0x7d6   :  { %v6064_v54 = vadd.f32 %v2054_v43, %v2046_v27  ;;  %v6084_v49 = vadd.f32 %v2057_v16, %v2049_v32  ;;  %v6190_v16 = vsub.s32 7, %v5183_v31 }
 0x7d7   :  { %v6066_v0 = vpop.permute.xlu1 %2162  ;;  %v2165_v58 = vpop.permute.xlu0 %2164 }
 0x7d8   :  { %2190 = vrot.lane.b32.xlu1 %v6064_v54, %s4547_s4  ;;  %2204 = vrot.lane.b32.xlu0 %v6058_v47, %s4543_s29  ;;  %v6197_v9 = vrot.slane %v6030_v3, %v6190_v16 }
 0x7db   :  { %v6074_v55 = vpop.permute.xlu1 %2174  ;;  %v2177_v37 = vpop.permute.xlu0 %2176 }
 0x7dc   :  { %2202 = vrot.lane.b32.xlu1 %v6064_v54, %s4543_s29  ;;  %2100 = vrot.lane.b32.xlu0 %v6036_v6, %s4546_s15 }
 0x7df   :  { %v2039_v46 = vpop.permute.xlu1 %2038  ;;  %v2169_v13 = vpop.permute.xlu0 %2168 }
 0x7e0   :  { %v2048_v18 = vmul.f32 %v2045_v42, %v2039_v46  ;;  %2098 = vrot.lane.b32.xlu1 %v6040_v61, %s4546_s15  ;;  %2116 = vrot.lane.b32.xlu0 %v6036_v6, %s4549_s13 }
 0x7e2   :  { %v6086_v60 = vadd.f32 %v2056_v53, %v2048_v18  ;;  %v6193_v53 = vsub.s32 6, %v5183_v31 }
 0x7e3   :  { %v6161_v38 = vpop.permute.xlu1 %2134  ;;  %v2181_v39 = vpop.permute.xlu0 %2180 }
 0x7e4   :  { %2114 = vrot.lane.b32.xlu1 %v6040_v61, %s4549_s13  ;;  %2068 = vrot.lane.b32.xlu0 %v6054_v30, %s4547_s4 }
 0x7e7   :  { %v6163_v24 = vpop.permute.xlu1 %2146  ;;  %v6165_v5 = vpop.permute.xlu0 %2136 }
 0x7e8   :  { %2066 = vrot.lane.b32.xlu1 %v6056_v36, %s4547_s4  ;;  %2084 = vrot.lane.b32.xlu0 %v6054_v30, %s4543_s29 }
 0x7eb   :  { %v2167_v2 = vpop.permute.xlu1 %2166  ;;  %v6167_v44 = vpop.permute.xlu0 %2148 }
 0x7ec   :  { %2082 = vrot.lane.b32.xlu1 %v6056_v36, %s4543_s29  ;;  %2196 = vrot.lane.b32.xlu0 %v6084_v49, %s4547_s4 }
 0x7ef   :  { %v2179_v17 = vpop.permute.xlu1 %2178 }
 0x7f0   :  { %2194 = vrot.lane.b32.xlu1 %v6086_v60, %s4547_s4  ;;  %2208 = vrot.lane.b32.xlu0 %v6084_v49, %s4543_s29 }
 0x7f4   :  { %2206 = vrot.lane.b32.xlu1 %v6086_v60, %s4543_s29  ;;  %2104 = vrot.lane.b32.xlu0 %v6054_v30, %s4546_s15 }
 0x7f8   :  { %2102 = vrot.lane.b32.xlu1 %v6056_v36, %s4546_s15  ;;  %2120 = vrot.lane.b32.xlu0 %v6054_v30, %s4549_s13 }
 0x7fc   :  { %2118 = vrot.lane.b32.xlu1 %v6056_v36, %s4549_s13  ;;  %2140 = vrot.lane.b32.xlu0 %v5992_v62, %s4547_s4 }
 0x800   :  { %2138 = vrot.lane.b32.xlu1 %v5997_v50, %s4547_s4  ;;  %2152 = vrot.lane.b32.xlu0 %v5992_v62, %s4543_s29  ;;  %v6201_v62 = vrot.slane %v6030_v3, %v6193_v53 }
 0x802   :  { %v2173_v19 = vmul.f32 %v2169_v13, %v6201_v62 }
 0x804   :  { %2150 = vrot.lane.b32.xlu1 %v5997_v50, %s4543_s29  ;;  %2220 = vrot.lane.b32.xlu0 %v6058_v47, %s4546_s15 }
 0x808   :  { %2218 = vrot.lane.b32.xlu1 %v6064_v54, %s4546_s15  ;;  %2232 = vrot.lane.b32.xlu0 %v6058_v47, %s4549_s13 }
 0x80c   :  { %2230 = vrot.lane.b32.xlu1 %v6064_v54, %s4549_s13  ;;  %2224 = vrot.lane.b32.xlu0 %v6084_v49, %s4546_s15 }
 0x810   :  { %2222 = vrot.lane.b32.xlu1 %v6086_v60, %s4546_s15  ;;  %2236 = vrot.lane.b32.xlu0 %v6084_v49, %s4549_s13 }
 0x814   :  { %2234 = vrot.lane.b32.xlu1 %v6086_v60, %s4549_s13  ;;  %2513 = vperm.xlu0 %4461, %v6155_v63  }
 0x818   :  { %2508 = vperm.xlu1 %4460, %v6150_v12   ;;  %4463 = vset.pattern.permute.xlu0 %v7771_v14 }
 0x81c   :  { %4462 = vset.pattern.permute.xlu1 %v7770_v45  ;;  %v6173_v45 = vsub.s32 4, %v5183_v31 }
 0x81e   :  { %v6181_v26 = vrot.slane %v6030_v3, %v6173_v45 }
 0x83a   :  { %v2065_v29 = vpop.permute.xlu0 %2064 }
 0x83b   :  { %v2075_v56 = vmul.f32 %v6181_v26, %v2065_v29 }
 0x83e   :  { %v2063_v59 = vpop.permute.xlu1 %2062  ;;  %v2081_v7 = vpop.permute.xlu0 %2080 }
 0x83f   :  { %v2091_v34 = vmul.f32 %v6177_v10, %v2081_v7  ;;  %v2074_v1 = vmul.f32 %v6181_v26, %v2063_v59  ;;  %v2182_v59 = vmul.f32 %v6074_v55, %v6197_v9  ;;  %v2183_v7 = vmul.f32 %v2177_v37, %v6197_v9 }
 0x840   :  { %v2184_v55 = vmul.f32 %v2179_v17, %v6197_v9 }
 0x841   :  { %v2095_v8 = vadd.f32 %v2091_v34, %v2075_v56  ;;  %v2170_v34 = vmul.f32 %v6066_v0, %v6201_v62  ;;  %v2172_v0 = vmul.f32 %v2167_v2, %v6201_v62 }
 0x842   :  { %v2079_v42 = vpop.permute.xlu1 %2078 }
 0x843   :  { %v2090_v51 = vmul.f32 %v6177_v10, %v2079_v42  ;;  %v2171_v42 = vmul.f32 %v2165_v58, %v6201_v62 }
 0x845   :  { %v2094_v15 = vadd.f32 %v2090_v51, %v2074_v1 }
 0x846   :  { %v2193_v48 = vpop.permute.xlu0 %2192 }
 0x847   :  { %v4319_v33 = vpack.c.bf16 %v2095_v8, %v2094_v15  ;;  %v2186_v15 = vadd.f32 %v2182_v59, %v2170_v34  ;;  %v2199_v34 = vmul.f32 %v2193_v48, %v6181_v26 }
 0x849   :  { %4320 = vmatpush3.bf16.msra.mxu1 %v4319_v33  ;;  %v2187_v33 = vadd.f32 %v2183_v7, %v2171_v42 }
 0x84a   :  { %v2191_v52 = vpop.permute.xlu1 %2190  ;;  %4322 = vmatprep.subr.bf16.mxu1 %v4321_v35  ;;  %v2205_v43 = vpop.permute.xlu0 %2204 }
 0x84b   :  { %v4325_v21 = vpack.c.bf16 %v2187_v33, %v2186_v15  ;;  %v2198_v7 = vmul.f32 %v2191_v52, %v6181_v26  ;;  %v2211_v17 = vmul.f32 %v2205_v43, %v6177_v10 }
 0x84d   :  { %v2215_v52 = vadd.f32 %v2211_v17, %v2199_v34 }
 0x84e   :  { %v2203_v27 = vpop.permute.xlu1 %2202  ;;  %v2101_v23 = vpop.permute.xlu0 %2100 }
 0x852   :  { %v2099_v32 = vpop.permute.xlu1 %2098  ;;  %v2117_v46 = vpop.permute.xlu0 %2116 }
 0x856   :  { %v2115_v18 = vpop.permute.xlu1 %2114  ;;  %v2069_v4 = vpop.permute.xlu0 %2068 }
 0x857   :  { %v2077_v51 = vmul.f32 %v6181_v26, %v2069_v4  ;;  %v2188_v4 = vadd.f32 %v2184_v55, %v2172_v0  ;;  %v2126_v2 = vmul.f32 %v6197_v9, %v2115_v18 }
 0x85a   :  { %v2067_v50 = vpop.permute.xlu1 %2066  ;;  %v2085_v29 = vpop.permute.xlu0 %2084 }
 0x85b   :  { %v2093_v31 = vmul.f32 %v6177_v10, %v2085_v29  ;;  %v2076_v3 = vmul.f32 %v6181_v26, %v2067_v50  ;;  %v2185_v29 = vmul.f32 %v2181_v39, %v6197_v9  ;;  %v2210_v50 = vmul.f32 %v2203_v27, %v6177_v10 }
 0x85c   :  { %v2110_v27 = vmul.f32 %v6201_v62, %v2099_v32 }
 0x85d   :  { %v2097_v37 = vadd.f32 %v2093_v31, %v2077_v51  ;;  %v2189_v59 = vadd.f32 %v2185_v29, %v2173_v19  ;;  %v2214_v42 = vadd.f32 %v2210_v50, %v2198_v7  ;;  %v7773_v19 = vpack.c.bf16 %v6036_v6, %v6040_v61 }
 0x85e   :  { %v2083_v56 = vpop.permute.xlu1 %2082  ;;  %v2197_v1 = vpop.permute.xlu0 %2196  ;;  %v2111_v51 = vmul.f32 %v6201_v62, %v2101_v23  ;;  %v7774_v6 = vpack.c.bf16 %v6054_v30, %v6056_v36  ;;  %v2155_v61 = vmul.f32 %v6167_v44, %v6177_v10  ;;  %v2143_v30 = vmul.f32 %v6165_v5, %v6181_v26 }
 0x85f   :  { %v2092_v8 = vmul.f32 %v6177_v10, %v2083_v56  ;;  %v4329_v56 = vpack.c.bf16 %v2189_v59, %v2188_v4  ;;  %v4333_v15 = vpack.c.bf16 %v2215_v52, %v2214_v42  ;;  %v2142_v59 = vmul.f32 %v6161_v38, %v6181_v26 }
 0x860   :  { %v2159_v7 = vadd.f32 %v2155_v61, %v2143_v30  ;;  %v2262_v30 = vld [vmem:[%s7655_s5 + $0x80] sm:$0xff] }
 0x861   :  { %v2096_v35 = vadd.f32 %v2092_v8, %v2076_v3  ;;  %v2130_v3 = vadd.f32 %v2126_v2, %v2110_v27  ;;  %v2201_v8 = vmul.f32 %v2197_v1, %v6181_v26 }
 0x862   :  { %v2195_v25 = vpop.permute.xlu1 %2194  ;;  %v2209_v58 = vpop.permute.xlu0 %2208 }
 0x863   :  { %v4323_v40 = vpack.c.bf16 %v2097_v37, %v2096_v35  ;;  %v2213_v43 = vmul.f32 %v2209_v58, %v6177_v10  ;;  %v2154_v58 = vmul.f32 %v6163_v24, %v6177_v10  ;;  %v7775_v24 = vpack.c.bf16 %v6058_v47, %v6064_v54  ;;  %v2246_v54 = vld [vmem:[%s7655_s5] sm:$0xff] }
 0x865   :  { %4324 = vmatpush3.bf16.msra.mxu1 %v4323_v40  ;;  %v2127_v40 = vmul.f32 %v6197_v9, %v2117_v46 }
 0x866   :  { %v2207_v31 = vpop.permute.xlu1 %2206  ;;  %4326 = vmatprep.subr.bf16.mxu1 %v4325_v21  ;;  %v2105_v39 = vpop.permute.xlu0 %2104  ;;  %v2200_v21 = vmul.f32 %v2195_v25, %v6181_v26  ;;  %v2217_v25 = vadd.f32 %v2213_v43, %v2201_v8 }
 0x867   :  { %v2212_v13 = vmul.f32 %v2207_v31, %v6177_v10  ;;  %v2131_v46 = vadd.f32 %v2127_v40, %v2111_v51  ;;  %v2113_v35 = vmul.f32 %v6201_v62, %v2105_v39  ;;  %v2158_v31 = vadd.f32 %v2154_v58, %v2142_v59  ;;  %v2260_v59 = vld [vmem:[%s7655_s5 + $0x70] sm:$0xff] }
 0x869   :  { %4328 = vmatpush3.bf16.msra.mxu1 %v7773_v19  ;;  %v2216_v32 = vadd.f32 %v2212_v13, %v2200_v21  ;;  %v4335_v23 = vpack.c.bf16 %v2131_v46, %v2130_v3  ;;  %v4343_v34 = vpack.c.bf16 %v2159_v7, %v2158_v31  ;;  %v7776_v19 = vpack.c.bf16 %v6084_v49, %v6086_v60  ;;  %v2249_v3 = vld [vmem:[%s7655_s5 + $0x18] sm:$0xff]  ;;  %v2264_v7 = vld [vmem:[%s7655_s5 + $0x90] sm:$0xff] }
 0x86a   :  { %v2103_v18 = vpop.permute.xlu1 %2102  ;;  %4330 = vmatprep.subr.bf16.mxu1 %v4329_v56  ;;  %v2121_v48 = vpop.permute.xlu0 %2120  ;;  %v2268_v31 = vld [vmem:[%s7655_s5 + $0xb0] sm:$0xff] }
 0x86b   :  { %v2129_v33 = vmul.f32 %v6197_v9, %v2121_v48  ;;  %v2112_v1 = vmul.f32 %v6201_v62, %v2103_v18  ;;  %v4337_v0 = vpack.c.bf16 %v2217_v25, %v2216_v32  ;;  %v2256_v25 = vld [vmem:[%s7655_s5 + $0x50] sm:$0xff] }
 0x86d   :  { %4332 = vmatpush3.bf16.msra.mxu1 %v7774_v6  ;;  %v2133_v36 = vadd.f32 %v2129_v33, %v2113_v35  ;;  %v2252_v6 = vld [vmem:[%s7655_s5 + $0x30] sm:$0xff] }
 0x86e   :  { %v2119_v55 = vpop.permute.xlu1 %2118  ;;  %4334 = vmatprep.subr.bf16.mxu1 %v4333_v15  ;;  %v2141_v37 = vpop.permute.xlu0 %2140  ;;  %v2253_v15 = vld [vmem:[%s7655_s5 + $0x38] sm:$0xff] }
 0x86f   :  { %v2128_v29 = vmul.f32 %v6197_v9, %v2119_v55  ;;  %v2145_v42 = vmul.f32 %v2141_v37, %v6181_v26 }
 0x871   :  { %v2132_v44 = vadd.f32 %v2128_v29, %v2112_v1  ;;  %4336 = vmatpush3.bf16.msra.mxu1 %v4335_v23  ;;  %v2255_v29 = vld [vmem:[%s7655_s5 + $0x48] sm:$0xff] }
 0x872   :  { %v2139_v4 = vpop.permute.xlu1 %2138  ;;  %4338 = vmatprep.subr.bf16.mxu1 %v4337_v0  ;;  %v2153_v50 = vpop.permute.xlu0 %2152  ;;  %v2259_v0 = vld [vmem:[%s7655_s5 + $0x68] sm:$0xff] }
 0x873   :  { %v4339_v17 = vpack.c.bf16 %v2133_v36, %v2132_v44  ;;  %v2157_v39 = vmul.f32 %v2153_v50, %v6177_v10  ;;  %v2144_v13 = vmul.f32 %v2139_v4, %v6181_v26  ;;  %v2254_v36 = vld [vmem:[%s7655_s5 + $0x40] sm:$0xff]  ;;  %v2261_v44 = vld [vmem:[%s7655_s5 + $0x78] sm:$0xff] }
 0x874   :  { %v2257_v4 = vld [vmem:[%s7655_s5 + $0x58] sm:$0xff] }
 0x875   :  { %4340 = vmatpush3.bf16.msra.mxu1 %v4339_v17  ;;  %v2161_v38 = vadd.f32 %v2157_v39, %v2145_v42  ;;  %v2265_v50 = vld [vmem:[%s7655_s5 + $0x98] sm:$0xff]  ;;  %v2263_v17 = vld [vmem:[%s7655_s5 + $0x88] sm:$0xff]  ;;  %v2266_v39 = vld [vmem:[%s7655_s5 + $0xa0] sm:$0xff] }
 0x876   :  { %v2151_v2 = vpop.permute.xlu1 %2150  ;;  %4342 = vmatprep.subr.bf16.mxu1 %v7775_v24  ;;  %v2221_v5 = vpop.permute.xlu0 %2220  ;;  %v2269_v24 = vld [vmem:[%s7655_s5 + $0xb8] sm:$0xff] }
 0x877   :  { %v2156_v56 = vmul.f32 %v2151_v2, %v6177_v10  ;;  %v2250_v10 = vld [vmem:[%s7655_s5 + $0x20] sm:$0xff]  ;;  %v2227_v18 = vmul.f32 %v2221_v5, %v6201_v62  ;;  %v2267_v2 = vld [vmem:[%s7655_s5 + $0xa8] sm:$0xff] }
 0x879   :  { %v2160_v27 = vadd.f32 %v2156_v56, %v2144_v13  ;;  %4344 = vmatpush3.bf16.msra.mxu1 %v4343_v34 }
 0x87a   :  { %v2219_v40 = vpop.permute.xlu1 %2218  ;;  %4346 = vmatprep.subr.bf16.mxu1 %v7776_v19  ;;  %v2233_v52 = vpop.permute.xlu0 %2232 }
 0x87b   :  { %v4347_v21 = vpack.c.bf16 %v2161_v38, %v2160_v27  ;;  %v2239_v47 = vmul.f32 %v2233_v52, %v6197_v9  ;;  %v2226_v49 = vmul.f32 %v2219_v40, %v6201_v62 }
 0x87d   :  { %4348 = vmatpush3.bf16.msra.mxu1 %v4347_v21  ;;  %v2243_v48 = vadd.f32 %v2239_v47, %v2227_v18 }
 0x87e   :  { %v2231_v26 = vpop.permute.xlu1 %2230  ;;  %v2225_v43 = vpop.permute.xlu0 %2224 }
 0x87f   :  { %v2238_v60 = vmul.f32 %v2231_v26, %v6197_v9  ;;  %v2229_v55 = vmul.f32 %v2225_v43, %v6201_v62 }
 0x880   :  { %2359 = vmatmul.mubr.f32.vlgmr.msra.gmra.mrb[48].mxu1 %v2246_v54 }
 0x881   :  { %v2242_v51 = vadd.f32 %v2238_v60, %v2226_v49  ;;  %2363 = vmatprep.mubr.f32.mxu1 %v2250_v10 }
 0x882   :  { %v2223_v8 = vpop.permute.xlu1 %2222  ;;  %v2237_v32 = vpop.permute.xlu0 %2236 }
 0x883   :  { %v4349_v46 = vpack.c.bf16 %v2243_v48, %v2242_v51  ;;  %v2241_v33 = vmul.f32 %v2237_v32, %v6197_v9  ;;  %v2228_v37 = vmul.f32 %v2223_v8, %v6201_v62  ;;  %v2251_v62 = vld [vmem:[%s7655_s5 + $0x28] sm:$0xff] }
 0x884   :  { %2364 = vmatmul.mubr.f32.gmra.mrb[50].mxu1 %v2249_v3 }
 0x885   :  { %4350 = vmatprep.subr.bf16.mxu0 %v4349_v46  ;;  %2368 = vmatprep.mubr.f32.mxu1 %v2253_v15  ;;  %v2245_v35 = vadd.f32 %v2241_v33, %v2229_v55 }
 0x886   :  { %v2235_v61 = vpop.permute.xlu1 %2234  ;;  %4352 = vmatpush3.bf16.msra.mxu0 %v4349_v46 }
 0x887   :  { %v2240_v23 = vmul.f32 %v2235_v61, %v6197_v9  ;;  %v2258_v9 = vld [vmem:[%s7655_s5 + $0x60] sm:$0xff] }
 0x888   :  { %2369 = vmatmul.mubr.f32.gmra.mrb[52].mxu1 %v2252_v6 }
 0x889   :  { %v2244_v1 = vadd.f32 %v2240_v23, %v2228_v37  ;;  %2373 = vmatprep.mubr.f32.mxu1 %v2256_v25 }
 0x88b   :  { %v4353_v58 = vpack.c.bf16 %v2245_v35, %v2244_v1 }
 0x88c   :  { %2374 = vmatmul.mubr.f32.gmra.mrb[54].mxu1 %v2255_v29 }
 0x88d   :  { %4354 = vmatprep.subr.bf16.mxu0 %v4353_v58  ;;  %2378 = vmatprep.mubr.f32.mxu1 %v2259_v0 }
 0x88e   :  { %4356 = vmatpush3.bf16.msra.mxu0 %v4353_v58 }
 0x890   :  { %2379 = vmatmul.mubr.f32.gmra.mrb[56].mxu1 %v2258_v9 }
 0x891   :  { %4162 = vmatmul.mubr.msk.f32.vlgmr.msra.gmra.mrb[64].mxu0 %vm396_vm0, %v2251_v62  ;;  %2383 = vmatprep.mubr.f32.mxu1 %v2262_v30 }
 0x892   :  { %4164 = vmatprep.mubr.msk.f32.mxu0 %vm396_vm0, %v2254_v36 }
 0x893   :  { %v2514_v29 = vpop.permute.xlu0 %2513 }
 0x894   :  { %2384 = vmatmul.mubr.f32.gmra.mrb[58].mxu1 %v2261_v44 }
 0x895   :  { %4165 = vmatmul.mubr.msk.f32.gmra.mrb[66].mxu0 %vm396_vm0, %v2257_v4  ;;  %2388 = vmatprep.mubr.f32.mxu1 %v2265_v50 }
 0x896   :  { %4167 = vmatprep.mubr.msk.f32.mxu0 %vm396_vm0, %v2260_v59 }
 0x897   :  { %v2509_v37 = vpop.permute.xlu1 %2508 }
 0x898   :  { %2389 = vmatmul.mubr.f32.gmra.mrb[60].mxu1 %v2264_v7 }
 0x899   :  { %4168 = vmatmul.mubr.msk.f32.gmra.mrb[68].mxu0 %vm396_vm0, %v2263_v17  ;;  %2393 = vmatprep.mubr.f32.mxu1 %v2268_v31 }
 0x89a   :  { %4170 = vmatprep.mubr.msk.f32.mxu0 %vm396_vm0, %v2266_v39 }
 0x89c   :  { %2394 = vmatmul.mubr.f32.gmra.mrb[62].mxu1 %v2267_v2 }
 0x89d   :  { %4171 = vmatmul.mubr.msk.f32.gmra.mrb[70].mxu0 %vm396_vm0, %v2269_v24 }
 0x953   :  { %v4077_v5 = vpop.f32.mrb[48].mxu1 }
 0x954   :  { %v4078_v34 = vpop.f32.mrb[49].mxu1 }
 0x955   :  { %v4079_v42 = vadd.f32 %v4078_v34, %v4077_v5 }
 0x957   :  { %v4080_v13 = vpop.f32.mrb[50].mxu1 }
 0x958   :  { %v4081_v56 = vpop.f32.mrb[51].mxu1 }
 0x959   :  { %v4082_v38 = vadd.f32 %v4081_v56, %v4080_v13 }
 0x95b   :  { %v4083_v27 = vpop.f32.mrb[52].mxu1 }
 0x95c   :  { %v4084_v40 = vpop.f32.mrb[53].mxu1 }
 0x95d   :  { %v4085_v19 = vadd.f32 %v4084_v40, %v4083_v27 }
 0x95f   :  { %v4086_v52 = vpop.f32.mrb[54].mxu1 }
 0x960   :  { %v4087_v21 = vpop.f32.mrb[55].mxu1 }
 0x961   :  { %v4088_v47 = vadd.f32 %v4087_v21, %v4086_v52 }
 0x963   :  { %v4089_v54 = vpop.f32.mrb[56].mxu1 }
 0x964   :  { %v4090_v26 = vpop.f32.mrb[57].mxu1  ;;  %v4163_v43 = vpop.f32.mrb[64].mxu0 }
 0x965   :  { %v4091_v10 = vadd.f32 %v4090_v26, %v4089_v54  ;;  %v2471_v18 = vadd.f32 %v4163_v43, %v4082_v38  ;;  %v2465_v49 = vpop.f32.mrb[65].mxu0 }
 0x966   :  { %v2466_v60 = vadd.f32 %v4079_v42, %v2465_v49 }
 0x967   :  { %v4092_v48 = vpop.f32.mrb[58].mxu1  ;;  %v6346_v4 = vadd.f32 %v2514_v29, %v2471_v18 }
 0x968   :  { %v4093_v51 = vpop.f32.mrb[59].mxu1  ;;  %v4166_v3 = vpop.f32.mrb[66].mxu0  ;;  %v6342_v9 = vadd.f32 %v2509_v37, %v2466_v60 }
 0x969   :  { %v4094_v8 = vadd.f32 %v4093_v51, %v4092_v48  ;;  %v2481_v32 = vadd.f32 %v4166_v3, %v4088_v47  ;;  %v2475_v15 = vpop.f32.mrb[67].mxu0  ;;  %v2541_v27 = vmul.f32 %v6346_v4, %v6346_v4 }
 0x96a   :  { %v2476_v46 = vadd.f32 %v4085_v19, %v2475_v15  ;;  %v2537_v13 = vmul.f32 %v6342_v9, %v6342_v9 }
 0x96b   :  { %v4095_v33 = vpop.f32.mrb[60].mxu1  ;;  %v6340_v58 = vadd.f32 %v2514_v29, %v2481_v32 }
 0x96c   :  { %v4096_v6 = vpop.f32.mrb[61].mxu1  ;;  %v4169_v61 = vpop.f32.mrb[68].mxu0  ;;  %v6338_v35 = vadd.f32 %v2509_v37, %v2476_v46 }
 0x96d   :  { %v4097_v25 = vadd.f32 %v4096_v6, %v4095_v33  ;;  %v2491_v55 = vadd.f32 %v4169_v61, %v4094_v8  ;;  %v2485_v23 = vpop.f32.mrb[69].mxu0  ;;  %v2529_v2 = vadd.f32 %v6340_v58, %v6346_v4  ;;  %v2542_v24 = vmul.f32 %v6340_v58, %v6340_v58 }
 0x96e   :  { %v2486_v1 = vadd.f32 %v4091_v10, %v2485_v23  ;;  %v2524_v17 = vadd.f32 %v6338_v35, %v6342_v9  ;;  %v2538_v31 = vmul.f32 %v6338_v35, %v6338_v35 }
 0x96f   :  { %v4098_v0 = vpop.f32.mrb[62].mxu1  ;;  %v6348_v50 = vadd.f32 %v2514_v29, %v2491_v55  ;;  %v2550_v26 = vadd.f32 %v2542_v24, %v2541_v27 }
 0x970   :  { %v6344_v62 = vadd.f32 %v2509_v37, %v2486_v1  ;;  %v4099_v30 = vpop.f32.mrb[63].mxu1  ;;  %v4172_v36 = vpop.f32.mrb[70].mxu0  ;;  %v2545_v21 = vadd.f32 %v2538_v31, %v2537_v13 }
 0x971   :  { %v4100_v44 = vadd.f32 %v4099_v30, %v4098_v0  ;;  %v2495_v59 = vpop.f32.mrb[71].mxu0  ;;  %v2530_v38 = vadd.f32 %v2529_v2, %v6348_v50  ;;  %v2543_v40 = vmul.f32 %v6348_v50, %v6348_v50 }
 0x972   :  { %v2496_v7 = vadd.f32 %v4097_v25, %v2495_v59  ;;  %v2539_v5 = vmul.f32 %v6344_v62, %v6344_v62  ;;  %v2525_v42 = vadd.f32 %v2524_v17, %v6344_v62 }
 0x973   :  { %v2501_v39 = vadd.f32 %v4172_v36, %v4100_v44  ;;  %v2551_v10 = vadd.f32 %v2550_v26, %v2543_v40 }
 0x974   :  { %v6360_v34 = vadd.f32 %v2509_v37, %v2496_v7  ;;  %v2546_v43 = vadd.f32 %v2545_v21, %v2539_v5 }
 0x975   :  { %v6365_v56 = vadd.f32 %v2514_v29, %v2501_v39 }
 0x976   :  { %v2526_v19 = vadd.f32 %v2525_v42, %v6360_v34  ;;  %v2540_v52 = vmul.f32 %v6360_v34, %v6360_v34 }
 0x977   :  { %v2531_v47 = vadd.f32 %v2530_v38, %v6365_v56  ;;  %v2544_v54 = vmul.f32 %v6365_v56, %v6365_v56 }
 0x978   :  { %2527 = vadd.xlane.f32.xlu1 %v2526_v19  ;;  %v2547_v18 = vadd.f32 %v2546_v43, %v2540_v52 }
 0x979   :  { %2532 = vadd.xlane.f32.xlu0 %v2531_v47  ;;  %v2552_v49 = vadd.f32 %v2551_v10, %v2544_v54 }
 0x97c   :  { %2548 = vadd.xlane.f32.xlu1 %v2547_v18 }
 0x97d   :  { %2553 = vadd.xlane.f32.xlu0 %v2552_v49 }
 0xa05   :  { %v2528_v60 = vpop.xlane.xlu1 %2527 }
 0xa06   :  { %v2535_v48 = vmul.f32 0.001953125, %v2528_v60  ;;  %v2533_v51 = vpop.xlane.xlu0 %2532 }
 0xa07   :  { %v2536_v3 = vmul.f32 0.001953125, %v2533_v51  ;;  %v7785_v51 = vlaneseq }
 0xa08   :  { %v2557_v32 = vmul.f32 %v2535_v48, %v2535_v48 }
 0xa09   :  { %v2549_v8 = vpop.xlane.xlu1 %2548  ;;  %v2558_v33 = vmul.f32 %v2536_v3, %v2536_v3 }
 0xa0a   :  { %v2555_v15 = vmul.f32 0.001953125, %v2549_v8  ;;  %v2554_v46 = vpop.xlane.xlu0 %2553 }
 0xa0b   :  { %v2556_v6 = vmul.f32 0.001953125, %v2554_v46  ;;  %v6534_v46 = vld [vmem:[%s7661_s11 + $0x18] sm:$0xff] }
 0xa0c   :  { %v2559_v61 = vsub.f32 %v2555_v15, %v2557_v32  ;;  %v6529_v15 = vld [vmem:[%s7661_s11] sm:$0xff]  ;;  %7786 = vst [vmem:[#allocation15_spill] sm:$0xff] %v6534_v46 }
 0xa0d   :  { %v2560_v25 = vsub.f32 %v2556_v6, %v2558_v33  ;;  %v6539_v33 = vrot.slane %v6529_v15, %v5206_v57 }
 0xa0e   :  { %v2561_v55 = vadd.f32 1e-05, %v2559_v61  ;;  %v6544_v61 = vld [vmem:[%s7661_s11 + $0x10] sm:$0xff] }
 0xa0f   :  { %v2562_v37 = vadd.f32 1e-05, %v2560_v25 }
 0xa10   :  { %4491 = vrsqrt.f32 %v2561_v55  ;;  %v6550_v55 = vrot.slane %v6529_v15, %v5186_v41 }
 0xa11   :  { %4493 = vrsqrt.f32 %v2562_v37  ;;  %v6555_v37 = vld [vmem:[%s7661_s11 + $0x8] sm:$0xff] }
 0xa1a   :  { %v4492_v23 = vpop.eup %4491 }
 0xa1b   :  { %v4494_v1 = vpop.eup %4493  ;;  %v2565_v29 = vmul.f32 %v4492_v23, %v6150_v12 }
 0xa1c   :  { %v2566_v0 = vmul.f32 %v4494_v1, %v6155_v63  ;;  %v2646_v1 = vrot.slane %v6534_v46, %v5186_v41 }
 0xa1d   :  { %2569 = vperm.xlu1 %4462, %v2565_v29   ;;  %v2585_v36 = vmul.f32 %v2565_v29, %v2535_v48 }
 0xa1e   :  { %v2586_v30 = vmul.f32 %v2566_v0, %v2536_v3  ;;  %v6524_v3 = vand.u32 127, %v7785_v51 }
 0xa20   :  { %2591 = vrot.lane.b32.xlu0 %v2586_v30, %s4537_s1  ;;  %vm2673_vm7 = vcmp.lt.s32.totalorder %v6524_v3, 64  ;;  %v6564_v30 = vrot.slane %v6555_v37, %v5206_v57  ;;  %vm2730_vm8 = vcmp.lt.s32.totalorder %v6524_v3, 72  ;;  %vm2787_vm9 = vcmp.lt.s32.totalorder %v6524_v3, 56 }
 0xa21   :  { %2589 = vrot.lane.b32.xlu1 %v2585_v36, %s4537_s1  ;;  %vm2924_vm10 = vcmp.lt.s32.totalorder %v6524_v3, 32  ;;  %vm2981_vm11 = vcmp.lt.s32.totalorder %v6524_v3, 98  ;;  %vm3038_vm12 = vcmp.lt.s32.totalorder %v6524_v3, 30  ;;  %vm3087_vm13 = vcmp.lt.s32.totalorder %v6524_v3, 96 }
 0xa25   :  { %2574 = vperm.xlu1 %4462, %v2566_v0   ;;  %v2642_v0 = vrot.slane %v6544_v61, %v5186_v41 }
 0xa29   :  { %4464 = vset.pattern.permute.xlu1 %v7771_v14 }
 0xa92   :  { %v2592_v44 = vpop.permute.xlu0 %2591 }
 0xa93   :  { %v2596_v59 = vsub.f32 %v6155_v63, %v2592_v44  ;;  %v6568_v44 = vrot.slane %v6529_v15, %v5452_v11 }
 0xa95   :  { %2604 = vperm.xlu1 %4464, %v2596_v59   ;;  %v2697_v59 = vrot.slane %v6534_v46, %v5206_v57 }
 0xa99   :  { %4465 = vset.pattern.permute.xlu1 %v7772_v20 }
 0xa9c   :  { %v2570_v7 = vpop.permute.xlu1 %2569 }
 0xa9d   :  { %v2578_v40 = vmul.f32 %v2570_v7, %v6338_v35  ;;  %v2580_v35 = vmul.f32 %v2570_v7, %v6360_v34 }
 0xaa0   :  { %v2590_v17 = vpop.permute.xlu1 %2589 }
 0xaa1   :  { %v2595_v31 = vsub.f32 %v6150_v12, %v2590_v17  ;;  %v2693_v17 = vrot.slane %v6544_v61, %v5206_v57 }
 0xaa3   :  { %2599 = vperm.xlu0 %4463, %v2595_v31  }
 0xaa4   :  { %v2575_v39 = vpop.permute.xlu1 %2574 }
 0xaa5   :  { %v2581_v2 = vmul.f32 %v2575_v39, %v6346_v4  ;;  %v2582_v5 = vmul.f32 %v2575_v39, %v6340_v58  ;;  %v2583_v63 = vmul.f32 %v2575_v39, %v6348_v50  ;;  %v2577_v58 = vmul.f32 %v2570_v7, %v6342_v9 }
 0xaa7   :  { %4466 = vset.pattern.permute.xlu0 %v7772_v20  ;;  %v2584_v20 = vmul.f32 %v2575_v39, %v6365_v56  ;;  %v2579_v56 = vmul.f32 %v2570_v7, %v6344_v62  ;;  %v6574_v7 = vrot.slane %v6555_v37, %v5186_v41 }
 0xb14   :  { %v2605_v24 = vpop.permute.xlu1 %2604 }
 0xb15   :  { %v2611_v14 = vadd.f32 %v2605_v24, %v2581_v2  ;;  %v2612_v42 = vadd.f32 %v2605_v24, %v2582_v5  ;;  %v2613_v38 = vadd.f32 %v2605_v24, %v2583_v63  ;;  %v2614_v4 = vadd.f32 %v2605_v24, %v2584_v20 }
 0xb16   :  { %v6591_v24 = vrot.slane %v6555_v37, %v5452_v11 }
 0xb17   :  { %v6389_v13 = vmax.f32 %v2611_v14, 0.0  ;;  %v6394_v12 = vmax.f32 %v2612_v42, 0.0  ;;  %v6399_v27 = vmax.f32 %v2613_v38, 0.0  ;;  %v6405_v19 = vmax.f32 %v2614_v4, 0.0 }
 0xb18   :  { %v6595_v14 = vrot.slane %v6534_v46, %v6173_v45 }
 0xb19   :  { %7777 = vst [vmem:[#allocation7_spill] sm:$0xff] %v6389_v13  ;;  %2657 = vrot.lane.b32.xlu0 %v6389_v13, %s4548_s30  ;;  %7778 = vst [vmem:[#allocation8_spill] sm:$0xff] %v6394_v12  ;;  %v2651_v39 = vmul.f32 %v6550_v55, %v6399_v27 }
 0xb1a   :  { %7779 = vst [vmem:[#allocation9_spill] sm:$0xff] %v6399_v27  ;;  %7780 = vst [vmem:[#allocation10_spill] sm:$0xff] %v6405_v19 }
 0xb1d   :  { %2661 = vrot.lane.b32.xlu0 %v6394_v12, %s4548_s30 }
 0xb21   :  { %2665 = vrot.lane.b32.xlu0 %v6399_v27, %s4548_s30 }
 0xb22   :  { %v2600_v50 = vpop.permute.xlu0 %2599 }
 0xb23   :  { %v2607_v52 = vadd.f32 %v2600_v50, %v2577_v58  ;;  %v2608_v21 = vadd.f32 %v2600_v50, %v2578_v40  ;;  %v2609_v9 = vadd.f32 %v2600_v50, %v2579_v56  ;;  %v2610_v26 = vadd.f32 %v2600_v50, %v2580_v35 }
 0xb24   :  { %v2750_v58 = vrot.slane %v6544_v61, %v5452_v11 }
 0xb25   :  { %v6407_v47 = vmax.f32 %v2607_v52, 0.0  ;;  %2669 = vrot.lane.b32.xlu0 %v6405_v19, %s4548_s30  ;;  %v6414_v54 = vmax.f32 %v2608_v21, 0.0  ;;  %v6421_v43 = vmax.f32 %v2609_v9, 0.0  ;;  %v6427_v62 = vmax.f32 %v2610_v26, 0.0 }
 0xb26   :  { %v2654_v52 = vmul.f32 %v2646_v1, %v6394_v12  ;;  %v2652_v21 = vmul.f32 %v6574_v7, %v6405_v19 }
 0xb27   :  { %7781 = vst [vmem:[#allocation11_spill] sm:$0xff] %v6407_v47  ;;  %2655 = vrot.lane.b32.xlu1 %v6407_v47, %s4548_s30  ;;  %7782 = vst [vmem:[#allocation12_spill] sm:$0xff] %v6414_v54 }
 0xb28   :  { %7783 = vst [vmem:[#allocation13_spill] sm:$0xff] %v6421_v43  ;;  %7784 = vst [vmem:[#allocation14_spill] sm:$0xff] %v6427_v62 }
 0xb29   :  { %2716 = vrot.lane.b32.xlu0 %v6389_v13, %s4550_s14 }
 0xb2b   :  { %2659 = vrot.lane.b32.xlu1 %v6414_v54, %s4548_s30 }
 0xb2d   :  { %2720 = vrot.lane.b32.xlu0 %v6394_v12, %s4550_s14 }
 0xb2f   :  { %2663 = vrot.lane.b32.xlu1 %v6421_v43, %s4548_s30 }
 0xb31   :  { %2724 = vrot.lane.b32.xlu0 %v6399_v27, %s4550_s14 }
 0xb33   :  { %2667 = vrot.lane.b32.xlu1 %v6427_v62, %s4548_s30 }
 0xb35   :  { %2728 = vrot.lane.b32.xlu0 %v6405_v19, %s4550_s14 }
 0xb37   :  { %2714 = vrot.lane.b32.xlu1 %v6407_v47, %s4550_s14 }
 0xb39   :  { %2773 = vrot.lane.b32.xlu0 %v6389_v13, %s4551_s0 }
 0xb3b   :  { %2718 = vrot.lane.b32.xlu1 %v6414_v54, %s4550_s14 }
 0xb3d   :  { %2777 = vrot.lane.b32.xlu0 %v6394_v12, %s4551_s0 }
 0xb3f   :  { %2722 = vrot.lane.b32.xlu1 %v6421_v43, %s4550_s14 }
 0xb41   :  { %2781 = vrot.lane.b32.xlu0 %v6399_v27, %s4551_s0 }
 0xb43   :  { %2726 = vrot.lane.b32.xlu1 %v6427_v62, %s4550_s14 }
 0xb45   :  { %2785 = vrot.lane.b32.xlu0 %v6405_v19, %s4551_s0 }
 0xb47   :  { %2771 = vrot.lane.b32.xlu1 %v6407_v47, %s4551_s0 }
 0xb49   :  { %3170 = vrot.lane.b32.xlu0 %v6389_v13, %s4547_s4 }
 0xb4b   :  { %2775 = vrot.lane.b32.xlu1 %v6414_v54, %s4551_s0 }
 0xb4d   :  { %3174 = vrot.lane.b32.xlu0 %v6394_v12, %s4547_s4 }
 0xb4f   :  { %2779 = vrot.lane.b32.xlu1 %v6421_v43, %s4551_s0 }
 0xb51   :  { %3178 = vrot.lane.b32.xlu0 %v6399_v27, %s4547_s4 }
 0xb53   :  { %2783 = vrot.lane.b32.xlu1 %v6427_v62, %s4551_s0 }
 0xb55   :  { %3182 = vrot.lane.b32.xlu0 %v6405_v19, %s4547_s4 }
 0xb57   :  { %3168 = vrot.lane.b32.xlu1 %v6407_v47, %s4547_s4 }
 0xb59   :  { %3210 = vrot.lane.b32.xlu0 %v6389_v13, %s4543_s29 }
 0xb5b   :  { %3172 = vrot.lane.b32.xlu1 %v6414_v54, %s4547_s4 }
 0xb5d   :  { %3214 = vrot.lane.b32.xlu0 %v6394_v12, %s4543_s29 }
 0xb5f   :  { %3176 = vrot.lane.b32.xlu1 %v6421_v43, %s4547_s4 }
 0xb61   :  { %3218 = vrot.lane.b32.xlu0 %v6399_v27, %s4543_s29 }
 0xb63   :  { %3180 = vrot.lane.b32.xlu1 %v6427_v62, %s4547_s4 }
 0xb65   :  { %3222 = vrot.lane.b32.xlu0 %v6405_v19, %s4543_s29 }
 0xb67   :  { %3208 = vrot.lane.b32.xlu1 %v6407_v47, %s4543_s29 }
 0xb69   :  { %3250 = vrot.lane.b32.xlu0 %v6389_v13, %s4546_s15 }
 0xb6b   :  { %3212 = vrot.lane.b32.xlu1 %v6414_v54, %s4543_s29 }
 0xb6d   :  { %3254 = vrot.lane.b32.xlu0 %v6394_v12, %s4546_s15 }
 0xb6f   :  { %3216 = vrot.lane.b32.xlu1 %v6421_v43, %s4543_s29 }
 0xb71   :  { %3258 = vrot.lane.b32.xlu0 %v6399_v27, %s4546_s15 }
 0xb73   :  { %3220 = vrot.lane.b32.xlu1 %v6427_v62, %s4543_s29 }
 0xb75   :  { %3262 = vrot.lane.b32.xlu0 %v6405_v19, %s4546_s15 }
 0xb77   :  { %3248 = vrot.lane.b32.xlu1 %v6407_v47, %s4546_s15 }
 0xb79   :  { %3282 = vrot.lane.b32.xlu0 %v6389_v13, %s4549_s13 }
 0xb7b   :  { %3252 = vrot.lane.b32.xlu1 %v6414_v54, %s4546_s15 }
 0xb7d   :  { %3286 = vrot.lane.b32.xlu0 %v6394_v12, %s4549_s13 }
 0xb7f   :  { %3256 = vrot.lane.b32.xlu1 %v6421_v43, %s4546_s15 }
 0xb81   :  { %3290 = vrot.lane.b32.xlu0 %v6399_v27, %s4549_s13 }
 0xb83   :  { %3260 = vrot.lane.b32.xlu1 %v6427_v62, %s4546_s15 }
 0xb85   :  { %3294 = vrot.lane.b32.xlu0 %v6405_v19, %s4549_s13 }
 0xb87   :  { %3280 = vrot.lane.b32.xlu1 %v6407_v47, %s4549_s13 }
 0xb8b   :  { %3284 = vrot.lane.b32.xlu1 %v6414_v54, %s4549_s13  ;;  %v2658_v34 = vpop.permute.xlu0 %2657 }
 0xb8f   :  { %3288 = vrot.lane.b32.xlu1 %v6421_v43, %s4549_s13  ;;  %v2662_v10 = vpop.permute.xlu0 %2661 }
 0xb93   :  { %3292 = vrot.lane.b32.xlu1 %v6427_v62, %s4549_s13  ;;  %v2666_v18 = vpop.permute.xlu0 %2665 }
 0xb94   :  { %v2677_v25 = vsel %vm2673_vm7, %v2662_v10, %v2666_v18 }
 0xb95   :  { %v2702_v29 = vmul.f32 %v6539_v33, %v2677_v25 }
 0xb97   :  { %v2670_v49 = vpop.permute.xlu0 %2669  ;;  %v2710_v20 = vadd.f32 %v2702_v29, %v2651_v39  ;;  %v2653_v29 = vmul.f32 %v2642_v0, %v6389_v13  ;;  %v2754_v39 = vrot.slane %v6534_v46, %v5452_v11 }
 0xb98   :  { %v6580_v31 = vsel %vm2673_vm7, %v2666_v18, %v2670_v49  ;;  %v6586_v2 = vsel %vm2673_vm7, %v2670_v49, %v2658_v34 }
 0xb99   :  { %v2656_v60 = vpop.permute.xlu1 %2655  ;;  %v2703_v4 = vmul.f32 %v6564_v30, %v6580_v31  ;;  %v2704_v56 = vmul.f32 %v2693_v17, %v6586_v2 }
 0xb9b   :  { %v2717_v48 = vpop.permute.xlu0 %2716 }
 0xb9d   :  { %v2660_v8 = vpop.permute.xlu1 %2659 }
 0xb9e   :  { %v6618_v35 = vsel %vm2673_vm7, %v2656_v60, %v2660_v8 }
 0xb9f   :  { %v2721_v32 = vpop.permute.xlu0 %2720  ;;  %7788 = vst [vmem:[#allocation17_spill] sm:$0xff] %v6618_v35 }
 0xba0   :  { %v2736_v9 = vsel %vm2730_vm8, %v2717_v48, %v2721_v32 }
 0xba1   :  { %v2664_v6 = vpop.permute.xlu1 %2663 }
 0xba3   :  { %v2725_v23 = vpop.permute.xlu0 %2724 }
 0xba5   :  { %v2668_v36 = vpop.permute.xlu1 %2667 }
 0xba6   :  { %v6599_v42 = vsel %vm2673_vm7, %v2668_v36, %v2656_v60  ;;  %v6633_v60 = vsel %vm2673_vm7, %v2658_v34, %v2662_v10  ;;  %v2734_v34 = vsel %vm2730_vm8, %v2721_v32, %v2725_v23  ;;  %v2843_v32 = vmul.f32 %v6595_v14, %v2677_v25 }
 0xba7   :  { %v2729_v5 = vpop.permute.xlu0 %2728  ;;  %7787 = vst [vmem:[#allocation16_spill] sm:$0xff] %v6599_v42  ;;  %v2700_v26 = vmul.f32 %v2693_v17, %v6599_v42  ;;  %v2761_v17 = vmul.f32 %v2750_v58, %v2736_v9  ;;  %v2705_v11 = vmul.f32 %v2697_v59, %v6633_v60 }
 0xba8   :  { %v2732_v63 = vsel %vm2730_vm8, %v2725_v23, %v2729_v5  ;;  %v2738_v38 = vsel %vm2730_vm8, %v2729_v5, %v2717_v48  ;;  %v2649_v5 = vmul.f32 %v2642_v0, %v6407_v47  ;;  %v2711_v48 = vadd.f32 %v2703_v4, %v2652_v21 }
 0xba9   :  { %v2759_v50 = vmul.f32 %v6568_v44, %v2732_v63  ;;  %v2715_v40 = vpop.permute.xlu1 %2714  ;;  %v2760_v18 = vmul.f32 %v6591_v24, %v2738_v38  ;;  %v2811_v38 = vrot.slane %v6534_v46, %v5428_v28  ;;  %v2676_v0 = vsel %vm2673_vm7, %v2660_v8, %v2664_v6 }
 0xbaa   :  { %v2708_v10 = vadd.f32 %v2700_v26, %v2649_v5 }
 0xbab   :  { %v6622_v49 = vadd.f32 %v2759_v50, %v2710_v20  ;;  %v6624_v51 = vpop.permute.xlu0 %2773  ;;  %v2712_v20 = vadd.f32 %v2704_v56, %v2653_v29  ;;  %v2701_v50 = vmul.f32 %v2697_v59, %v6618_v35  ;;  %v6646_v4 = vadd.f32 %v2760_v18, %v2711_v48 }
 0xbac   :  { %v2650_v56 = vmul.f32 %v2646_v1, %v6414_v54  ;;  %v6654_v29 = vsel %vm2673_vm7, %v2664_v6, %v2668_v36  ;;  %v2698_v6 = vmul.f32 %v6539_v33, %v2676_v0  ;;  %v2762_v36 = vmul.f32 %v2754_v39, %v2734_v34 }
 0xbad   :  { %7789 = vst [vmem:[#allocation18_spill] sm:$0xff] %v6622_v49  ;;  %v2719_v63 = vpop.permute.xlu1 %2718  ;;  %2910 = vrot.lane.b32.xlu0 %v6622_v49, %s4547_s4  ;;  %7790 = vst [vmem:[#allocation19_spill] sm:$0xff] %v6646_v4  ;;  %v6661_v23 = vadd.f32 %v2761_v17, %v2712_v20  ;;  %v2699_v18 = vmul.f32 %v6564_v30, %v6654_v29  ;;  %v2713_v20 = vadd.f32 %v2705_v11, %v2654_v52 }
 0xbae   :  { %v2735_v42 = vsel %vm2730_vm8, %v2715_v40, %v2719_v63  ;;  %7791 = vst [vmem:[#allocation20_spill] sm:$0xff] %v6654_v29  ;;  %v2709_v1 = vadd.f32 %v2701_v50, %v2650_v56  ;;  %v2647_v50 = vmul.f32 %v6550_v55, %v6421_v43  ;;  %v2648_v33 = vmul.f32 %v6574_v7, %v6427_v62 }
 0xbaf   :  { %v2757_v21 = vmul.f32 %v2750_v58, %v2735_v42  ;;  %v6648_v9 = vpop.permute.xlu0 %2777  ;;  %7792 = vst [vmem:[#allocation21_spill] sm:$0xff] %v6661_v23  ;;  %v6686_v30 = vadd.f32 %v2762_v36, %v2713_v20 }
 0xbb0   :  { %v2793_v8 = vsel %vm2787_vm9, %v6624_v51, %v6648_v9  ;;  %v2706_v52 = vadd.f32 %v2698_v6, %v2647_v50  ;;  %v2839_v6 = vmul.f32 %v6595_v14, %v2676_v0 }
 0xbb1   :  { %v6663_v42 = vadd.f32 %v2757_v21, %v2708_v10  ;;  %v2819_v58 = vmul.f32 %v2811_v38, %v2793_v8  ;;  %v2723_v26 = vpop.permute.xlu1 %2722  ;;  %2914 = vrot.lane.b32.xlu0 %v6646_v4, %s4547_s4  ;;  %v2707_v10 = vadd.f32 %v2699_v18, %v2648_v33 }
 0xbb2   :  { %v2733_v59 = vsel %vm2730_vm8, %v2719_v63, %v2723_v26 }
 0xbb3   :  { %7793 = vst [vmem:[#allocation22_spill] sm:$0xff] %v6663_v42  ;;  %v6672_v25 = vadd.f32 %v2843_v32, %v2819_v58  ;;  %v2758_v5 = vmul.f32 %v2754_v39, %v2733_v59  ;;  %v6674_v48 = vpop.permute.xlu0 %2781 }
 0xbb5   :  { %7794 = vst [vmem:[#allocation23_spill] sm:$0xff] %v6672_v25  ;;  %v6682_v34 = vadd.f32 %v2758_v5, %v2709_v1  ;;  %v2727_v63 = vpop.permute.xlu1 %2726  ;;  %2918 = vrot.lane.b32.xlu0 %v6661_v23, %s4547_s4 }
 0xbb6   :  { %v2731_v39 = vsel %vm2730_vm8, %v2723_v26, %v2727_v63  ;;  %v2737_v11 = vsel %vm2730_vm8, %v2727_v63, %v2715_v40  ;;  %v6791_v40 = vrot.slane %v6544_v61, %v6190_v16 }
 0xbb7   :  { %v2755_v55 = vmul.f32 %v6568_v44, %v2731_v39  ;;  %v2756_v7 = vmul.f32 %v6591_v24, %v2737_v11  ;;  %v6694_v21 = vpop.permute.xlu0 %2785  ;;  %v6748_v39 = vrot.slane %v6534_v46, %v6190_v16  ;;  %v6798_v24 = vld [vmem:[%s7661_s11 + $0x20] sm:$0xf] }
 0xbb8   :  { %7805 = vst [vmem:[#allocation34_spill] sm:$0xff] %v6791_v40  ;;  %7806 = vst [vmem:[#allocation35_spill] sm:$0xff] %v6798_v24 }
 0xbb9   :  { %v6698_v8 = vadd.f32 %v2755_v55, %v2706_v52  ;;  %v6700_v32 = vadd.f32 %v2756_v7, %v2707_v10  ;;  %v6702_v58 = vpop.permute.xlu1 %2771  ;;  %2922 = vrot.lane.b32.xlu0 %v6686_v30, %s4547_s4  ;;  %7800 = vst [vmem:[#allocation29_spill] sm:$0xff] %v6748_v39  ;;  %v6754_v52 = vrot.slane %v6534_v46, %v6193_v53  ;;  %v6761_v55 = vld [vmem:[%s7661_s11 + $0x38] sm:$0xf] }
 0xbba   :  { %7797 = vst [vmem:[#allocation26_spill] sm:$0xff] %v6702_v58  ;;  %7802 = vst [vmem:[#allocation31_spill] sm:$0xff] %v6761_v55  ;;  %v6766_v7 = vrot.slane %v6529_v15, %v6190_v16 }
 0xbbb   :  { %7795 = vst [vmem:[#allocation24_spill] sm:$0xff] %v6698_v8  ;;  %7796 = vst [vmem:[#allocation25_spill] sm:$0xff] %v6700_v32  ;;  %2908 = vrot.lane.b32.xlu1 %v6698_v8, %s4547_s4  ;;  %v3171_v44 = vpop.permute.xlu0 %3170 }
 0xbbc   :  { %7801 = vst [vmem:[#allocation30_spill] sm:$0xff] %v6754_v52 }
 0xbbd   :  { %v6713_v26 = vpop.permute.xlu1 %2775  ;;  %2967 = vrot.lane.b32.xlu0 %v6622_v49, %s4543_s29 }
 0xbbe   :  { %v2792_v1 = vsel %vm2787_vm9, %v6702_v58, %v6713_v26 }
 0xbbf   :  { %v2815_v36 = vmul.f32 %v2811_v38, %v2792_v1  ;;  %2912 = vrot.lane.b32.xlu1 %v6700_v32, %s4547_s4  ;;  %v3175_v59 = vpop.permute.xlu0 %3174 }
 0xbc0   :  { %v3189_v18 = vsel %vm2924_vm10, %v3171_v44, %v3175_v59 }
 0xbc1   :  { %v6726_v5 = vadd.f32 %v2839_v6, %v2815_v36  ;;  %v6728_v20 = vpop.permute.xlu1 %2779  ;;  %2971 = vrot.lane.b32.xlu0 %v6646_v4, %s4543_s29  ;;  %v6773_v6 = vrot.slane %v6761_v55, %v5186_v41  ;;  %v3196_v56 = vmul.f32 %v3189_v18, %v6766_v7  ;;  %v6814_v18 = vrot.slane %v6555_v37, %v6193_v53 }
 0xbc3   :  { %7798 = vst [vmem:[#allocation27_spill] sm:$0xff] %v6726_v5  ;;  %2916 = vrot.lane.b32.xlu1 %v6663_v42, %s4547_s4  ;;  %v3179_v50 = vpop.permute.xlu0 %3178  ;;  %7803 = vst [vmem:[#allocation32_spill] sm:$0xff] %v6773_v6 }
 0xbc4   :  { %v3187_v14 = vsel %vm2924_vm10, %v3175_v59, %v3179_v50  ;;  %v6779_v59 = vrot.slane %v6529_v15, %v6193_v53  ;;  %7808 = vst [vmem:[#allocation37_spill] sm:$0xff] %v6814_v18 }
 0xbc5   :  { %v6736_v38 = vpop.permute.xlu1 %2783  ;;  %2975 = vrot.lane.b32.xlu0 %v6661_v23, %s4543_s29 }
 0xbc6   :  { %7799 = vst [vmem:[#allocation28_spill] sm:$0xff] %v6736_v38  ;;  %v3164_v55 = vmul.f32 %v6779_v59, %v6405_v19 }
 0xbc7   :  { %2920 = vrot.lane.b32.xlu1 %v6682_v34, %s4547_s4  ;;  %v3183_v0 = vpop.permute.xlu0 %3182 }
 0xbc8   :  { %v3185_v33 = vsel %vm2924_vm10, %v3179_v50, %v3183_v0  ;;  %v3191_v63 = vsel %vm2924_vm10, %v3183_v0, %v3171_v44  ;;  %v3167_v50 = vmul.f32 %v6754_v52, %v6399_v27  ;;  %v3204_v38 = vadd.f32 %v3196_v56, %v3164_v55 }
 0xbc9   :  { %v3169_v11 = vpop.permute.xlu1 %3168  ;;  %2979 = vrot.lane.b32.xlu0 %v6686_v30, %s4543_s29  ;;  %v3199_v44 = vmul.f32 %v3191_v63, %v6748_v39  ;;  %v6787_v63 = vrot.slane %v6555_v37, %v6190_v16  ;;  %v6806_v16 = vrot.slane %v6798_v24, %v5186_v41  ;;  %v6832_v24 = vld [vmem:[%s7661_s11 + $0x30] sm:$0xf]  ;;  %v3198_v46 = vmul.f32 %v3185_v33, %v6791_v40 }
 0xbca   :  { %7812 = vst [vmem:[#allocation41_spill] sm:$0xff] %v6832_v24 }
 0xbcb   :  { %2965 = vrot.lane.b32.xlu1 %v6698_v8, %s4543_s29  ;;  %v3211_v10 = vpop.permute.xlu0 %3210  ;;  %7804 = vst [vmem:[#allocation33_spill] sm:$0xff] %v6787_v63  ;;  %v3207_v5 = vadd.f32 %v3199_v44, %v3167_v50  ;;  %7807 = vst [vmem:[#allocation36_spill] sm:$0xff] %v6806_v16  ;;  %v3197_v29 = vmul.f32 %v3187_v14, %v6787_v63 }
 0xbcd   :  { %v3173_v1 = vpop.permute.xlu1 %3172  ;;  %3024 = vrot.lane.b32.xlu0 %v6622_v49, %s4546_s15 }
 0xbce   :  { %v3188_v36 = vsel %vm2924_vm10, %v3169_v11, %v3173_v1 }
 0xbcf   :  { %2969 = vrot.lane.b32.xlu1 %v6700_v32, %s4543_s29  ;;  %v3215_v0 = vpop.permute.xlu0 %3214 }
 0xbd0   :  { %v3229_v17 = vsel %vm2981_vm11, %v3211_v10, %v3215_v0 }
 0xbd1   :  { %v3239_v35 = vmul.f32 %v3229_v17, %v6773_v6  ;;  %v3177_v25 = vpop.permute.xlu1 %3176  ;;  %3028 = vrot.lane.b32.xlu0 %v6646_v4, %s4546_s15  ;;  %v6818_v17 = vrot.slane %v6544_v61, %v6193_v53 }
 0xbd2   :  { %v3186_v58 = vsel %vm2924_vm10, %v3173_v1, %v3177_v25  ;;  %v6827_v1 = vld [vmem:[%s7661_s11 + $0x28] sm:$0xf] }
 0xbd3   :  { %7809 = vst [vmem:[#allocation38_spill] sm:$0xff] %v6818_v17  ;;  %v6820_v44 = vadd.f32 %v3239_v35, %v3207_v5  ;;  %2973 = vrot.lane.b32.xlu1 %v6663_v42, %s4543_s29  ;;  %v3219_v50 = vpop.permute.xlu0 %3218  ;;  %7811 = vst [vmem:[#allocation40_spill] sm:$0xff] %v6827_v1  ;;  %v6838_v35 = vrot.slane %v6827_v1, %v5186_v41  ;;  %v6842_v5 = vrot.slane %v6832_v24, %v5186_v41 }
 0xbd4   :  { %v3227_v53 = vsel %vm2981_vm11, %v3215_v0, %v3219_v50  ;;  %v3165_v41 = vmul.f32 %v6814_v18, %v6389_v13  ;;  %v3166_v56 = vmul.f32 %v6818_v17, %v6394_v12 }
 0xbd5   :  { %7810 = vst [vmem:[#allocation39_spill] sm:$0xff] %v6820_v44  ;;  %7813 = vst [vmem:[#allocation42_spill] sm:$0xff] %v6838_v35  ;;  %v3236_v57 = vmul.f32 %v3227_v53, %v6806_v16  ;;  %v3181_v19 = vpop.permute.xlu1 %3180  ;;  %3032 = vrot.lane.b32.xlu0 %v6661_v23, %s4546_s15 }
 0xbd6   :  { %7814 = vst [vmem:[#allocation43_spill] sm:$0xff] %v6842_v5  ;;  %v3184_v0 = vsel %vm2924_vm10, %v3177_v25, %v3181_v19  ;;  %v3190_v1 = vsel %vm2924_vm10, %v3181_v19, %v3169_v11  ;;  %v3205_v53 = vadd.f32 %v3197_v29, %v3165_v41  ;;  %v3206_v19 = vadd.f32 %v3198_v46, %v3166_v56 }
 0xbd7   :  { %v6857_v14 = vadd.f32 %v3236_v57, %v3204_v38  ;;  %2977 = vrot.lane.b32.xlu1 %v6682_v34, %s4543_s29  ;;  %v3223_v33 = vpop.permute.xlu0 %3222  ;;  %v3195_v57 = vmul.f32 %v3190_v1, %v6748_v39  ;;  %v6879_v46 = vrot.slane %v6529_v15, %v5428_v28  ;;  %v3163_v29 = vmul.f32 %v6754_v52, %v6421_v43 }
 0xbd8   :  { %v3225_v55 = vsel %vm2981_vm11, %v3219_v50, %v3223_v33  ;;  %v3231_v25 = vsel %vm2981_vm11, %v3223_v33, %v3211_v10  ;;  %v2791_v1 = vsel %vm2787_vm9, %v6648_v9, %v6674_v48  ;;  %v3192_v56 = vmul.f32 %v3188_v36, %v6766_v7 }
 0xbd9   :  { %7815 = vst [vmem:[#allocation44_spill] sm:$0xff] %v6857_v14  ;;  %v3237_v11 = vmul.f32 %v3225_v55, %v6838_v35  ;;  %v3238_v24 = vmul.f32 %v3231_v25, %v6842_v5  ;;  %v3209_v13 = vpop.permute.xlu1 %3208  ;;  %3036 = vrot.lane.b32.xlu0 %v6686_v30, %s4546_s15  ;;  %v3203_v33 = vadd.f32 %v3195_v57, %v3163_v29  ;;  %v7828_v14 = vld [vmem:[#allocation41_spill] sm:$0xff] }
 0xbda   :  { %v2816_v9 = vmul.f32 %v6879_v46, %v2791_v1  ;;  %v6910_v36 = vrot.slane %v6555_v37, %v5428_v28  ;;  %v2789_v1 = vsel %vm2787_vm9, %v6674_v48, %v6694_v21  ;;  %v6935_v48 = vrot.slane %v6555_v37, %v6173_v45 }
 0xbdb   :  { %v6870_v38 = vadd.f32 %v3237_v11, %v3205_v53  ;;  %v6872_v12 = vadd.f32 %v3238_v24, %v3206_v19  ;;  %3022 = vrot.lane.b32.xlu1 %v6698_v8, %s4546_s15  ;;  %v3251_v10 = vpop.permute.xlu0 %3250  ;;  %v6887_v24 = vrot.slane %v6529_v15, %v6173_v45  ;;  %v6901_v53 = vrot.slane %v6529_v15, %v6170_v22 }
 0xbdc   :  { %v3160_v11 = vmul.f32 %v6779_v59, %v6427_v62 }
 0xbdd   :  { %7816 = vst [vmem:[#allocation45_spill] sm:$0xff] %v6870_v38  ;;  %7817 = vst [vmem:[#allocation46_spill] sm:$0xff] %v6872_v12  ;;  %v3213_v50 = vpop.permute.xlu1 %3212  ;;  %3073 = vrot.lane.b32.xlu0 %v6622_v49, %s4549_s13  ;;  %v2840_v15 = vmul.f32 %v6887_v24, %v6580_v31  ;;  %v7827_v12 = vld [vmem:[#allocation7_spill] sm:$0xff] }
 0xbde   :  { %v3228_v41 = vsel %vm2981_vm11, %v3209_v13, %v3213_v50  ;;  %v3200_v49 = vadd.f32 %v3192_v56, %v3160_v11  ;;  %v6949_v56 = vrot.slane %v6544_v61, %v5428_v28  ;;  %v3162_v11 = vmul.f32 %v6818_v17, %v6414_v54 }
 0xbdf   :  { %v3235_v55 = vmul.f32 %v3228_v41, %v6773_v6  ;;  %3026 = vrot.lane.b32.xlu1 %v6700_v32, %s4546_s15  ;;  %v3255_v25 = vpop.permute.xlu0 %3254  ;;  %v3193_v41 = vmul.f32 %v3186_v58, %v6787_v63  ;;  %v6939_v58 = vrot.slane %v6555_v37, %v6170_v22  ;;  %v2817_v37 = vmul.f32 %v6910_v36, %v2789_v1 }
 0xbe0   :  { %v6905_v19 = vsel %vm3038_vm12, %v3251_v10, %v3255_v25  ;;  %v2872_v1 = vmul.f32 %v6901_v53, %v6399_v27 }
 0xbe1   :  { %v6914_v57 = vadd.f32 %v3235_v55, %v3203_v33  ;;  %v3217_v29 = vpop.permute.xlu1 %3216  ;;  %3077 = vrot.lane.b32.xlu0 %v6646_v4, %s4549_s13  ;;  %v3194_v33 = vmul.f32 %v3184_v0, %v6791_v40  ;;  %v3161_v0 = vmul.f32 %v6814_v18, %v6407_v47 }
 0xbe2   :  { %v3226_v6 = vsel %vm2981_vm11, %v3213_v50, %v3217_v29  ;;  %v2848_v50 = vadd.f32 %v2840_v15, %v2816_v9 }
 0xbe3   :  { %7818 = vst [vmem:[#allocation47_spill] sm:$0xff] %v6914_v57  ;;  %v3232_v55 = vmul.f32 %v3226_v6, %v6806_v16  ;;  %3030 = vrot.lane.b32.xlu1 %v6663_v42, %s4546_s15  ;;  %v3259_v4 = vpop.permute.xlu0 %3258  ;;  %v3201_v44 = vadd.f32 %v3193_v41, %v3161_v0  ;;  %v3202_v15 = vadd.f32 %v3194_v33, %v3162_v11 }
 0xbe4   :  { %v6945_v6 = vsel %vm3038_vm12, %v3255_v25, %v3259_v4  ;;  %v6982_v41 = vrot.slane %v6544_v61, %v6173_v45  ;;  %v2841_v33 = vmul.f32 %v6935_v48, %v6586_v2 }
 0xbe5   :  { %v6953_v31 = vadd.f32 %v3232_v55, %v3200_v49  ;;  %v3221_v57 = vpop.permute.xlu1 %3220  ;;  %3081 = vrot.lane.b32.xlu0 %v6661_v23, %s4549_s13 }
 0xbe6   :  { %v3224_v25 = vsel %vm2981_vm11, %v3217_v29, %v3221_v57  ;;  %v3230_v9 = vsel %vm2981_vm11, %v3221_v57, %v3209_v13  ;;  %v2795_v13 = vsel %vm2787_vm9, %v6694_v21, %v6624_v51  ;;  %v6992_v51 = vadd.f32 %v2872_v1, %v2848_v50 }
 0xbe7   :  { %7819 = vst [vmem:[#allocation48_spill] sm:$0xff] %v6953_v31  ;;  %v3233_v49 = vmul.f32 %v3224_v25, %v6838_v35  ;;  %v3234_v55 = vmul.f32 %v3230_v9, %v6842_v5  ;;  %3034 = vrot.lane.b32.xlu1 %v6682_v34, %s4546_s15  ;;  %v3263_v17 = vpop.permute.xlu0 %3262  ;;  %v2849_v21 = vadd.f32 %v2841_v33, %v2817_v37  ;;  %v7822_v37 = vld [vmem:[#allocation10_spill] sm:$0xff]  ;;  %v7831_v5 = vld [vmem:[#allocation8_spill] sm:$0xff] }
 0xbe8   :  { %v6976_v57 = vsel %vm3038_vm12, %v3259_v4, %v3263_v17  ;;  %v3271_v29 = vsel %vm3038_vm12, %v3263_v17, %v3251_v10  ;;  %v2818_v4 = vmul.f32 %v6949_v56, %v2795_v13  ;;  %v2790_v10 = vsel %vm2787_vm9, %v6713_v26, %v6728_v20  ;;  %v7826_v26 = vld [vmem:[#allocation15_spill] sm:$0xff] }
 0xbe9   :  { %v6986_v0 = vadd.f32 %v3233_v49, %v3201_v44  ;;  %v6988_v11 = vadd.f32 %v3234_v55, %v3202_v15  ;;  %v3249_v25 = vpop.permute.xlu1 %3248  ;;  %3085 = vrot.lane.b32.xlu0 %v6686_v30, %s4549_s13  ;;  %v7004_v44 = vrot.slane %v6544_v61, %v6170_v22  ;;  %v2842_v50 = vmul.f32 %v6982_v41, %v6633_v60  ;;  %v7823_v15 = vld [vmem:[#allocation5_spill] sm:$0xff]  ;;  %v7824_v49 = vld [vmem:[#allocation40_spill] sm:$0xff]  ;;  %v7825_v61 = vld [vmem:[#allocation6_spill] sm:$0xff] }
 0xbea   :  { %v2873_v9 = vmul.f32 %v6939_v58, %v7822_v37  ;;  %v7016_v55 = vrot.slane %v7824_v49, %v7823_v15  ;;  %v7022_v13 = vrot.slane %v7824_v49, %v7825_v61  ;;  %v7026_v33 = vrot.slane %v7826_v26, %v6170_v22 }
 0xbeb   :  { %7820 = vst [vmem:[#allocation49_spill] sm:$0xff] %v6986_v0  ;;  %7821 = vst [vmem:[#allocation50_spill] sm:$0xff] %v6988_v11  ;;  %3071 = vrot.lane.b32.xlu1 %v6698_v8, %s4549_s13  ;;  %v3283_v2 = vpop.permute.xlu0 %3282  ;;  %v2850_v45 = vadd.f32 %v2842_v50, %v2818_v4  ;;  %v2812_v17 = vmul.f32 %v6879_v46, %v2790_v10  ;;  %v2874_v31 = vmul.f32 %v7004_v44, %v7827_v12  ;;  %v7830_v10 = vld [vmem:[#allocation28_spill] sm:$0xff] }
 0xbec   :  { %v7032_v16 = vadd.f32 %v2873_v9, %v2849_v21  ;;  %v7041_v22 = vrot.slane %v7828_v14, %v7823_v15  ;;  %v7047_v4 = vrot.slane %v7828_v14, %v7825_v61  ;;  %v7829_v21 = vld [vmem:[#allocation20_spill] sm:$0xff]  ;;  %v2788_v50 = vsel %vm2787_vm9, %v6728_v20, %v7830_v10 }
 0xbed   :  { %v3253_v1 = vpop.permute.xlu1 %3252  ;;  %3346 = vrot.lane.b32.xlu0 %v6992_v51, %s4547_s4  ;;  %v2836_v46 = vmul.f32 %v6887_v24, %v7829_v21  ;;  %v3277_v9 = vmul.f32 %v3271_v29, %v7016_v55  ;;  %v2875_v35 = vmul.f32 %v7026_v33, %v7831_v5  ;;  %v7067_v21 = vadd.f32 %v2874_v31, %v2850_v45  ;;  %v7832_v29 = vld [vmem:[#allocation31_spill] sm:$0xff] }
 0xbee   :  { %v7030_v60 = vsel %vm3038_vm12, %v3249_v25, %v3253_v1  ;;  %v2813_v63 = vmul.f32 %v6910_v36, %v2788_v50 }
 0xbef   :  { %3075 = vrot.lane.b32.xlu1 %v6700_v32, %s4549_s13  ;;  %v3287_v11 = vpop.permute.xlu0 %3286  ;;  %v2868_v32 = vmul.f32 %v6901_v53, %v6421_v43  ;;  %v2844_v20 = vadd.f32 %v2836_v46, %v2812_v17  ;;  %v7833_v53 = vld [vmem:[#allocation35_spill] sm:$0xff]  ;;  %v7834_v17 = vld [vmem:[#allocation26_spill] sm:$0xff] }
 0xbf0   :  { %v3301_v26 = vsel %vm3087_vm13, %v3283_v2, %v3287_v11  ;;  %v7078_v18 = vrot.slane %v7833_v53, %v7823_v15  ;;  %v7084_v45 = vrot.slane %v7833_v53, %v7825_v61 }
 0xbf1   :  { %v3309_v0 = vmul.f32 %v3301_v26, %v7022_v13  ;;  %v3257_v38 = vpop.permute.xlu1 %3256  ;;  %3350 = vrot.lane.b32.xlu0 %v7032_v16, %s4547_s4  ;;  %v7071_v26 = vrot.slane %v7832_v29, %v7823_v15  ;;  %v7835_v15 = vld [vmem:[#allocation16_spill] sm:$0xff] }
 0xbf2   :  { %v7065_v24 = vsel %vm3038_vm12, %v3253_v1, %v3257_v38  ;;  %v3278_v1 = vmul.f32 %v6905_v19, %v7041_v22  ;;  %v2837_v50 = vmul.f32 %v6935_v48, %v7835_v15  ;;  %v7836_v19 = vld [vmem:[#allocation23_spill] sm:$0xff] }
 0xbf3   :  { %v3317_v8 = vadd.f32 %v3309_v0, %v3277_v9  ;;  %3079 = vrot.lane.b32.xlu1 %v6663_v42, %s4549_s13  ;;  %v3291_v40 = vpop.permute.xlu0 %3290  ;;  %v2794_v0 = vsel %vm2787_vm9, %v7830_v10, %v7834_v17  ;;  %v7106_v17 = vadd.f32 %v2875_v35, %v7836_v19  ;;  %v3279_v35 = vmul.f32 %v6945_v6, %v7071_v26 }
 0xbf4   :  { %v3299_v31 = vsel %vm3087_vm13, %v3287_v11, %v3291_v40  ;;  %v7097_v11 = vrot.slane %v7832_v29, %v7825_v61  ;;  %v2814_v52 = vmul.f32 %v6949_v56, %v2794_v0  ;;  %v2845_v23 = vadd.f32 %v2837_v50, %v2813_v63  ;;  %v7838_v63 = vld [vmem:[#allocation17_spill] sm:$0xff] }
 0xbf5   :  { %v3310_v36 = vmul.f32 %v3299_v31, %v7047_v4  ;;  %v3261_v46 = vpop.permute.xlu1 %3260  ;;  %3354 = vrot.lane.b32.xlu0 %v7067_v21, %s4547_s4  ;;  %v7108_v31 = vadd.f32 %v2868_v32, %v2844_v20  ;;  %v3276_v32 = vmul.f32 %v6976_v57, %v7078_v18  ;;  %v2869_v56 = vmul.f32 %v6939_v58, %v6427_v62 }
 0xbf6   :  { %v3264_v9 = vsel %vm3038_vm12, %v3257_v38, %v3261_v46  ;;  %v3270_v10 = vsel %vm3038_vm12, %v3261_v46, %v3249_v25  ;;  %v7137_v46 = vrot.slane %v7824_v49, %v5428_v28  ;;  %v2870_v58 = vmul.f32 %v7004_v44, %v6407_v47 }
 0xbf7   :  { %7837 = vst [vmem:[#allocation5_spill] sm:$0xff] %v7108_v31  ;;  %v3318_v42 = vadd.f32 %v3310_v36, %v3278_v1  ;;  %3083 = vrot.lane.b32.xlu1 %v6682_v34, %s4549_s13  ;;  %v3295_v61 = vpop.permute.xlu0 %3294  ;;  %v7131_v57 = vadd.f32 %v2869_v56, %v2845_v23  ;;  %v3273_v15 = vmul.f32 %v3270_v10, %v7016_v55 }
 0xbf8   :  { %v3297_v48 = vsel %vm3087_vm13, %v3291_v40, %v3295_v61  ;;  %v3303_v38 = vsel %vm3087_vm13, %v3295_v61, %v3283_v2  ;;  %v2838_v40 = vmul.f32 %v6982_v41, %v7838_v63  ;;  %v7149_v23 = vrot.slane %v7828_v14, %v5428_v28 }
 0xbf9   :  { %v3308_v25 = vmul.f32 %v3303_v38, %v7084_v45  ;;  %v3311_v20 = vmul.f32 %v3297_v48, %v7097_v11  ;;  %v3281_v1 = vpop.permute.xlu1 %3280  ;;  %3358 = vrot.lane.b32.xlu0 %v7106_v17, %s4547_s4  ;;  %7839 = vst [vmem:[#allocation40_spill] sm:$0xff] %v7131_v57  ;;  %v3321_v44 = vmul.f32 %v7137_v46, %v6421_v43 }
 0xbfa   :  { %v2846_v6 = vadd.f32 %v2838_v40, %v2814_v52  ;;  %v3325_v10 = vmul.f32 %v7137_v46, %v6399_v27  ;;  %v2871_v61 = vmul.f32 %v7026_v33, %v6414_v54  ;;  %v3274_v48 = vmul.f32 %v7030_v60, %v7041_v22  ;;  %v7845_v60 = vld [vmem:[#allocation27_spill] sm:$0xff] }
 0xbfb   :  { %v3316_v2 = vadd.f32 %v3308_v25, %v3276_v32  ;;  %v3319_v0 = vadd.f32 %v3311_v20, %v3279_v35  ;;  %3344 = vrot.lane.b32.xlu1 %v7108_v31, %s4547_s4  ;;  %v3326_v25 = vmul.f32 %v7149_v23, %v7822_v37  ;;  %v7176_v33 = vrot.slane %v7833_v53, %v5428_v28 }
 0xbfc   :  { %v7151_v50 = vadd.f32 %v2870_v58, %v2846_v6  ;;  %v7170_v32 = vadd.f32 %v3325_v10, %v3317_v8  ;;  %v7180_v20 = vrot.slane %v7832_v29, %v5428_v28  ;;  %v7183_v63 = vadd.f32 %v2871_v61, %v7845_v60 }
 0xbfd   :  { %v3285_v36 = vpop.permute.xlu1 %3284  ;;  %3386 = vrot.lane.b32.xlu0 %v6992_v51, %s4543_s29  ;;  %7843 = vst [vmem:[#allocation20_spill] sm:$0xff] %v7176_v33  ;;  %v3322_v40 = vmul.f32 %v7149_v23, %v6427_v62  ;;  %v3275_v53 = vmul.f32 %v7065_v24, %v7071_v26  ;;  %v3272_v28 = vmul.f32 %v3264_v9, %v7078_v18 }
 0xbfe   :  { %v3300_v41 = vsel %vm3087_vm13, %v3281_v1, %v3285_v36  ;;  %7840 = vst [vmem:[#allocation6_spill] sm:$0xff] %v7151_v50  ;;  %7842 = vst [vmem:[#allocation41_spill] sm:$0xff] %v7170_v32  ;;  %v3324_v24 = vmul.f32 %v7176_v33, %v7831_v5  ;;  %v3320_v9 = vmul.f32 %v7176_v33, %v6414_v54  ;;  %v7858_v32 = vld [vmem:[#allocation22_spill] sm:$0xff]  ;;  %v7861_v5 = vld [vmem:[#allocation36_spill] sm:$0xff] }
 0xbff   :  { %v3305_v52 = vmul.f32 %v3300_v41, %v7022_v13  ;;  %3348 = vrot.lane.b32.xlu1 %v7131_v57, %s4547_s4  ;;  %7844 = vst [vmem:[#allocation28_spill] sm:$0xff] %v7180_v20  ;;  %7846 = vst [vmem:[#allocation31_spill] sm:$0xff] %v7183_v63  ;;  %v7198_v41 = vadd.f32 %v3326_v25, %v3318_v42 }
 0xc00   :  { %v7218_v10 = vadd.f32 %v3324_v24, %v3316_v2 }
 0xc01   :  { %v3313_v49 = vadd.f32 %v3305_v52, %v3273_v15  ;;  %v3289_v19 = vpop.permute.xlu1 %3288  ;;  %3390 = vrot.lane.b32.xlu0 %v7032_v16, %s4543_s29  ;;  %7847 = vst [vmem:[#allocation35_spill] sm:$0xff] %v7198_v41 }
 0xc02   :  { %v3298_v14 = vsel %vm3087_vm13, %v3285_v36, %v3289_v19  ;;  %7849 = vst [vmem:[#allocation16_spill] sm:$0xff] %v7218_v10  ;;  %v7855_v10 = vld [vmem:[#allocation18_spill] sm:$0xff] }
 0xc03   :  { %v3306_v38 = vmul.f32 %v3298_v14, %v7047_v4  ;;  %3352 = vrot.lane.b32.xlu1 %v7151_v50, %s4547_s4  ;;  %v7168_v35 = vadd.f32 %v3321_v44, %v3313_v49 }
 0xc05   :  { %7841 = vst [vmem:[#allocation15_spill] sm:$0xff] %v7168_v35  ;;  %v3314_v56 = vadd.f32 %v3306_v38, %v3274_v48  ;;  %v3293_v8 = vpop.permute.xlu1 %3292  ;;  %3394 = vrot.lane.b32.xlu0 %v7067_v21, %s4543_s29 }
 0xc06   :  { %v3296_v29 = vsel %vm3087_vm13, %v3289_v19, %v3293_v8  ;;  %v3302_v36 = vsel %vm3087_vm13, %v3293_v8, %v3281_v1  ;;  %v3327_v1 = vmul.f32 %v7180_v20, %v7827_v12  ;;  %v3323_v19 = vmul.f32 %v7180_v20, %v6407_v47 }
 0xc07   :  { %v7200_v58 = vadd.f32 %v3322_v40, %v3314_v56  ;;  %v3304_v15 = vmul.f32 %v3302_v36, %v7084_v45  ;;  %v3307_v52 = vmul.f32 %v3296_v29, %v7097_v11  ;;  %3356 = vrot.lane.b32.xlu1 %v7183_v63, %s4547_s4  ;;  %v3513_v29 = vld [vmem:[%s7657_s7 + $0x8] sm:$0xff] }
 0xc08   :  { %v7226_v48 = vadd.f32 %v3327_v1, %v3319_v0  ;;  %3745 = vmatprep.mubr.msk.f32.mxu1 %vm3528_vm14, %v3513_v29  ;;  %3747 = vmatprep.mubr.msk.f32.mxu0 %vm3528_vm14, %v3513_v29  ;;  %v3516_v1 = vld [vmem:[%s7658_s8] sm:$0xff] }
 0xc09   :  { %7848 = vst [vmem:[#allocation26_spill] sm:$0xff] %v7200_v58  ;;  %v3312_v42 = vadd.f32 %v3304_v15, %v3272_v28  ;;  %v3315_v49 = vadd.f32 %v3307_v52, %v3275_v53  ;;  %3398 = vrot.lane.b32.xlu0 %v7106_v17, %s4543_s29  ;;  %v2904_v58 = vmul.f32 %v6779_v59, %v6686_v30 }
 0xc0a   :  { %7852 = vst [vmem:[#allocation27_spill] sm:$0xff] %v7226_v48 }
 0xc0b   :  { %v7220_v61 = vadd.f32 %v3320_v9, %v3312_v42  ;;  %3384 = vrot.lane.b32.xlu1 %v7108_v31, %s4543_s29  ;;  %v7224_v14 = vadd.f32 %v3323_v19, %v3315_v49  ;;  %v3517_v42 = vld [vmem:[%s7658_s8 + $0x8] sm:$0xf] }
 0xc0d   :  { %7850 = vst [vmem:[#allocation23_spill] sm:$0xff] %v7220_v61  ;;  %7851 = vst [vmem:[#allocation17_spill] sm:$0xff] %v7224_v14  ;;  %3426 = vrot.lane.b32.xlu0 %v6992_v51, %s4546_s15 }
 0xc0f   :  { %3388 = vrot.lane.b32.xlu1 %v7131_v57, %s4543_s29 }
 0xc11   :  { %3430 = vrot.lane.b32.xlu0 %v7032_v16, %s4546_s15 }
 0xc13   :  { %3392 = vrot.lane.b32.xlu1 %v7151_v50, %s4543_s29 }
 0xc15   :  { %3434 = vrot.lane.b32.xlu0 %v7067_v21, %s4546_s15 }
 0xc17   :  { %3396 = vrot.lane.b32.xlu1 %v7183_v63, %s4543_s29 }
 0xc19   :  { %3438 = vrot.lane.b32.xlu0 %v7106_v17, %s4546_s15 }
 0xc1b   :  { %3424 = vrot.lane.b32.xlu1 %v7108_v31, %s4546_s15 }
 0xc1d   :  { %3458 = vrot.lane.b32.xlu0 %v6992_v51, %s4549_s13 }
 0xc1f   :  { %3428 = vrot.lane.b32.xlu1 %v7131_v57, %s4546_s15  ;;  %v2911_v2 = vpop.permute.xlu0 %2910 }
 0xc21   :  { %3462 = vrot.lane.b32.xlu0 %v7032_v16, %s4549_s13 }
 0xc23   :  { %3432 = vrot.lane.b32.xlu1 %v7151_v50, %s4546_s15  ;;  %v2915_v0 = vpop.permute.xlu0 %2914 }
 0xc24   :  { %v2930_v19 = vsel %vm2924_vm10, %v2911_v2, %v2915_v0 }
 0xc25   :  { %3466 = vrot.lane.b32.xlu0 %v7067_v21, %s4549_s13  ;;  %v2953_v41 = vmul.f32 %v6766_v7, %v2930_v19 }
 0xc27   :  { %3436 = vrot.lane.b32.xlu1 %v7183_v63, %s4546_s15  ;;  %v2919_v60 = vpop.permute.xlu0 %2918  ;;  %v2961_v62 = vadd.f32 %v2953_v41, %v2904_v58 }
 0xc28   :  { %v2928_v48 = vsel %vm2924_vm10, %v2915_v0, %v2919_v60 }
 0xc29   :  { %3470 = vrot.lane.b32.xlu0 %v7106_v17, %s4549_s13 }
 0xc2b   :  { %3456 = vrot.lane.b32.xlu1 %v7108_v31, %s4549_s13  ;;  %v2923_v40 = vpop.permute.xlu0 %2922  ;;  %v7859_v31 = vld [vmem:[#allocation33_spill] sm:$0xff] }
 0xc2c   :  { %v2932_v24 = vsel %vm2924_vm10, %v2923_v40, %v2911_v2  ;;  %v2926_v19 = vsel %vm2924_vm10, %v2919_v60, %v2923_v40  ;;  %v2954_v60 = vmul.f32 %v7859_v31, %v2928_v48  ;;  %v7860_v40 = vld [vmem:[#allocation34_spill] sm:$0xff] }
 0xc2d   :  { %v2909_v56 = vpop.permute.xlu1 %2908  ;;  %3525 = vperm.xlu0 %4466, %v3517_v42   ;;  %v2956_v44 = vmul.f32 %v6748_v39, %v2932_v24  ;;  %v7854_v42 = vld [vmem:[#allocation30_spill] sm:$0xff]  ;;  %v7856_v24 = vld [vmem:[#allocation37_spill] sm:$0xff] }
 0xc2e   :  { %v2905_v14 = vmul.f32 %v7856_v24, %v7855_v10 }
 0xc2f   :  { %3460 = vrot.lane.b32.xlu1 %v7131_v57, %s4549_s13  ;;  %v2968_v8 = vpop.permute.xlu0 %2967 }
 0xc31   :  { %v2913_v53 = vpop.permute.xlu1 %2912 }
 0xc32   :  { %v2929_v2 = vsel %vm2924_vm10, %v2909_v56, %v2913_v53 }
 0xc33   :  { %3464 = vrot.lane.b32.xlu1 %v7151_v50, %s4549_s13  ;;  %v2972_v28 = vpop.permute.xlu0 %2971  ;;  %v2903_v50 = vmul.f32 %v7854_v42, %v7858_v32  ;;  %v2949_v12 = vmul.f32 %v6766_v7, %v2929_v2 }
 0xc34   :  { %v2987_v25 = vsel %vm2981_vm11, %v2968_v8, %v2972_v28 }
 0xc35   :  { %v2917_v36 = vpop.permute.xlu1 %2916 }
 0xc36   :  { %v2927_v0 = vsel %vm2924_vm10, %v2913_v53, %v2917_v36 }
 0xc37   :  { %3468 = vrot.lane.b32.xlu1 %v7183_v63, %s4549_s13  ;;  %v2976_v15 = vpop.permute.xlu0 %2975 }
 0xc38   :  { %v2985_v57 = vsel %vm2981_vm11, %v2972_v28, %v2976_v15  ;;  %v2955_v28 = vmul.f32 %v7860_v40, %v2926_v19  ;;  %v7863_v19 = vld [vmem:[#allocation38_spill] sm:$0xff] }
 0xc39   :  { %v2921_v52 = vpop.permute.xlu1 %2920  ;;  %v3010_v54 = vmul.f32 %v7861_v5, %v2985_v57  ;;  %v2962_v57 = vadd.f32 %v2954_v60, %v2905_v14 }
 0xc3a   :  { %v2931_v49 = vsel %vm2924_vm10, %v2921_v52, %v2909_v56 }
 0xc3b   :  { %v2980_v9 = vpop.permute.xlu0 %2979  ;;  %3520 = vperm.xlu1 %4465, %v3516_v1   ;;  %v2952_v38 = vmul.f32 %v6748_v39, %v2931_v49  ;;  %v7853_v1 = vld [vmem:[#allocation21_spill] sm:$0xff]  ;;  %v7857_v49 = vld [vmem:[#allocation32_spill] sm:$0xff] }
 0xc3c   :  { %v2907_v61 = vmul.f32 %v7854_v42, %v7853_v1  ;;  %v3013_v35 = vmul.f32 %v7857_v49, %v2987_v25  ;;  %v2983_v41 = vsel %vm2981_vm11, %v2976_v15, %v2980_v9  ;;  %v2989_v58 = vsel %vm2981_vm11, %v2980_v9, %v2968_v8 }
 0xc3d   :  { %v2966_v29 = vpop.permute.xlu1 %2965  ;;  %v2960_v25 = vadd.f32 %v2952_v38, %v2903_v50  ;;  %v2950_v38 = vmul.f32 %v7859_v31, %v2927_v0  ;;  %v3018_v9 = vadd.f32 %v3010_v54, %v2961_v62 }
 0xc3e   :  { %v2964_v43 = vadd.f32 %v2956_v44, %v2907_v61  ;;  %v2900_v44 = vmul.f32 %v6779_v59, %v6682_v34  ;;  %v2925_v61 = vsel %vm2924_vm10, %v2917_v36, %v2921_v52  ;;  %v7862_v52 = vld [vmem:[#allocation19_spill] sm:$0xff] }
 0xc3f   :  { %v7291_v6 = vpop.permute.xlu0 %3024  ;;  %v2951_v36 = vmul.f32 %v7860_v40, %v2925_v61  ;;  %v2906_v0 = vmul.f32 %v7863_v19, %v7862_v52 }
 0xc40   :  { %v3021_v2 = vadd.f32 %v3013_v35, %v2964_v43 }
 0xc41   :  { %v2970_v27 = vpop.permute.xlu1 %2969 }
 0xc42   :  { %v2986_v56 = vsel %vm2981_vm11, %v2966_v29, %v2970_v27 }
 0xc43   :  { %v3009_v47 = vmul.f32 %v7857_v49, %v2986_v56  ;;  %v7317_v37 = vpop.permute.xlu0 %3028  ;;  %v2957_v56 = vadd.f32 %v2949_v12, %v2900_v44  ;;  %v7865_v49 = vld [vmem:[#allocation25_spill] sm:$0xff]  ;;  %v7867_v44 = vld [vmem:[#allocation43_spill] sm:$0xff] }
 0xc44   :  { %v2902_v8 = vmul.f32 %v7863_v19, %v7865_v49  ;;  %v3012_v61 = vmul.f32 %v7867_v44, %v2989_v58 }
 0xc45   :  { %v3017_v53 = vadd.f32 %v3009_v47, %v2960_v25  ;;  %v2974_v50 = vpop.permute.xlu1 %2973  ;;  %v7864_v25 = vld [vmem:[#allocation24_spill] sm:$0xff] }
 0xc46   :  { %v2984_v48 = vsel %vm2981_vm11, %v2970_v27, %v2974_v50  ;;  %v2901_v15 = vmul.f32 %v7856_v24, %v7864_v25  ;;  %v7866_v27 = vld [vmem:[#allocation42_spill] sm:$0xff] }
 0xc47   :  { %v3006_v43 = vmul.f32 %v7861_v5, %v2984_v48  ;;  %v7335_v35 = vpop.permute.xlu0 %3032  ;;  %v4393_v47 = vpack.c.bf16 %v3021_v2, %v3017_v53  ;;  %v3011_v12 = vmul.f32 %v7866_v27, %v2983_v41  ;;  %v2963_v5 = vadd.f32 %v2955_v28, %v2906_v0 }
 0xc48   :  { %v2958_v2 = vadd.f32 %v2950_v38, %v2901_v15  ;;  %v2959_v53 = vadd.f32 %v2951_v36, %v2902_v8  ;;  %v7871_v36 = vpack.c.bf16 %v7855_v10, %v7864_v25 }
 0xc49   :  { %v3014_v63 = vadd.f32 %v3006_v43, %v2957_v56  ;;  %v2978_v48 = vpop.permute.xlu1 %2977  ;;  %4394 = vmatprep.subr.bf16.mxu0 %v4393_v47  ;;  %v3019_v41 = vadd.f32 %v3011_v12, %v2962_v57  ;;  %v3020_v58 = vadd.f32 %v3012_v61, %v2963_v5 }
 0xc4a   :  { %v2982_v14 = vsel %vm2981_vm11, %v2974_v50, %v2978_v48  ;;  %v2988_v60 = vsel %vm2981_vm11, %v2978_v48, %v2966_v29  ;;  %v7869_v29 = vpack.c.bf16 %v7862_v52, %v7865_v49  ;;  %v3149_v48 = vmul.f32 %v7137_v46, %v7853_v1 }
 0xc4b   :  { %v4359_v39 = vpack.c.bf16 %v3018_v9, %v3014_v63  ;;  %v3007_v40 = vmul.f32 %v7866_v27, %v2982_v14  ;;  %v3008_v54 = vmul.f32 %v7867_v44, %v2988_v60  ;;  %v3037_v62 = vpop.permute.xlu0 %3036  ;;  %v7868_v63 = vpack.c.bf16 %v6686_v30, %v6682_v34 }
 0xc4c   :  { %v3046_v12 = vsel %vm3038_vm12, %v3037_v62, %v7291_v6  ;;  %v7373_v14 = vmul.f32 %v7149_v23, %v6686_v30  ;;  %v7377_v60 = vmul.f32 %v7176_v33, %v7862_v52  ;;  %v3146_v30 = vmul.f32 %v7149_v23, %v6682_v34 }
 0xc4d   :  { %v3015_v56 = vadd.f32 %v3007_v40, %v2958_v2  ;;  %v3016_v43 = vadd.f32 %v3008_v54, %v2959_v53  ;;  %v3023_v47 = vpop.permute.xlu1 %3022  ;;  %v7870_v40 = vpack.c.bf16 %v7853_v1, %v7858_v32  ;;  %v7381_v53 = vmul.f32 %v7180_v20, %v7855_v10 }
 0xc4e   :  { %v3044_v54 = vsel %vm3038_vm12, %v7291_v6, %v7317_v37  ;;  %v3145_v52 = vmul.f32 %v7137_v46, %v7858_v32  ;;  %v7402_v6 = vmul.f32 %v7176_v33, %v7865_v49  ;;  %v3042_v34 = vsel %vm3038_vm12, %v7317_v37, %v7335_v35 }
 0xc4f   :  { %v4395_v28 = vpack.c.bf16 %v3020_v58, %v3016_v43  ;;  %v3074_v38 = vpop.permute.xlu0 %3073  ;;  %v4357_v0 = vpack.c.bf16 %v3019_v41, %v3015_v56  ;;  %v3340_v41 = vmul.f32 %v6779_v59, %v7106_v17  ;;  %v3068_v58 = vmul.f32 %v7016_v55, %v3046_v12 }
 0xc50   :  { %v3341_v56 = vmul.f32 %v7856_v24, %v6992_v51  ;;  %v3070_v12 = vmul.f32 %v7071_v26, %v3042_v34 }
 0xc51   :  { %v3027_v15 = vpop.permute.xlu1 %3026  ;;  %4358 = vmatprep.subr.bf16.mxu1 %v4357_v0  ;;  %4396 = vmatpush1.bf16.msra.mxu0 %v4395_v28  ;;  %v3342_v28 = vmul.f32 %v7863_v19, %v7032_v16  ;;  %v7414_v0 = vmul.f32 %v7180_v20, %v7864_v25 }
 0xc52   :  { %4360 = vmatpush1.bf16.msra.mxu1 %v4359_v39  ;;  %4398 = vmatprep.subr.bf16.mxu0 %v7868_v63  ;;  %v3069_v63 = vmul.f32 %v7041_v22, %v3044_v54  ;;  %v3043_v49 = vsel %vm3038_vm12, %v3023_v47, %v3027_v15 }
 0xc53   :  { %4362 = vmatprep.subr.bf16.mxu1 %v7869_v29  ;;  %v3078_v50 = vpop.permute.xlu0 %3077 }
 0xc54   :  { %v3093_v8 = vsel %vm3087_vm13, %v3074_v38, %v3078_v50 }
 0xc55   :  { %v3031_v5 = vpop.permute.xlu1 %3030  ;;  %4400 = vmatpush1.bf16.msra.mxu0 %v7870_v40  ;;  %v3117_v2 = vmul.f32 %v7022_v13, %v3093_v8 }
 0xc56   :  { %4364 = vmatpush1.bf16.msra.mxu1 %v7871_v36 }
 0xc57   :  { %v3082_v57 = vpop.permute.xlu0 %3081  ;;  %v3125_v29 = vadd.f32 %v3117_v2, %v3068_v58 }
 0xc58   :  { %v3091_v32 = vsel %vm3087_vm13, %v3078_v50, %v3082_v57 }
 0xc59   :  { %v3035_v39 = vpop.permute.xlu1 %3034  ;;  %v3118_v2 = vmul.f32 %v7047_v4, %v3091_v32 }
 0xc5a   :  { %v3045_v10 = vsel %vm3038_vm12, %v3035_v39, %v3023_v47  ;;  %v3040_v47 = vsel %vm3038_vm12, %v7335_v35, %v3037_v62  ;;  %v3039_v34 = vsel %vm3038_vm12, %v3031_v5, %v3035_v39 }
 0xc5b   :  { %v3086_v9 = vpop.permute.xlu0 %3085  ;;  %v3064_v40 = vmul.f32 %v7016_v55, %v3045_v10  ;;  %v3126_v33 = vadd.f32 %v3118_v2, %v3069_v63  ;;  %v3063_v39 = vmul.f32 %v7078_v18, %v3039_v34  ;;  %v7873_v34 = vld [vmem:[#allocation29_spill] sm:$0xff] }
 0xc5c   :  { %v3089_v50 = vsel %vm3087_vm13, %v3082_v57, %v3086_v9  ;;  %v3095_v36 = vsel %vm3087_vm13, %v3086_v9, %v3074_v38  ;;  %v3065_v57 = vmul.f32 %v7041_v22, %v3043_v49  ;;  %v3041_v38 = vsel %vm3038_vm12, %v3027_v15, %v3031_v5 }
 0xc5d   :  { %v3072_v61 = vpop.permute.xlu1 %3071  ;;  %v3116_v35 = vmul.f32 %v7084_v45, %v3095_v36  ;;  %v3119_v62 = vmul.f32 %v7097_v11, %v3089_v50 }
 0xc5f   :  { %v7387_v1 = vpop.permute.xlu0 %3346 }
 0xc61   :  { %v3076_v43 = vpop.permute.xlu1 %3075 }
 0xc62   :  { %v3092_v37 = vsel %vm3087_vm13, %v3072_v61, %v3076_v43 }
 0xc63   :  { %v3113_v25 = vmul.f32 %v7022_v13, %v3092_v37  ;;  %v3351_v8 = vpop.permute.xlu0 %3350 }
 0xc64   :  { %v3365_v54 = vsel %vm2924_vm10, %v7387_v1, %v3351_v8 }
 0xc65   :  { %v3121_v9 = vadd.f32 %v3113_v25, %v3064_v40  ;;  %v3372_v58 = vmul.f32 %v3365_v54, %v6766_v7  ;;  %v3080_v10 = vpop.permute.xlu1 %3079  ;;  %v3157_v40 = vadd.f32 %v3149_v48, %v3125_v29  ;;  %v3067_v25 = vmul.f32 %v7078_v18, %v3040_v47 }
 0xc66   :  { %v3090_v32 = vsel %vm3087_vm13, %v3076_v43, %v3080_v10  ;;  %v3066_v54 = vmul.f32 %v7071_v26, %v3041_v38 }
 0xc67   :  { %v7445_v37 = vadd.f32 %v3372_v58, %v3340_v41  ;;  %v3114_v49 = vmul.f32 %v7047_v4, %v3090_v32  ;;  %v3355_v20 = vpop.permute.xlu0 %3354  ;;  %v3153_v15 = vadd.f32 %v3145_v52, %v3121_v9  ;;  %v3124_v58 = vadd.f32 %v3116_v35, %v3067_v25  ;;  %v7872_v9 = vld [vmem:[#allocation34_spill] sm:$0xff] }
 0xc68   :  { %v3363_v5 = vsel %vm2924_vm10, %v3351_v8, %v3355_v20  ;;  %v3127_v32 = vadd.f32 %v3119_v62, %v3070_v12  ;;  %v3343_v12 = vmul.f32 %v7854_v42, %v7067_v21 }
 0xc69   :  { %v3122_v50 = vadd.f32 %v3114_v49, %v3065_v57  ;;  %v3373_v43 = vmul.f32 %v3363_v5, %v7859_v31  ;;  %v3084_v41 = vpop.permute.xlu1 %3083  ;;  %v4365_v36 = vpack.c.bf16 %v3157_v40, %v3153_v15  ;;  %v3158_v57 = vadd.f32 %v7373_v14, %v3126_v33 }
 0xc6a   :  { %v3088_v48 = vsel %vm3087_vm13, %v3080_v10, %v3084_v41  ;;  %v3094_v52 = vsel %vm3087_vm13, %v3084_v41, %v3072_v61  ;;  %v3156_v49 = vadd.f32 %v7377_v60, %v3124_v58  ;;  %v3159_v33 = vadd.f32 %v7381_v53, %v3127_v32  ;;  %v7878_v32 = vld [vmem:[#allocation32_spill] sm:$0xff] }
 0xc6b   :  { %v3154_v29 = vadd.f32 %v3146_v30, %v3122_v50  ;;  %v7458_v63 = vadd.f32 %v3373_v43, %v3341_v56  ;;  %v3112_v8 = vmul.f32 %v7084_v45, %v3094_v52  ;;  %v3115_v47 = vmul.f32 %v7097_v11, %v3088_v48  ;;  %4366 = vmatprep.subr.bf16.mxu1 %v4365_v36  ;;  %v3359_v2 = vpop.permute.xlu0 %3358  ;;  %v7874_v43 = vld [vmem:[#allocation31_spill] sm:$0xff]  ;;  %v7876_v36 = vld [vmem:[#allocation49_spill] sm:$0xff] }
 0xc6c   :  { %v3361_v38 = vsel %vm2924_vm10, %v3355_v20, %v3359_v2  ;;  %v3367_v61 = vsel %vm2924_vm10, %v3359_v2, %v7387_v1  ;;  %v3336_v41 = vmul.f32 %v6779_v59, %v7874_v43  ;;  %v7883_v2 = vld [vmem:[#allocation8_spill] sm:$0xff] }
 0xc6d   :  { %v3120_v30 = vadd.f32 %v3112_v8, %v3063_v39  ;;  %v3123_v56 = vadd.f32 %v3115_v47, %v3066_v54  ;;  %v3374_v10 = vmul.f32 %v3361_v38, %v7872_v9  ;;  %v3375_v35 = vmul.f32 %v3367_v61, %v7873_v34  ;;  %v3345_v62 = vpop.permute.xlu1 %3344  ;;  %v7880_v8 = vld [vmem:[#allocation47_spill] sm:$0xff]  ;;  %v7882_v47 = vld [vmem:[#allocation12_spill] sm:$0xff]  ;;  %v7884_v38 = vld [vmem:[#allocation5_spill] sm:$0xff] }
 0xc6e   :  { %v4403_v14 = vpack.c.bf16 %v3158_v57, %v3154_v29  ;;  %v7879_v29 = vld [vmem:[#allocation39_spill] sm:$0xff]  ;;  %v4373_v57 = vpack.c.bf16 %v7883_v2, %v7882_v47  ;;  %v3337_v61 = vmul.f32 %v7856_v24, %v7884_v38  ;;  %v7893_v24 = vld [vmem:[#allocation36_spill] sm:$0xff] }
 0xc6f   :  { %v3152_v15 = vadd.f32 %v7402_v6, %v3120_v30  ;;  %v3382_v40 = vadd.f32 %v3374_v10, %v3342_v28  ;;  %v3383_v20 = vadd.f32 %v3375_v35, %v3343_v12  ;;  %v3387_v25 = vpop.permute.xlu0 %3386  ;;  %v3155_v5 = vadd.f32 %v7414_v0, %v3123_v56  ;;  %v7875_v28 = vld [vmem:[#allocation45_spill] sm:$0xff]  ;;  %v7885_v56 = vld [vmem:[#allocation44_spill] sm:$0xff] }
 0xc70   :  { %v7877_v0 = vpack.c.bf16 %v7875_v28, %v7876_v36  ;;  %v7881_v59 = vpack.c.bf16 %v7879_v29, %v7880_v8  ;;  %v7886_v10 = vld [vmem:[#allocation48_spill] sm:$0xff]  ;;  %v7898_v29 = vld [vmem:[#allocation9_spill] sm:$0xff] }
 0xc71   :  { %v3349_v1 = vpop.permute.xlu1 %3348  ;;  %v4367_v39 = vpack.c.bf16 %v3156_v49, %v3152_v15  ;;  %v4401_v54 = vpack.c.bf16 %v3159_v33, %v3155_v5  ;;  %v7887_v35 = vpack.c.bf16 %v7885_v56, %v7886_v10  ;;  %v7888_v33 = vld [vmem:[#allocation14_spill] sm:$0xff]  ;;  %v7896_v28 = vld [vmem:[#allocation40_spill] sm:$0xff] }
 0xc72   :  { %v3364_v50 = vsel %vm2924_vm10, %v3345_v62, %v3349_v1  ;;  %v3338_v36 = vmul.f32 %v7863_v19, %v7896_v28 }
 0xc73   :  { %v3368_v60 = vmul.f32 %v3364_v50, %v6766_v7  ;;  %4368 = vmatpush1.bf16.msra.mxu1 %v4367_v39  ;;  %4402 = vmatprep.subr.bf16.mxu0 %v4401_v54  ;;  %v3391_v53 = vpop.permute.xlu0 %3390  ;;  %v7891_v39 = vld [vmem:[#allocation50_spill] sm:$0xff] }
 0xc74   :  { %v3405_v6 = vsel %vm2981_vm11, %v3387_v25, %v3391_v53  ;;  %4370 = vmatprep.subr.bf16.mxu1 %v7877_v0  ;;  %4404 = vmatpush1.bf16.msra.mxu0 %v4403_v14  ;;  %v7889_v14 = vld [vmem:[#allocation10_spill] sm:$0xff] }
 0xc75   :  { %v3376_v58 = vadd.f32 %v3368_v60, %v3336_v41  ;;  %v3415_v48 = vmul.f32 %v3405_v6, %v7878_v32  ;;  %v3353_v52 = vpop.permute.xlu1 %3352  ;;  %4406 = vmatprep.subr.bf16.mxu0 %v7881_v59  ;;  %v4409_v15 = vpack.c.bf16 %v7889_v14, %v7888_v33  ;;  %v7894_v41 = vld [vmem:[#allocation11_spill] sm:$0xff]  ;;  %v7904_v33 = vld [vmem:[#allocation17_spill] sm:$0xff] }
 0xc76   :  { %v3362_v7 = vsel %vm2924_vm10, %v3349_v1, %v3353_v52  ;;  %v7890_v1 = vld [vmem:[#allocation46_spill] sm:$0xff]  ;;  %v7895_v60 = vld [vmem:[#allocation7_spill] sm:$0xff] }
 0xc77   :  { %v3423_v12 = vadd.f32 %v3415_v48, %v3383_v20  ;;  %v3369_v30 = vmul.f32 %v3362_v7, %v7859_v31  ;;  %4372 = vmatpush1.bf16.msra.mxu1 %v7887_v35  ;;  %v3395_v49 = vpop.permute.xlu0 %3394  ;;  %v7892_v20 = vpack.c.bf16 %v7890_v1, %v7891_v39  ;;  %v4375_v6 = vpack.c.bf16 %v7895_v60, %v7894_v41  ;;  %v7897_v48 = vld [vmem:[#allocation13_spill] sm:$0xff]  ;;  %v7899_v7 = vld [vmem:[#allocation6_spill] sm:$0xff]  ;;  %v7903_v35 = vld [vmem:[#allocation27_spill] sm:$0xff] }
 0xc78   :  { %v3403_v5 = vsel %vm2981_vm11, %v3391_v53, %v3395_v49  ;;  %4374 = vmatprep.subr.bf16.mxu1 %v4373_v57  ;;  %v4411_v8 = vpack.c.bf16 %v7898_v29, %v7897_v48  ;;  %v3339_v47 = vmul.f32 %v7854_v42, %v7899_v7  ;;  %v7905_v14 = vpack.c.bf16 %v7903_v35, %v7904_v33 }
 0xc79   :  { %4408 = vmatpush1.bf16.msra.mxu0 %v7892_v20  ;;  %v3377_v54 = vadd.f32 %v3369_v30, %v3337_v61  ;;  %v3412_v50 = vmul.f32 %v3403_v5, %v7893_v24  ;;  %v3357_v31 = vpop.permute.xlu1 %3356  ;;  %v7900_v61 = vld [vmem:[#allocation41_spill] sm:$0xff]  ;;  %v7901_v30 = vld [vmem:[#allocation15_spill] sm:$0xff] }
 0xc7a   :  { %4410 = vmatprep.subr.bf16.mxu0 %v4409_v15  ;;  %v3360_v0 = vsel %vm2924_vm10, %v3353_v52, %v3357_v31  ;;  %v3366_v53 = vsel %vm2924_vm10, %v3357_v31, %v3345_v62  ;;  %v7902_v56 = vpack.c.bf16 %v7900_v61, %v7901_v30  ;;  %v7907_v5 = vld [vmem:[#allocation23_spill] sm:$0xff] }
 0xc7b   :  { %v3420_v59 = vadd.f32 %v3412_v50, %v7445_v37  ;;  %v3370_v2 = vmul.f32 %v3360_v0, %v7872_v9  ;;  %v3371_v57 = vmul.f32 %v3366_v53, %v7873_v34  ;;  %4376 = vmatpush1.bf16.msra.mxu1 %v4375_v6  ;;  %v3399_v19 = vpop.permute.xlu0 %3398  ;;  %v7909_v20 = vld [vmem:[#allocation35_spill] sm:$0xff]  ;;  %v7910_v50 = vld [vmem:[#allocation26_spill] sm:$0xff] }
 0xc7c   :  { %v3401_v52 = vsel %vm2981_vm11, %v3395_v49, %v3399_v19  ;;  %v3407_v62 = vsel %vm2981_vm11, %v3399_v19, %v3387_v25  ;;  %4378 = vmatprep.subr.bf16.mxu1 %v7902_v56  ;;  %v7906_v25 = vld [vmem:[#allocation16_spill] sm:$0xff]  ;;  %v7911_v31 = vpack.c.bf16 %v7909_v20, %v7910_v50 }
 0xc7d   :  { %4412 = vmatpush1.bf16.msra.mxu0 %v4411_v8  ;;  %v3378_v37 = vadd.f32 %v3370_v2, %v3338_v36  ;;  %v3379_v10 = vadd.f32 %v3371_v57, %v3339_v47  ;;  %v3413_v42 = vmul.f32 %v3401_v52, %v7866_v27  ;;  %v3414_v9 = vmul.f32 %v3407_v62, %v7867_v44  ;;  %v3385_v34 = vpop.permute.xlu1 %3384 }
 0xc7e   :  { %4414 = vmatprep.subr.bf16.mxu0 %v7905_v14  ;;  %v7908_v1 = vpack.c.bf16 %v7906_v25, %v7907_v5  ;;  %v3501_v25 = vmul.f32 %v7137_v46, %v7067_v21 }
 0xc7f   :  { %v3421_v49 = vadd.f32 %v3413_v42, %v7458_v63  ;;  %v3422_v15 = vadd.f32 %v3414_v9, %v3382_v40  ;;  %v3427_v39 = vpop.permute.xlu0 %3426  ;;  %v4387_v9 = vpack.c.bf16 %v6992_v51, %v7884_v38 }
 0xc80   :  { %4380 = vmatpush1.bf16.msra.mxu1 %v7908_v1 }
 0xc81   :  { %4416 = vmatpush1.bf16.msra.mxu0 %v7911_v31  ;;  %v3389_v41 = vpop.permute.xlu1 %3388 }
 0xc82   :  { %v3404_v60 = vsel %vm2981_vm11, %v3385_v34, %v3389_v41 }
 0xc83   :  { %v3411_v6 = vmul.f32 %v3404_v60, %v7878_v32  ;;  %v3431_v36 = vpop.permute.xlu0 %3430  ;;  %v3502_v60 = vmul.f32 %v7149_v23, %v7106_v17 }
 0xc84   :  { %v3445_v14 = vsel %vm3038_vm12, %v3427_v39, %v3431_v36 }
 0xc85   :  { %v3419_v0 = vadd.f32 %v3411_v6, %v3379_v10  ;;  %v3393_v53 = vpop.permute.xlu1 %3392  ;;  %v4421_v10 = vpack.c.bf16 %v7106_v17, %v7874_v43  ;;  %v3454_v1 = vmul.f32 %v3445_v14, %v7041_v22  ;;  %v7912_v17 = vld [vmem:[#allocation20_spill] sm:$0xff] }
 0xc86   :  { %v3402_v63 = vsel %vm2981_vm11, %v3389_v41, %v3393_v53 }
 0xc87   :  { %v3408_v40 = vmul.f32 %v3402_v63, %v7893_v24  ;;  %v3435_v48 = vpop.permute.xlu0 %3434  ;;  %v4417_v29 = vpack.c.bf16 %v3423_v12, %v3419_v0 }
 0xc88   :  { %v3443_v20 = vsel %vm3038_vm12, %v3431_v36, %v3435_v48 }
 0xc89   :  { %v3416_v8 = vadd.f32 %v3408_v40, %v3376_v58  ;;  %v3397_v47 = vpop.permute.xlu1 %3396  ;;  %4418 = vmatprep.subr.bf16.mxu0 %v4417_v29  ;;  %v3455_v0 = vmul.f32 %v3443_v20, %v7071_v26 }
 0xc8a   :  { %v3400_v2 = vsel %vm2981_vm11, %v3393_v53, %v3397_v47  ;;  %v3406_v57 = vsel %vm2981_vm11, %v3397_v47, %v3385_v34  ;;  %v3500_v47 = vmul.f32 %v7912_v17, %v7032_v16 }
 0xc8b   :  { %v4383_v32 = vpack.c.bf16 %v3420_v59, %v3416_v8  ;;  %v3409_v19 = vmul.f32 %v3400_v2, %v7866_v27  ;;  %v3410_v52 = vmul.f32 %v3406_v57, %v7867_v44  ;;  %v3439_v62 = vpop.permute.xlu0 %3438  ;;  %v4385_v59 = vpack.c.bf16 %v7032_v16, %v7896_v28 }
 0xc8c   :  { %v3447_v27 = vsel %vm3038_vm12, %v3439_v62, %v3427_v39  ;;  %v3441_v39 = vsel %vm3038_vm12, %v3435_v48, %v3439_v62 }
 0xc8d   :  { %v3417_v61 = vadd.f32 %v3409_v19, %v3377_v54  ;;  %v3418_v30 = vadd.f32 %v3410_v52, %v3378_v37  ;;  %v3425_v24 = vpop.permute.xlu1 %3424  ;;  %v4423_v54 = vpack.c.bf16 %v7067_v21, %v7899_v7  ;;  %v3453_v34 = vmul.f32 %v3447_v27, %v7016_v55 }
 0xc8e   :  { %v3452_v63 = vmul.f32 %v3441_v39, %v7078_v18 }
 0xc8f   :  { %v4419_v56 = vpack.c.bf16 %v3422_v15, %v3418_v30  ;;  %v3459_v12 = vpop.permute.xlu0 %3458  ;;  %v4381_v58 = vpack.c.bf16 %v3421_v49, %v3417_v61 }
 0xc91   :  { %v3429_v42 = vpop.permute.xlu1 %3428  ;;  %4382 = vmatprep.subr.bf16.mxu1 %v4381_v58  ;;  %4420 = vmatpush1.bf16.msra.mxu0 %v4419_v56 }
 0xc92   :  { %4384 = vmatpush1.bf16.msra.mxu1 %v4383_v32  ;;  %4422 = vmatprep.subr.bf16.mxu0 %v4421_v10  ;;  %v7913_v32 = vld [vmem:[#allocation28_spill] sm:$0xff]  ;;  %v3444_v16 = vsel %vm3038_vm12, %v3425_v24, %v3429_v42 }
 0xc93   :  { %4386 = vmatprep.subr.bf16.mxu1 %v4385_v59  ;;  %v3463_v44 = vpop.permute.xlu0 %3462  ;;  %v3503_v19 = vmul.f32 %v7913_v32, %v6992_v51  ;;  %v3497_v51 = vmul.f32 %v7137_v46, %v7899_v7 }
 0xc94   :  { %v3477_v37 = vsel %vm3087_vm13, %v3459_v12, %v3463_v44 }
 0xc95   :  { %v3485_v35 = vmul.f32 %v3477_v37, %v7022_v13  ;;  %v3433_v33 = vpop.permute.xlu1 %3432  ;;  %4424 = vmatpush1.bf16.msra.mxu0 %v4423_v54 }
 0xc96   :  { %4388 = vmatpush1.bf16.msra.mxu1 %v4387_v9  ;;  %v3442_v54 = vsel %vm3038_vm12, %v3429_v42, %v3433_v33 }
 0xc97   :  { %v3493_v49 = vadd.f32 %v3485_v35, %v3453_v34  ;;  %v3467_v15 = vpop.permute.xlu0 %3466  ;;  %v3451_v7 = vmul.f32 %v3442_v54, %v7071_v26  ;;  %v3496_v26 = vmul.f32 %v7912_v17, %v7896_v28 }
 0xc98   :  { %v3475_v5 = vsel %vm3087_vm13, %v3463_v44, %v3467_v15  ;;  %v3450_v44 = vmul.f32 %v3444_v16, %v7041_v22 }
 0xc99   :  { %v3486_v50 = vmul.f32 %v3475_v5, %v7047_v4  ;;  %v3437_v31 = vpop.permute.xlu1 %3436  ;;  %v3509_v41 = vadd.f32 %v3501_v25, %v3493_v49 }
 0xc9a   :  { %v3446_v52 = vsel %vm3038_vm12, %v3437_v31, %v3425_v24  ;;  %v3498_v24 = vmul.f32 %v7149_v23, %v7874_v43  ;;  %v3499_v23 = vmul.f32 %v7913_v32, %v7884_v38 }
 0xc9b   :  { %v3494_v6 = vadd.f32 %v3486_v50, %v3454_v1  ;;  %v3471_v21 = vpop.permute.xlu0 %3470 }
 0xc9c   :  { %v3473_v53 = vsel %vm3087_vm13, %v3467_v15, %v3471_v21  ;;  %v3479_v36 = vsel %vm3087_vm13, %v3471_v21, %v3459_v12  ;;  %v3449_v12 = vmul.f32 %v3446_v52, %v7016_v55 }
 0xc9d   :  { %v3510_v40 = vadd.f32 %v3502_v60, %v3494_v6  ;;  %v3484_v29 = vmul.f32 %v3479_v36, %v7084_v45  ;;  %v3487_v48 = vmul.f32 %v3473_v53, %v7097_v11  ;;  %v3457_v8 = vpop.permute.xlu1 %3456 }
 0xc9f   :  { %v3492_v2 = vadd.f32 %v3484_v29, %v3452_v63  ;;  %v3495_v57 = vadd.f32 %v3487_v48, %v3455_v0 }
 0xca1   :  { %v3508_v62 = vadd.f32 %v3500_v47, %v3492_v2  ;;  %v3461_v61 = vpop.permute.xlu1 %3460  ;;  %v3511_v30 = vadd.f32 %v3503_v19, %v3495_v57 }
 0xca2   :  { %v3476_v56 = vsel %vm3087_vm13, %v3457_v8, %v3461_v61 }
 0xca3   :  { %v3481_v58 = vmul.f32 %v3476_v56, %v7022_v13  ;;  %v3440_v13 = vsel %vm3038_vm12, %v3433_v33, %v3437_v31 }
 0xca5   :  { %v3489_v10 = vadd.f32 %v3481_v58, %v3449_v12  ;;  %v3465_v59 = vpop.permute.xlu1 %3464 }
 0xca6   :  { %v3474_v27 = vsel %vm3087_vm13, %v3461_v61, %v3465_v59 }
 0xca7   :  { %v3482_v55 = vmul.f32 %v3474_v27, %v7047_v4  ;;  %v3505_v37 = vadd.f32 %v3497_v51, %v3489_v10  ;;  %v3448_v4 = vmul.f32 %v3440_v13, %v7078_v18  ;;  %v3512_v18 = vld [vmem:[%s7657_s7] sm:$0xff] }
 0xca9   :  { %v3490_v9 = vadd.f32 %v3482_v55, %v3450_v44  ;;  %v3469_v34 = vpop.permute.xlu1 %3468  ;;  %v4389_v46 = vpack.c.bf16 %v3509_v41, %v3505_v37 }
 0xcaa   :  { %v3472_v22 = vsel %vm3087_vm13, %v3465_v59, %v3469_v34  ;;  %v3478_v42 = vsel %vm3087_vm13, %v3469_v34, %v3457_v8 }
 0xcab   :  { %v3506_v35 = vadd.f32 %v3498_v24, %v3490_v9  ;;  %v3480_v14 = vmul.f32 %v3478_v42, %v7084_v45  ;;  %v3483_v33 = vmul.f32 %v3472_v22, %v7097_v11  ;;  %4390 = vmatprep.subr.bf16.mxu1 %v4389_v46  ;;  %v3515_v45 = vld [vmem:[%s7657_s7 + $0x18] sm:$0xf]  ;;  %v3514_v11 = vld [vmem:[%s7657_s7 + $0x10] sm:$0xf]  ;;  %s4552_s7 = smov [#allocation2]  }
 0xcac   :  { %v3526_v6 = vpop.permute.xlu0 %3525  ;;  %s3710_s5 = sshll.u32 %s4552_s7, 4  ;;  %s3711_s5 = int_to_ptr.vmem [resolvable:$true] %s3710_s5 }
 0xcad   :  { %v3488_v43 = vadd.f32 %v3480_v14, %v3448_v4  ;;  %v3491_v49 = vadd.f32 %v3483_v33, %v3451_v7  ;;  %v4427_v15 = vpack.c.bf16 %v3510_v40, %v3506_v35  ;;  %s4511_s1 = scalar_lea.vmem %s3711_s5, 1024  ;;  %p4516_p1 = scmp.lt.s32.totalorder %s3711_s5, %s3711_s5 }
 0xcae   :  { %p4512_p0 = scmp.ne.s32.totalorder %s3711_s5, %s4511_s1  ;;  %p4517_p2 = scmp.lt.s32.totalorder %s4511_s1, %s4511_s1 }
 0xcaf   :  { %v3504_v25 = vadd.f32 %v3496_v26, %v3488_v43  ;;  %v3507_v3 = vadd.f32 %v3499_v23, %v3491_v49 }
 0xcb0   :  { %p4518_p3 = por %p4517_p2, %p4516_p1 }
 0xcb1   :  { %v4391_v5 = vpack.c.bf16 %v3508_v62, %v3504_v25  ;;  %v4425_v1 = vpack.c.bf16 %v3511_v30, %v3507_v3 }
 0xcb2   :  { %p4519_p4 = pnand %p4518_p3, %p4512_p0 }
 0xcb3   :  { %4392 = vmatpush1.bf16.msra.mxu1 %v4391_v5  ;;  %4426 = vmatprep.subr.bf16.mxu0 %v4425_v1 }
 0xcb4   :  { %4428 = vmatpush1.bf16.msra.mxu0 %v4427_v15 }
 0xcb6   :  { %3600 = vmatmul.mubr.f32.vlgmr.msra.gmra.mrb[64].mxu1 %v3512_v18 }
 0xcb7   :  { %3677 = vmatmul.mubr.f32.vlgmr.msra.gmra.mrb[72].mxu0 %v3512_v18  ;;  %3746 = vmatprep.mubr.msk.f32.mxu1 %vm3528_vm14, %v3515_v45 }
 0xcb8   :  { %3748 = vmatprep.mubr.msk.f32.mxu0 %vm3528_vm14, %v3515_v45 }
 0xcba   :  { %3606 = vmatmul.mubr.f32.gmra.mrb[66].mxu1 %v3514_v11  ;;  %v3521_v38 = vpop.permute.xlu1 %3520 }
 0xcbb   :  { %3683 = vmatmul.mubr.f32.gmra.mrb[74].mxu0 %v3514_v11 }
 0xd89   :  { %v3601_v28 = vpop.f32.mrb[64].mxu1 }
 0xd8a   :  { %v3678_v20 = vpop.f32.mrb[72].mxu0  ;;  %v3602_v50 = vadd.f32 %v3601_v28, %v3521_v38  ;;  %v3603_v31 = vpop.f32.mrb[65].mxu1 }
 0xd8b   :  { %v3679_v41 = vadd.f32 %v3678_v20, %v3521_v38  ;;  %v3604_v39 = vadd.f32 %v3603_v31, %v3521_v38  ;;  %v3680_v60 = vpop.f32.mrb[73].mxu0 }
 0xd8c   :  { %4495 = vtanh.f32 %v3602_v50  ;;  %v3681_v21 = vadd.f32 %v3680_v60, %v3521_v38 }
 0xd8d   :  { %4497 = vtanh.f32 %v3679_v41  ;;  %v3607_v0 = vpop.f32.mrb[66].mxu1 }
 0xd8e   :  { %4499 = vtanh.f32 %v3604_v39  ;;  %v3684_v53 = vpop.f32.mrb[74].mxu0  ;;  %v3609_v36 = vpop.f32.mrb[67].mxu1  ;;  %v3608_v63 = vadd.f32 %v3607_v0, %v3526_v6 }
 0xd8f   :  { %4501 = vtanh.f32 %v3681_v21  ;;  %v3686_v40 = vpop.f32.mrb[75].mxu0  ;;  %v3610_v29 = vadd.f32 %v3609_v36, %v3526_v6  ;;  %v3685_v48 = vadd.f32 %v3684_v53, %v3526_v6 }
 0xd90   :  { %v3687_v8 = vadd.f32 %v3686_v40, %v3526_v6  ;;  %4503 = vtanh.f32 %v3608_v63 }
 0xd91   :  { %4505 = vtanh.f32 %v3610_v29 }
 0xd92   :  { %4507 = vtanh.f32 %v3685_v48 }
 0xd93   :  { %4509 = vtanh.f32 %v3687_v8 }
 0xd96   :  { %v4496_v17 = vpop.eup %4495 }
 0xd97   :  { %v4498_v47 = vpop.eup %4497  ;;  %3697 = vst [vmem:[#allocation2] sm:$0xff] %v4496_v17 }
 0xd98   :  { %v4500_v2 = vpop.eup %4499  ;;  %3699 = vst [vmem:[#allocation2 + $0x10] sm:$0xff] %v4498_v47 }
 0xd99   :  { %v4502_v57 = vpop.eup %4501  ;;  %3698 = vst [vmem:[#allocation2 + $0x8] sm:$0xff] %v4500_v2 }
 0xd9a   :  { %v4504_v32 = vpop.eup %4503  ;;  %3700 = vst [vmem:[#allocation2 + $0x18] sm:$0xff] %v4502_v57 }
 0xd9b   :  { %v4506_v19 = vpop.eup %4505  ;;  %3701 = vst [vmem:[#allocation2 + $0x20] sm:$0xf] %v4504_v32 }
 0xd9c   :  { %v4508_v52 = vpop.eup %4507  ;;  %3702 = vst [vmem:[#allocation2 + $0x28] sm:$0xf] %v4506_v19 }
 0xd9d   :  { %v4510_v62 = vpop.eup %4509  ;;  %3703 = vst [vmem:[#allocation2 + $0x30] sm:$0xf] %v4508_v52 }
 0xd9e   :  { %3704 = vst [vmem:[#allocation2 + $0x38] sm:$0xf] %v4510_v62 }
 0xd9f   :  { %4522 = shalt.err (!%p4519_p4)
}
 0xda0   :  { %s4523_s0 = scalar_lea.hbm %s7662_s12, 1024 }
 0xda1   :  { %p4524_p5 = scmp.ne.s32.totalorder %s7662_s12, %s4523_s0  ;;  %p4527_p6 = scmp.lt.u32.totalorder %s4523_s0, %s7662_s12 }
 0xda3   :  { %p4529_p7 = pnand %p4527_p6, %p4524_p5 }
 0xda5   :  { %4532 = shalt.err (!%p4529_p7)
}
 0xda6   :  { %s4553_s17 = smov 512  }
 0xda7   :  { %3716 = dma.vmem_to_hbm [thread:$0]  %s3711_s5, 1024, %s7662_s12, [#allocation3], %s4553_s17, %s4553_s17, %s4547_s4  }
 0xda8   :  { %4533 = dma.done.wait [#allocation3], 1024  }
 0xda9   :  { %4534 = vsyncadd [#allocation3], 4294966272 }
 0xdaa   :  { %3720 = vsyncpa [#allocation3], 1 }

</bundles_post_ra>
